<compile_context>
chip_gen: v6e
topology: v6e:2x2x1
jax: 0.10.0
libtpu: 0.0.40
codegen_flags: <defaults>
</compile_context>

<pallas_src>
import math
import functools

import jax
import jax.numpy as jnp
from jax import lax
from jax.experimental import pallas as pl
from jax.experimental.pallas import tpu as pltpu

HIDDEN = 156            # fixed by the module (self.hidden_size = 156)
FF_HIDDEN = 4 * HIDDEN  # 624
HP = 256                # per-head padded width for q/k/v lane alignment
LN_EPS = 1e-6
NEG_INF = -1e30
ATTN_CHUNK = 8          # batch elements per in-kernel attention chunk


# ----------------------------- shared math ---------------------------------
def _layernorm(x, a, b):
    # matches the BERT repo's custom LayerNorm: unbiased std, eps added to std
    mean = jnp.mean(x, axis=-1, keepdims=True)
    diff = x - mean
    var = jnp.sum(diff * diff, axis=-1, keepdims=True) / (x.shape[-1] - 1)
    std = jnp.sqrt(var)
    inv = 1.0 / (std + LN_EPS)          # one per-row reciprocal, then multiply
    return a * diff * inv + b


def _gelu(x):
    # tanh-approximation GELU used by the BERT repo
    return 0.5 * x * (1.0 + jnp.tanh(math.sqrt(2.0 / math.pi) *
                                     (x + 0.044715 * x * x * x)))


def _softmax_ref(x):
    m = jnp.max(x, axis=-1, keepdims=True)
    e = jnp.exp(x - m)
    return e / jnp.sum(e, axis=-1, keepdims=True)


# ------------------------------ Pallas kernel -------------------------------
def _make_kernel(S1, Bt):
    """Build the per-block kernel for a block of Bt batch elements."""
    R = Bt * S1                      # rows per grid step
    CR = ATTN_CHUNK * S1             # rows per attention chunk
    n_chunks = Bt // ATTN_CHUNK
    scale = 1.0 / math.sqrt(float(HIDDEN))
    bf16 = jnp.bfloat16

    def kernel(emb_ref, wqkv_ref, bqkv_ref, wo_ref, w1_ref, b1_ref, w2_ref,
               fcw_ref, fcb_ref, vec_ref, out_ref, logits_ref):
        x = emb_ref[...]                         # (R, 156) f32

        vecs = vec_ref[...]                      # (6, 156) packed per-channel
        ln1_a = vecs[0:1, :]
        ln1_b = vecs[1:2, :]
        ln2_a = vecs[2:3, :]
        ln2_b = vecs[3:4, :]
        bo = vecs[4:5, :]
        b2 = vecs[5:6, :]

        # ----- attention sub-layer (pre-LN, single head) -----
        ln1 = _layernorm(x, ln1_a, ln1_b)
        # fused QKV matmul, bf16 operands, f32 accumulation
        qkv = jnp.dot(ln1.astype(bf16), wqkv_ref[...],
                      preferred_element_type=jnp.float32) + bqkv_ref[...]
        q = qkv[:, 0:HP]                         # (R, 256) padded lanes are 0
        k = qkv[:, HP:2 * HP]
        v = qkv[:, 2 * HP:3 * HP]

        # block-diagonal bias for ONE chunk, built in-kernel from iota.
        # block id = number of block starts <= row index (avoids vector idiv).
        row_i = lax.broadcasted_iota(jnp.int32, (CR, CR), 0)
        col_i = lax.broadcasted_iota(jnp.int32, (CR, CR), 1)
        blk_r = jnp.zeros((CR, CR), jnp.int32)
        blk_c = jnp.zeros((CR, CR), jnp.int32)
        for b in range(1, ATTN_CHUNK):
            blk_r = blk_r + (row_i >= b * S1).astype(jnp.int32)
            blk_c = blk_c + (col_i >= b * S1).astype(jnp.int32)
        bias = jnp.where(blk_r == blk_c, 0.0, NEG_INF).astype(jnp.float32)

        # chunked attention: score matrix stays (CR, CR), not (R, R)
        ctx = []
        for c in range(n_chunks):
            r0 = c * CR
            qc = q[r0:r0 + CR, :].astype(bf16)
            kc = k[r0:r0 + CR, :].astype(bf16)
            vc = v[r0:r0 + CR, :].astype(bf16)
            s = lax.dot_general(qc, kc, (((1,), (1,)), ((), ())),
                                preferred_element_type=jnp.float32)
            s = s * scale + bias                 # f32 score / bias math
            m = jnp.max(s, axis=-1, keepdims=True)
            e = jnp.exp(s - m)
            p = e * pl.reciprocal(jnp.sum(e, axis=-1, keepdims=True),
                                  approx=True)
            ctx.append(jnp.dot(p.astype(bf16), vc,
                               preferred_element_type=jnp.float32))
        attn = ctx[0] if n_chunks == 1 else jnp.concatenate(ctx, axis=0)

        attn_out = jnp.dot(attn.astype(bf16), wo_ref[...],
                           preferred_element_type=jnp.float32) + bo
        h = x + attn_out

        # ----- feed-forward sub-layer (pre-LN) -----
        ln2 = _layernorm(h, ln2_a, ln2_b)
        ff1 = _gelu(jnp.dot(ln2.astype(bf16), w1_ref[...],
                            preferred_element_type=jnp.float32) + b1_ref[...])
        ff2 = jnp.dot(ff1.astype(bf16), w2_ref[...],
                      preferred_element_type=jnp.float32) + b2
        out = h + ff2                            # TransformerBlock output
        out_ref[...] = out

        # ----- classification head on CLS rows only -----
        # one-hot selection matmul picks row b*S1 for each element b (robust,
        # avoids strided sublane reads); then fc_action on (Bt, 156).
        sel = jnp.where(lax.broadcasted_iota(jnp.int32, (Bt, R), 1) ==
                        lax.broadcasted_iota(jnp.int32, (Bt, R), 0) * S1,
                        1.0, 0.0).astype(bf16)
        cls = jnp.dot(sel, out.astype(bf16),
                      preferred_element_type=jnp.float32)        # (Bt, 156)
        logits_ref[...] = jnp.dot(cls.astype(bf16), fcw_ref[...],
                                  preferred_element_type=jnp.float32) + fcb_ref[...]

    return kernel


# ------------------------------ wrapper -------------------------------------
def _pick_bt(B, S1, target_rows=512):
    """Batch-block size: multiple of ATTN_CHUNK, ~target_rows rows per step."""
    bt = max(ATTN_CHUNK, (target_rows // S1) // ATTN_CHUNK * ATTN_CHUNK)
    if B >= 16:
        # v7x has two TensorCores: keep >= 2 grid steps so the "parallel"
        # grid axis can shard across them (v5e/v6e are single-TC, no harm).
        half = -(-B // 2)
        bt = min(bt, -(-half // ATTN_CHUNK) * ATTN_CHUNK)
    bt = min(bt, -(-B // ATTN_CHUNK) * ATTN_CHUNK)   # don't exceed padded batch
    return max(ATTN_CHUNK, bt)


@functools.partial(jax.jit, static_argnames=("length", "num_classes"))
def pose_bert_forward(x, params, length, num_classes):
    xv = x.reshape(-1, length, HIDDEN)      # x.view(-1, length, 156)
    B = xv.shape[0]
    S1 = length + 1
    NC_PAD = ((num_classes + 127) // 128) * 128
    bf16 = jnp.bfloat16

    # embedding glue: CLS token concat + learned positional embedding
    # TODO(synk): could be fused into the kernel to save one HBM round-trip of
    # the (B*S1, 156) slab; kept in XLA (it fuses into a single pass there).
    cls_tok = jnp.broadcast_to(params["cls_token"], (B, 1, HIDDEN))
    seq = jnp.concatenate([cls_tok, xv], axis=1)            # (B, S1, H)
    emb = seq + params["pos_emb"][:, :S1, :]

    # batch-block tiling (Bt multiple of 8 -> aligned blocks, exact chunking)
    Bt = _pick_bt(B, S1)
    B_pad = -(-B // Bt) * Bt
    if B_pad != B:
        emb = jnp.pad(emb, ((0, B_pad - B), (0, 0), (0, 0)))
    emb_flat = emb.reshape(B_pad * S1, HIDDEN)              # (B_pad*S1, H)
    R = Bt * S1
    grid = (B_pad // Bt,)

    # fused / padded weights; matmul weights pre-cast to bf16 (halves DMA too)
    def _pad_cols(w, b, width):
        return (jnp.pad(w, ((0, 0), (0, width - w.shape[1]))),
                jnp.pad(b, ((0, 0), (0, width - b.shape[1]))))

    wq_p, bq_p = _pad_cols(params["wq"], params["bq"], HP)
    wk_p, bk_p = _pad_cols(params["wk"], params["bk"], HP)
    wv_p, bv_p = _pad_cols(params["wv"], params["bv"], HP)
    wqkv = jnp.concatenate([wq_p, wk_p, wv_p], axis=1).astype(bf16)   # (156,768)
    bqkv = jnp.concatenate([bq_p, bk_p, bv_p], axis=1)                # (1,768) f32
    wo_p = jnp.pad(params["wo"], ((0, HP - HIDDEN), (0, 0))).astype(bf16)
    w1 = params["w1"].astype(bf16)
    w2 = params["w2"].astype(bf16)
    fcw_p = jnp.pad(params["fc_w"],
                    ((0, 0), (0, NC_PAD - num_classes))).astype(bf16)
    fcb_p = jnp.pad(params["fc_b"], ((0, 0), (0, NC_PAD - num_classes)))

    # packed per-channel vectors: ln1_a, ln1_b, ln2_a, ln2_b, bo, b2
    vecs = jnp.concatenate([params["ln1_a"], params["ln1_b"],
                            params["ln2_a"], params["ln2_b"],
                            params["bo"], params["b2"]], axis=0)      # (6,156)

    weight_list = [wqkv, bqkv, wo_p, w1, params["b1"], w2, fcw_p, fcb_p, vecs]
    weight_specs = [pl.BlockSpec(w.shape, lambda b: (0, 0)) for w in weight_list]

    kernel = _make_kernel(S1, Bt)

    out_flat, logits = pl.pallas_call(
        kernel,
        grid=grid,
        in_specs=[pl.BlockSpec((R, HIDDEN), lambda b: (b, 0))] + weight_specs,
        out_specs=[
            pl.BlockSpec((R, HIDDEN), lambda b: (b, 0)),
            pl.BlockSpec((Bt, NC_PAD), lambda b: (b, 0)),   # CLS logits only
        ],
        out_shape=[
            jax.ShapeDtypeStruct((B_pad * S1, HIDDEN), jnp.float32),
            jax.ShapeDtypeStruct((B_pad, NC_PAD), jnp.float32),
        ],
        compiler_params=pltpu.CompilerParams(dimension_semantics=("parallel",)),
    )(emb_flat, *weight_list)

    out3 = out_flat.reshape(B_pad, S1, HIDDEN)
    classification_logits = logits[:B, :num_classes]        # fc_action(dp(out[:,0,:]))
    input_vectors = xv
    sequence_out = out3[:B, 1:, :]
    mask_sample = None                                       # eval mode: sample is None
    return classification_logits, input_vectors, sequence_out, mask_sample


# ------------------------- deterministic parameters --------------------------
def init_params(key, length, num_classes):
    S1 = length + 1
    ks = jax.random.split(key, 16)
    s = 0.05

    def lin(k, din, dout):
        kw, kb = jax.random.split(k)
        return (s * jax.random.normal(kw, (din, dout), jnp.float32),
                s * jax.random.normal(kb, (1, dout), jnp.float32))

    wq, bq = lin(ks[0], HIDDEN, HIDDEN)
    wk, bk = lin(ks[1], HIDDEN, HIDDEN)
    wv, bv = lin(ks[2], HIDDEN, HIDDEN)
    wo, bo = lin(ks[3], HIDDEN, HIDDEN)
    w1, b1 = lin(ks[4], HIDDEN, FF_HIDDEN)
    w2, b2 = lin(ks[5], FF_HIDDEN, HIDDEN)
    fc_w, fc_b = lin(ks[6], HIDDEN, num_classes)
    return {
        "cls_token": s * jax.random.normal(ks[7], (1, 1, HIDDEN), jnp.float32),
        "pos_emb": s * jax.random.normal(ks[8], (1, S1, HIDDEN), jnp.float32),
        "wq": wq, "bq": bq, "wk": wk, "bk": bk, "wv": wv, "bv": bv,
        "wo": wo, "bo": bo,
        "ln1_a": jnp.ones((1, HIDDEN), jnp.float32),
        "ln1_b": jnp.zeros((1, HIDDEN), jnp.float32),
        "ln2_a": jnp.ones((1, HIDDEN), jnp.float32),
        "ln2_b": jnp.zeros((1, HIDDEN), jnp.float32),
        "w1": w1, "b1": b1, "w2": w2, "b2": b2,
        "fc_w": fc_w, "fc_b": fc_b,
    }


# ------------------------- pure-JAX reference (check) ------------------------
def reference_forward(x, params, length, num_classes):
    xv = x.reshape(-1, length, HIDDEN)
    B = xv.shape[0]
    S1 = length + 1
    cls_tok = jnp.broadcast_to(params["cls_token"], (B, 1, HIDDEN))
    seq = jnp.concatenate([cls_tok, xv], axis=1)
    h = seq + params["pos_emb"][:, :S1, :]

    ln1 = _layernorm(h, params["ln1_a"], params["ln1_b"])
    q = jnp.einsum("bsh,hk->bsk", ln1, params["wq"]) + params["bq"]
    k = jnp.einsum("bsh,hk->bsk", ln1, params["wk"]) + params["bk"]
    v = jnp.einsum("bsh,hk->bsk", ln1, params["wv"]) + params["bv"]
    scores = jnp.einsum("bqh,bkh->bqk", q, k) / math.sqrt(float(HIDDEN))
    p = _softmax_ref(scores)
    attn = jnp.einsum("bqk,bkh->bqh", p, v)
    attn = jnp.einsum("bsh,hk->bsk", attn, params["wo"]) + params["bo"]
    h = h + attn

    ln2 = _layernorm(h, params["ln2_a"], params["ln2_b"])
    ff = _gelu(jnp.einsum("bsh,hk->bsk", ln2, params["w1"]) + params["b1"])
    ff = jnp.einsum("bsh,hk->bsk", ff, params["w2"]) + params["b2"]
    out = h + ff

    logits = out[:, 0, :] @ params["fc_w"] + params["fc_b"]
    return logits, xv, out[:, 1:, :], None


# ---------------------------------- main -------------------------------------
if __name__ == "__main__":
    LENGTH = 8
    NUM_CLASSES = 10
    BATCH = 2

    key = jax.random.PRNGKey(0)
    k_x, k_p = jax.random.split(key)
    x = jax.random.normal(k_x, (BATCH, LENGTH, HIDDEN), jnp.float32)
    params = init_params(k_p, LENGTH, NUM_CLASSES)

    logits, input_vectors, seq_out, mask_sample = pose_bert_forward(
        x, params, LENGTH, NUM_CLASSES)
    jax.block_until_ready((logits, input_vectors, seq_out))

    # sanity check against a pure-f32 JAX reference. Tolerance accounts for
    # bf16 MXU operands (f32 accumulation) and the approx softmax reciprocal.
    ref_logits, _, ref_seq, _ = reference_forward(x, params, LENGTH, NUM_CLASSES)
    assert logits.shape == (BATCH, NUM_CLASSES)
    assert seq_out.shape == (BATCH, LENGTH, HIDDEN)
    assert jnp.allclose(logits, ref_logits, atol=3e-2, rtol=3e-2)
    assert jnp.allclose(seq_out, ref_seq, atol=3e-2, rtol=3e-2)

    # TODO(synk): training-mode bernoulli masking / dropout not implemented
    # (module is reproduced in eval mode, where maskSample is None).
    print("KERNEL_OK")
</pallas_src>

<mosaic_0001>
module attributes {stable_mosaic.version = 11 : i64} {
  func.func @kernel(%arg0: i32, %arg1: memref<72x156xf32, #tpu.memory_space<vmem>>, %arg2: memref<156x768xbf16, #tpu.memory_space<vmem>>, %arg3: memref<1x768xf32, #tpu.memory_space<vmem>>, %arg4: memref<256x156xbf16, #tpu.memory_space<vmem>>, %arg5: memref<156x624xbf16, #tpu.memory_space<vmem>>, %arg6: memref<1x624xf32, #tpu.memory_space<vmem>>, %arg7: memref<624x156xbf16, #tpu.memory_space<vmem>>, %arg8: memref<156x128xbf16, #tpu.memory_space<vmem>>, %arg9: memref<1x128xf32, #tpu.memory_space<vmem>>, %arg10: memref<6x156xf32, #tpu.memory_space<vmem>>, %arg11: memref<72x156xf32, #tpu.memory_space<vmem>>, %arg12: memref<8x128xf32, #tpu.memory_space<vmem>>) attributes {dimension_semantics = [#tpu.dimension_semantics<parallel>], iteration_bounds = array<i64: 1>, scalar_prefetch = 0 : i64, scratch_operands = 0 : i64, tpu.core_type = #tpu.core_type<tc>, window_params = [{transform_indices = @transform_0, window_bounds = array<i64: 72, 156>}, {pipeline_mode = #tpu.pipeline_mode<synchronous>, transform_indices = @transform_1, window_bounds = array<i64: 156, 768>}, {pipeline_mode = #tpu.pipeline_mode<synchronous>, transform_indices = @transform_2, window_bounds = array<i64: 1, 768>}, {pipeline_mode = #tpu.pipeline_mode<synchronous>, transform_indices = @transform_3, window_bounds = array<i64: 256, 156>}, {pipeline_mode = #tpu.pipeline_mode<synchronous>, transform_indices = @transform_4, window_bounds = array<i64: 156, 624>}, {pipeline_mode = #tpu.pipeline_mode<synchronous>, transform_indices = @transform_5, window_bounds = array<i64: 1, 624>}, {pipeline_mode = #tpu.pipeline_mode<synchronous>, transform_indices = @transform_6, window_bounds = array<i64: 624, 156>}, {pipeline_mode = #tpu.pipeline_mode<synchronous>, transform_indices = @transform_7, window_bounds = array<i64: 156, 128>}, {pipeline_mode = #tpu.pipeline_mode<synchronous>, transform_indices = @transform_8, window_bounds = array<i64: 1, 128>}, {pipeline_mode = #tpu.pipeline_mode<synchronous>, transform_indices = @transform_9, window_bounds = array<i64: 6, 156>}, {transform_indices = @transform_10, window_bounds = array<i64: 72, 156>}, {transform_indices = @transform_11, window_bounds = array<i64: 8, 128>}]} {
    %c0 = arith.constant 0 : index
    %c0_0 = arith.constant 0 : index
    %0 = vector.load %arg1[%c0, %c0_0] : memref<72x156xf32, #tpu.memory_space<vmem>>, vector<72x156xf32>
    %c0_1 = arith.constant 0 : index
    %c0_2 = arith.constant 0 : index
    %1 = vector.load %arg10[%c0_1, %c0_2] : memref<6x156xf32, #tpu.memory_space<vmem>>, vector<6x156xf32>
    %2 = vector.extract_strided_slice %1 {offsets = [0, 0], sizes = [1, 156], strides = [1, 1]} : vector<6x156xf32> to vector<1x156xf32>
    %3 = vector.extract_strided_slice %1 {offsets = [1, 0], sizes = [1, 156], strides = [1, 1]} : vector<6x156xf32> to vector<1x156xf32>
    %4 = vector.extract_strided_slice %1 {offsets = [2, 0], sizes = [1, 156], strides = [1, 1]} : vector<6x156xf32> to vector<1x156xf32>
    %5 = vector.extract_strided_slice %1 {offsets = [3, 0], sizes = [1, 156], strides = [1, 1]} : vector<6x156xf32> to vector<1x156xf32>
    %6 = vector.extract_strided_slice %1 {offsets = [4, 0], sizes = [1, 156], strides = [1, 1]} : vector<6x156xf32> to vector<1x156xf32>
    %7 = vector.extract_strided_slice %1 {offsets = [5, 0], sizes = [1, 156], strides = [1, 1]} : vector<6x156xf32> to vector<1x156xf32>
    %cst = arith.constant dense<0.000000e+00> : vector<72xf32>
    %8 = vector.multi_reduction <add>, %0, %cst [1] : vector<72x156xf32> to vector<72xf32>
    %9 = vector.shape_cast %8 : vector<72xf32> to vector<72x1xf32>
    %cst_3 = arith.constant 1.560000e+02 : f32
    %10 = vector.broadcast %cst_3 : f32 to vector<72x1xf32>
    %11 = arith.divf %9, %10 : vector<72x1xf32>
    %12 = vector.broadcast %11 : vector<72x1xf32> to vector<72x156xf32>
    %13 = arith.subf %0, %12 : vector<72x156xf32>
    %14 = arith.mulf %13, %13 : vector<72x156xf32>
    %cst_4 = arith.constant dense<0.000000e+00> : vector<72xf32>
    %15 = vector.multi_reduction <add>, %14, %cst_4 [1] : vector<72x156xf32> to vector<72xf32>
    %16 = vector.shape_cast %15 : vector<72xf32> to vector<72x1xf32>
    %cst_5 = arith.constant 1.550000e+02 : f32
    %17 = vector.broadcast %cst_5 : f32 to vector<72x1xf32>
    %18 = arith.divf %16, %17 : vector<72x1xf32>
    %19 = math.sqrt %18 : vector<72x1xf32>
    %cst_6 = arith.constant 9.99999997E-7 : f32
    %20 = vector.broadcast %cst_6 : f32 to vector<72x1xf32>
    %21 = arith.addf %19, %20 : vector<72x1xf32>
    %cst_7 = arith.constant 1.000000e+00 : f32
    %22 = vector.broadcast %cst_7 : f32 to vector<72x1xf32>
    %23 = arith.divf %22, %21 : vector<72x1xf32>
    %24 = vector.broadcast %2 : vector<1x156xf32> to vector<72x156xf32>
    %25 = arith.mulf %24, %13 : vector<72x156xf32>
    %26 = vector.broadcast %23 : vector<72x1xf32> to vector<72x156xf32>
    %27 = arith.mulf %25, %26 : vector<72x156xf32>
    %28 = vector.broadcast %3 : vector<1x156xf32> to vector<72x156xf32>
    %29 = arith.addf %27, %28 : vector<72x156xf32>
    %30 = arith.truncf %29 : vector<72x156xf32> to vector<72x156xbf16>
    %c0_8 = arith.constant 0 : index
    %c0_9 = arith.constant 0 : index
    %31 = vector.load %arg2[%c0_8, %c0_9] : memref<156x768xbf16, #tpu.memory_space<vmem>>, vector<156x768xbf16>
    %cst_10 = arith.constant dense<0.000000e+00> : vector<72x768xf32>
    %32 = tpu.matmul %30, %31, %cst_10 {dimension_numbers = #tpu.dot_dimension_numbers<[1], [0], [0], [1], [0, 0, 1, 1], [], []>} : vector<72x156xbf16>, vector<156x768xbf16>, vector<72x768xf32> -> vector<72x768xf32>
    %c0_11 = arith.constant 0 : index
    %c0_12 = arith.constant 0 : index
    %33 = vector.load %arg3[%c0_11, %c0_12] : memref<1x768xf32, #tpu.memory_space<vmem>>, vector<1x768xf32>
    %34 = vector.broadcast %33 : vector<1x768xf32> to vector<72x768xf32>
    %35 = arith.addf %32, %34 : vector<72x768xf32>
    %36 = vector.extract_strided_slice %35 {offsets = [0, 0], sizes = [72, 256], strides = [1, 1]} : vector<72x768xf32> to vector<72x256xf32>
    %37 = vector.extract_strided_slice %35 {offsets = [0, 256], sizes = [72, 256], strides = [1, 1]} : vector<72x768xf32> to vector<72x256xf32>
    %38 = vector.extract_strided_slice %35 {offsets = [0, 512], sizes = [72, 256], strides = [1, 1]} : vector<72x768xf32> to vector<72x256xf32>
    %39 = tpu.iota {dimensions = array<i32: 0>} : vector<72x72xi32>
    %40 = tpu.iota {dimensions = array<i32: 1>} : vector<72x72xi32>
    %c0_i32 = arith.constant 0 : i32
    %41 = vector.broadcast %c0_i32 : i32 to vector<72x72xi32>
    %c0_i32_13 = arith.constant 0 : i32
    %42 = vector.broadcast %c0_i32_13 : i32 to vector<72x72xi32>
    %c9_i32 = arith.constant 9 : i32
    %43 = vector.broadcast %c9_i32 : i32 to vector<72x72xi32>
    %44 = arith.cmpi sge, %39, %43 : vector<72x72xi32>
    %45 = arith.extui %44 : vector<72x72xi1> to vector<72x72xi32>
    %46 = arith.addi %41, %45 : vector<72x72xi32>
    %c9_i32_14 = arith.constant 9 : i32
    %47 = vector.broadcast %c9_i32_14 : i32 to vector<72x72xi32>
    %48 = arith.cmpi sge, %40, %47 : vector<72x72xi32>
    %49 = arith.extui %48 : vector<72x72xi1> to vector<72x72xi32>
    %50 = arith.addi %42, %49 : vector<72x72xi32>
    %c18_i32 = arith.constant 18 : i32
    %51 = vector.broadcast %c18_i32 : i32 to vector<72x72xi32>
    %52 = arith.cmpi sge, %39, %51 : vector<72x72xi32>
    %53 = arith.extui %52 : vector<72x72xi1> to vector<72x72xi32>
    %54 = arith.addi %46, %53 : vector<72x72xi32>
    %c18_i32_15 = arith.constant 18 : i32
    %55 = vector.broadcast %c18_i32_15 : i32 to vector<72x72xi32>
    %56 = arith.cmpi sge, %40, %55 : vector<72x72xi32>
    %57 = arith.extui %56 : vector<72x72xi1> to vector<72x72xi32>
    %58 = arith.addi %50, %57 : vector<72x72xi32>
    %c27_i32 = arith.constant 27 : i32
    %59 = vector.broadcast %c27_i32 : i32 to vector<72x72xi32>
    %60 = arith.cmpi sge, %39, %59 : vector<72x72xi32>
    %61 = arith.extui %60 : vector<72x72xi1> to vector<72x72xi32>
    %62 = arith.addi %54, %61 : vector<72x72xi32>
    %c27_i32_16 = arith.constant 27 : i32
    %63 = vector.broadcast %c27_i32_16 : i32 to vector<72x72xi32>
    %64 = arith.cmpi sge, %40, %63 : vector<72x72xi32>
    %65 = arith.extui %64 : vector<72x72xi1> to vector<72x72xi32>
    %66 = arith.addi %58, %65 : vector<72x72xi32>
    %c36_i32 = arith.constant 36 : i32
    %67 = vector.broadcast %c36_i32 : i32 to vector<72x72xi32>
    %68 = arith.cmpi sge, %39, %67 : vector<72x72xi32>
    %69 = arith.extui %68 : vector<72x72xi1> to vector<72x72xi32>
    %70 = arith.addi %62, %69 : vector<72x72xi32>
    %c36_i32_17 = arith.constant 36 : i32
    %71 = vector.broadcast %c36_i32_17 : i32 to vector<72x72xi32>
    %72 = arith.cmpi sge, %40, %71 : vector<72x72xi32>
    %73 = arith.extui %72 : vector<72x72xi1> to vector<72x72xi32>
    %74 = arith.addi %66, %73 : vector<72x72xi32>
    %c45_i32 = arith.constant 45 : i32
    %75 = vector.broadcast %c45_i32 : i32 to vector<72x72xi32>
    %76 = arith.cmpi sge, %39, %75 : vector<72x72xi32>
    %77 = arith.extui %76 : vector<72x72xi1> to vector<72x72xi32>
    %78 = arith.addi %70, %77 : vector<72x72xi32>
    %c45_i32_18 = arith.constant 45 : i32
    %79 = vector.broadcast %c45_i32_18 : i32 to vector<72x72xi32>
    %80 = arith.cmpi sge, %40, %79 : vector<72x72xi32>
    %81 = arith.extui %80 : vector<72x72xi1> to vector<72x72xi32>
    %82 = arith.addi %74, %81 : vector<72x72xi32>
    %c54_i32 = arith.constant 54 : i32
    %83 = vector.broadcast %c54_i32 : i32 to vector<72x72xi32>
    %84 = arith.cmpi sge, %39, %83 : vector<72x72xi32>
    %85 = arith.extui %84 : vector<72x72xi1> to vector<72x72xi32>
    %86 = arith.addi %78, %85 : vector<72x72xi32>
    %c54_i32_19 = arith.constant 54 : i32
    %87 = vector.broadcast %c54_i32_19 : i32 to vector<72x72xi32>
    %88 = arith.cmpi sge, %40, %87 : vector<72x72xi32>
    %89 = arith.extui %88 : vector<72x72xi1> to vector<72x72xi32>
    %90 = arith.addi %82, %89 : vector<72x72xi32>
    %c63_i32 = arith.constant 63 : i32
    %91 = vector.broadcast %c63_i32 : i32 to vector<72x72xi32>
    %92 = arith.cmpi sge, %39, %91 : vector<72x72xi32>
    %93 = arith.extui %92 : vector<72x72xi1> to vector<72x72xi32>
    %94 = arith.addi %86, %93 : vector<72x72xi32>
    %c63_i32_20 = arith.constant 63 : i32
    %95 = vector.broadcast %c63_i32_20 : i32 to vector<72x72xi32>
    %96 = arith.cmpi sge, %40, %95 : vector<72x72xi32>
    %97 = arith.extui %96 : vector<72x72xi1> to vector<72x72xi32>
    %98 = arith.addi %90, %97 : vector<72x72xi32>
    %99 = arith.cmpi eq, %94, %98 : vector<72x72xi32>
    %cst_21 = arith.constant 0.000000e+00 : f32
    %cst_22 = arith.constant -1.000000e+30 : f32
    %100 = vector.broadcast %cst_21 : f32 to vector<72x72xf32>
    %101 = vector.broadcast %cst_22 : f32 to vector<72x72xf32>
    %102 = arith.select %99, %100, %101 : vector<72x72xi1>, vector<72x72xf32>
    %103 = arith.truncf %36 : vector<72x256xf32> to vector<72x256xbf16>
    %104 = arith.truncf %37 : vector<72x256xf32> to vector<72x256xbf16>
    %105 = arith.truncf %38 : vector<72x256xf32> to vector<72x256xbf16>
    %cst_23 = arith.constant dense<0.000000e+00> : vector<72x72xf32>
    %106 = tpu.matmul %103, %104, %cst_23 {dimension_numbers = #tpu.dot_dimension_numbers<[1], [1], [0], [0], [0, 0, 1, 0], [], []>} : vector<72x256xbf16>, vector<72x256xbf16>, vector<72x72xf32> -> vector<72x72xf32>
    %cst_24 = arith.constant 0.0800640732 : f32
    %107 = vector.broadcast %cst_24 : f32 to vector<72x72xf32>
    %108 = arith.mulf %106, %107 : vector<72x72xf32>
    %109 = arith.addf %108, %102 : vector<72x72xf32>
    %cst_25 = arith.constant dense<0xFF800000> : vector<72xf32>
    %110 = vector.multi_reduction <maximumf>, %109, %cst_25 [1] : vector<72x72xf32> to vector<72xf32>
    %111 = vector.shape_cast %110 : vector<72xf32> to vector<72x1xf32>
    %112 = vector.broadcast %111 : vector<72x1xf32> to vector<72x72xf32>
    %113 = arith.subf %109, %112 : vector<72x72xf32>
    %114 = math.exp %113 : vector<72x72xf32>
    %cst_26 = arith.constant dense<0.000000e+00> : vector<72xf32>
    %115 = vector.multi_reduction <add>, %114, %cst_26 [1] : vector<72x72xf32> to vector<72xf32>
    %116 = vector.shape_cast %115 : vector<72xf32> to vector<72x1xf32>
    %117 = tpu.reciprocal %116 {approx = true} : vector<72x1xf32> -> vector<72x1xf32>
    %118 = vector.broadcast %117 : vector<72x1xf32> to vector<72x72xf32>
    %119 = arith.mulf %114, %118 : vector<72x72xf32>
    %120 = arith.truncf %119 : vector<72x72xf32> to vector<72x72xbf16>
    %cst_27 = arith.constant dense<0.000000e+00> : vector<72x256xf32>
    %121 = tpu.matmul %120, %105, %cst_27 {dimension_numbers = #tpu.dot_dimension_numbers<[1], [0], [0], [1], [0, 0, 1, 1], [], []>} : vector<72x72xbf16>, vector<72x256xbf16>, vector<72x256xf32> -> vector<72x256xf32>
    %122 = arith.truncf %121 : vector<72x256xf32> to vector<72x256xbf16>
    %c0_28 = arith.constant 0 : index
    %c0_29 = arith.constant 0 : index
    %123 = vector.load %arg4[%c0_28, %c0_29] : memref<256x156xbf16, #tpu.memory_space<vmem>>, vector<256x156xbf16>
    %cst_30 = arith.constant dense<0.000000e+00> : vector<72x156xf32>
    %124 = tpu.matmul %122, %123, %cst_30 {dimension_numbers = #tpu.dot_dimension_numbers<[1], [0], [0], [1], [0, 0, 1, 1], [], []>} : vector<72x256xbf16>, vector<256x156xbf16>, vector<72x156xf32> -> vector<72x156xf32>
    %125 = vector.broadcast %6 : vector<1x156xf32> to vector<72x156xf32>
    %126 = arith.addf %124, %125 : vector<72x156xf32>
    %127 = arith.addf %0, %126 : vector<72x156xf32>
    %cst_31 = arith.constant dense<0.000000e+00> : vector<72xf32>
    %128 = vector.multi_reduction <add>, %127, %cst_31 [1] : vector<72x156xf32> to vector<72xf32>
    %129 = vector.shape_cast %128 : vector<72xf32> to vector<72x1xf32>
    %cst_32 = arith.constant 1.560000e+02 : f32
    %130 = vector.broadcast %cst_32 : f32 to vector<72x1xf32>
    %131 = arith.divf %129, %130 : vector<72x1xf32>
    %132 = vector.broadcast %131 : vector<72x1xf32> to vector<72x156xf32>
    %133 = arith.subf %127, %132 : vector<72x156xf32>
    %134 = arith.mulf %133, %133 : vector<72x156xf32>
    %cst_33 = arith.constant dense<0.000000e+00> : vector<72xf32>
    %135 = vector.multi_reduction <add>, %134, %cst_33 [1] : vector<72x156xf32> to vector<72xf32>
    %136 = vector.shape_cast %135 : vector<72xf32> to vector<72x1xf32>
    %cst_34 = arith.constant 1.550000e+02 : f32
    %137 = vector.broadcast %cst_34 : f32 to vector<72x1xf32>
    %138 = arith.divf %136, %137 : vector<72x1xf32>
    %139 = math.sqrt %138 : vector<72x1xf32>
    %cst_35 = arith.constant 9.99999997E-7 : f32
    %140 = vector.broadcast %cst_35 : f32 to vector<72x1xf32>
    %141 = arith.addf %139, %140 : vector<72x1xf32>
    %cst_36 = arith.constant 1.000000e+00 : f32
    %142 = vector.broadcast %cst_36 : f32 to vector<72x1xf32>
    %143 = arith.divf %142, %141 : vector<72x1xf32>
    %144 = vector.broadcast %4 : vector<1x156xf32> to vector<72x156xf32>
    %145 = arith.mulf %144, %133 : vector<72x156xf32>
    %146 = vector.broadcast %143 : vector<72x1xf32> to vector<72x156xf32>
    %147 = arith.mulf %145, %146 : vector<72x156xf32>
    %148 = vector.broadcast %5 : vector<1x156xf32> to vector<72x156xf32>
    %149 = arith.addf %147, %148 : vector<72x156xf32>
    %150 = arith.truncf %149 : vector<72x156xf32> to vector<72x156xbf16>
    %c0_37 = arith.constant 0 : index
    %c0_38 = arith.constant 0 : index
    %151 = vector.load %arg5[%c0_37, %c0_38] : memref<156x624xbf16, #tpu.memory_space<vmem>>, vector<156x624xbf16>
    %cst_39 = arith.constant dense<0.000000e+00> : vector<72x624xf32>
    %152 = tpu.matmul %150, %151, %cst_39 {dimension_numbers = #tpu.dot_dimension_numbers<[1], [0], [0], [1], [0, 0, 1, 1], [], []>} : vector<72x156xbf16>, vector<156x624xbf16>, vector<72x624xf32> -> vector<72x624xf32>
    %c0_40 = arith.constant 0 : index
    %c0_41 = arith.constant 0 : index
    %153 = vector.load %arg6[%c0_40, %c0_41] : memref<1x624xf32, #tpu.memory_space<vmem>>, vector<1x624xf32>
    %154 = vector.broadcast %153 : vector<1x624xf32> to vector<72x624xf32>
    %155 = arith.addf %152, %154 : vector<72x624xf32>
    %cst_42 = arith.constant 5.000000e-01 : f32
    %156 = vector.broadcast %cst_42 : f32 to vector<72x624xf32>
    %157 = arith.mulf %156, %155 : vector<72x624xf32>
    %cst_43 = arith.constant 4.471500e-02 : f32
    %158 = vector.broadcast %cst_43 : f32 to vector<72x624xf32>
    %159 = arith.mulf %158, %155 : vector<72x624xf32>
    %160 = arith.mulf %159, %155 : vector<72x624xf32>
    %161 = arith.mulf %160, %155 : vector<72x624xf32>
    %162 = arith.addf %155, %161 : vector<72x624xf32>
    %cst_44 = arith.constant 0.797884583 : f32
    %163 = vector.broadcast %cst_44 : f32 to vector<72x624xf32>
    %164 = arith.mulf %163, %162 : vector<72x624xf32>
    %165 = math.tanh %164 : vector<72x624xf32>
    %cst_45 = arith.constant 1.000000e+00 : f32
    %166 = vector.broadcast %cst_45 : f32 to vector<72x624xf32>
    %167 = arith.addf %166, %165 : vector<72x624xf32>
    %168 = arith.mulf %157, %167 : vector<72x624xf32>
    %169 = arith.truncf %168 : vector<72x624xf32> to vector<72x624xbf16>
    %c0_46 = arith.constant 0 : index
    %c0_47 = arith.constant 0 : index
    %170 = vector.load %arg7[%c0_46, %c0_47] : memref<624x156xbf16, #tpu.memory_space<vmem>>, vector<624x156xbf16>
    %cst_48 = arith.constant dense<0.000000e+00> : vector<72x156xf32>
    %171 = tpu.matmul %169, %170, %cst_48 {dimension_numbers = #tpu.dot_dimension_numbers<[1], [0], [0], [1], [0, 0, 1, 1], [], []>} : vector<72x624xbf16>, vector<624x156xbf16>, vector<72x156xf32> -> vector<72x156xf32>
    %172 = vector.broadcast %7 : vector<1x156xf32> to vector<72x156xf32>
    %173 = arith.addf %171, %172 : vector<72x156xf32>
    %174 = arith.addf %127, %173 : vector<72x156xf32>
    %c0_49 = arith.constant 0 : index
    %c0_50 = arith.constant 0 : index
    %175 = vector.load %arg11[%c0_49, %c0_50] : memref<72x156xf32, #tpu.memory_space<vmem>>, vector<72x156xf32>
    tpu.vector_store %arg11[%c0_49, %c0_50], %174 {strides = array<i32>} : memref<72x156xf32, #tpu.memory_space<vmem>>, vector<72x156xf32>,
    %176 = tpu.iota {dimensions = array<i32: 1>} : vector<8x72xi32>
    %177 = tpu.iota {dimensions = array<i32: 0>} : vector<8x72xi32>
    %c9_i32_51 = arith.constant 9 : i32
    %178 = vector.broadcast %c9_i32_51 : i32 to vector<8x72xi32>
    %179 = arith.muli %177, %178 : vector<8x72xi32>
    %180 = arith.cmpi eq, %176, %179 : vector<8x72xi32>
    %cst_52 = arith.constant 1.000000e+00 : f32
    %cst_53 = arith.constant 0.000000e+00 : f32
    %181 = vector.broadcast %cst_52 : f32 to vector<8x72xf32>
    %182 = vector.broadcast %cst_53 : f32 to vector<8x72xf32>
    %183 = arith.select %180, %181, %182 : vector<8x72xi1>, vector<8x72xf32>
    %184 = arith.truncf %183 : vector<8x72xf32> to vector<8x72xbf16>
    %185 = arith.truncf %174 : vector<72x156xf32> to vector<72x156xbf16>
    %cst_54 = arith.constant dense<0.000000e+00> : vector<8x156xf32>
    %186 = tpu.matmul %184, %185, %cst_54 {dimension_numbers = #tpu.dot_dimension_numbers<[1], [0], [0], [1], [0, 0, 1, 1], [], []>} : vector<8x72xbf16>, vector<72x156xbf16>, vector<8x156xf32> -> vector<8x156xf32>
    %187 = arith.truncf %186 : vector<8x156xf32> to vector<8x156xbf16>
    %c0_55 = arith.constant 0 : index
    %c0_56 = arith.constant 0 : index
    %188 = vector.load %arg8[%c0_55, %c0_56] : memref<156x128xbf16, #tpu.memory_space<vmem>>, vector<156x128xbf16>
    %cst_57 = arith.constant dense<0.000000e+00> : vector<8x128xf32>
    %189 = tpu.matmul %187, %188, %cst_57 {dimension_numbers = #tpu.dot_dimension_numbers<[1], [0], [0], [1], [0, 0, 1, 1], [], []>} : vector<8x156xbf16>, vector<156x128xbf16>, vector<8x128xf32> -> vector<8x128xf32>
    %c0_58 = arith.constant 0 : index
    %c0_59 = arith.constant 0 : index
    %190 = vector.load %arg9[%c0_58, %c0_59] : memref<1x128xf32, #tpu.memory_space<vmem>>, vector<1x128xf32>
    %191 = vector.broadcast %190 : vector<1x128xf32> to vector<8x128xf32>
    %192 = arith.addf %189, %191 : vector<8x128xf32>
    %c0_60 = arith.constant 0 : index
    %c0_61 = arith.constant 0 : index
    %193 = vector.load %arg12[%c0_60, %c0_61] : memref<8x128xf32, #tpu.memory_space<vmem>>, vector<8x128xf32>
    tpu.vector_store %arg12[%c0_60, %c0_61], %192 {strides = array<i32>} : memref<8x128xf32, #tpu.memory_space<vmem>>, vector<8x128xf32>,
    return
  }
  func.func @transform_0(%arg0: i32) -> (i32, i32) {
    %c0_i32 = arith.constant 0 : i32
    %c0_i32_0 = arith.constant 0 : i32
    return %arg0, %c0_i32 : i32, i32
  }
  func.func @transform_1(%arg0: i32) -> (i32, i32) {
    %c0_i32 = arith.constant 0 : i32
    %c0_i32_0 = arith.constant 0 : i32
    %c0_i32_1 = arith.constant 0 : i32
    return %c0_i32, %c0_i32_0 : i32, i32
  }
  func.func @transform_2(%arg0: i32) -> (i32, i32) {
    %c0_i32 = arith.constant 0 : i32
    %c0_i32_0 = arith.constant 0 : i32
    %c0_i32_1 = arith.constant 0 : i32
    return %c0_i32, %c0_i32_0 : i32, i32
  }
  func.func @transform_3(%arg0: i32) -> (i32, i32) {
    %c0_i32 = arith.constant 0 : i32
    %c0_i32_0 = arith.constant 0 : i32
    %c0_i32_1 = arith.constant 0 : i32
    return %c0_i32, %c0_i32_0 : i32, i32
  }
  func.func @transform_4(%arg0: i32) -> (i32, i32) {
    %c0_i32 = arith.constant 0 : i32
    %c0_i32_0 = arith.constant 0 : i32
    %c0_i32_1 = arith.constant 0 : i32
    return %c0_i32, %c0_i32_0 : i32, i32
  }
  func.func @transform_5(%arg0: i32) -> (i32, i32) {
    %c0_i32 = arith.constant 0 : i32
    %c0_i32_0 = arith.constant 0 : i32
    %c0_i32_1 = arith.constant 0 : i32
    return %c0_i32, %c0_i32_0 : i32, i32
  }
  func.func @transform_6(%arg0: i32) -> (i32, i32) {
    %c0_i32 = arith.constant 0 : i32
    %c0_i32_0 = arith.constant 0 : i32
    %c0_i32_1 = arith.constant 0 : i32
    return %c0_i32, %c0_i32_0 : i32, i32
  }
  func.func @transform_7(%arg0: i32) -> (i32, i32) {
    %c0_i32 = arith.constant 0 : i32
    %c0_i32_0 = arith.constant 0 : i32
    %c0_i32_1 = arith.constant 0 : i32
    return %c0_i32, %c0_i32_0 : i32, i32
  }
  func.func @transform_8(%arg0: i32) -> (i32, i32) {
    %c0_i32 = arith.constant 0 : i32
    %c0_i32_0 = arith.constant 0 : i32
    %c0_i32_1 = arith.constant 0 : i32
    return %c0_i32, %c0_i32_0 : i32, i32
  }
  func.func @transform_9(%arg0: i32) -> (i32, i32) {
    %c0_i32 = arith.constant 0 : i32
    %c0_i32_0 = arith.constant 0 : i32
    %c0_i32_1 = arith.constant 0 : i32
    return %c0_i32, %c0_i32_0 : i32, i32
  }
  func.func @transform_10(%arg0: i32) -> (i32, i32) {
    %c0_i32 = arith.constant 0 : i32
    %c0_i32_0 = arith.constant 0 : i32
    return %arg0, %c0_i32 : i32, i32
  }
  func.func @transform_11(%arg0: i32) -> (i32, i32) {
    %c0_i32 = arith.constant 0 : i32
    %c0_i32_0 = arith.constant 0 : i32
    return %arg0, %c0_i32 : i32, i32
  }
}

</mosaic_0001>

<bundles_post_ra>
// kernel: pose_bert_forward.1
= control target key start
LH: loop header
LB: loop body
LE: loop exit
PB: predicated region body
PF: predicated region fallthrough
CT: control target
= control target key end

     0   :  { %vm58_vm0 = vcmask 228352   ;;  %vm758_vm1 = vcmask 1045504   ;;  %s7684_s0 = inlined_call_operand.vmem [shape: f32[72,156], index: 0, kind: input, shape index: {}]   ;;  %s7685_s1 = inlined_call_operand.vmem [shape: bf16[156,768], index: 1, kind: input, shape index: {}]   ;;  %s7686_s9 = inlined_call_operand.vmem [shape: f32[6,156], index: 9, kind: input, shape index: {}]   ;;  %s7687_s2 = inlined_call_operand.vmem [shape: f32[1,768], index: 2, kind: input, shape index: {}]   ;;  %s7688_s3 = inlined_call_operand.vmem [shape: bf16[256,156], index: 3, kind: input, shape index: {}]   ;;  %s7689_s4 = inlined_call_operand.vmem [shape: bf16[156,624], index: 4, kind: input, shape index: {}]   ;;  %s7690_s6 = inlined_call_operand.vmem [shape: bf16[624,156], index: 6, kind: input, shape index: {}]   ;;  %s7691_s5 = inlined_call_operand.vmem [shape: f32[1,624], index: 5, kind: input, shape index: {}]   ;;  %s7692_s7 = inlined_call_operand.vmem [shape: bf16[156,128], index: 7, kind: input, shape index: {}]   ;;  %s7693_s10 = inlined_call_operand.vmem [shape: f32[72,156], index: 10, kind: output, shape index: {0}]   ;;  %s7694_s8 = inlined_call_operand.vmem [shape: f32[1,128], index: 8, kind: input, shape index: {}]   ;;  %s7695_s11 = inlined_call_operand.vmem [shape: f32[8,128], index: 11, kind: output, shape index: {1}]  }
   0x1   :  { %v38_v0 = vld [vmem:[%s7684_s0] sm:$0xff]  ;;  %v39_v1 = vld [vmem:[%s7684_s0 + $0x8] sm:$0xff]  ;;  %v40_v5 = vld [vmem:[%s7684_s0 + $0x10] sm:$0xff] }
   0x2   :  { %v42_v2 = vld [vmem:[%s7684_s0 + $0x20] sm:$0xff]  ;;  %v59_v3 = vsel %vm58_vm0, %v39_v1, 0.0  ;;  %v43_v4 = vld [vmem:[%s7684_s0 + $0x28] sm:$0xff]  ;;  %v41_v6 = vld [vmem:[%s7684_s0 + $0x18] sm:$0xff] }
   0x3   :  { %v60_v7 = vadd.f32 %v59_v3, %v38_v0  ;;  %v67_v8 = vsel %vm58_vm0, %v43_v4, 0.0  ;;  %v63_v9 = vsel %vm58_vm0, %v41_v6, 0.0  ;;  %v44_v10 = vld [vmem:[%s7684_s0 + $0x30] sm:$0xff]  ;;  %v45_v11 = vld [vmem:[%s7684_s0 + $0x38] sm:$0xff]  ;;  %v5131_v14 = vld [vmem:[%s7684_s0 + $0x48] sm:$0xff] }
   0x4   :  { %v68_v12 = vadd.f32 %v67_v8, %v42_v2  ;;  %v71_v13 = vsel %vm58_vm0, %v45_v11, 0.0  ;;  %v5136_v15 = vld [vmem:[%s7684_s0 + $0x58] sm:$0xff]  ;;  %v64_v16 = vadd.f32 %v63_v9, %v40_v5  ;;  %v46_v18 = vld [vmem:[%s7684_s0 + $0x40] sm:$0xff]  ;;  %v75_v19 = vsel %vm58_vm0, %v5131_v14, 0.0  ;;  %v48_v20 = vld [vmem:[%s7684_s0 + $0x50] sm:$0xff] }
   0x5   :  { %61 = vadd.xlane.f32.xlu0 %v60_v7  ;;  %v72_v17 = vadd.f32 %v71_v13, %v44_v10  ;;  %v79_v21 = vsel %vm58_vm0, %v5136_v15, 0.0  ;;  %v5151_v22 = vld [vmem:[%s7684_s0 + $0x68] sm:$0xff]  ;;  %v5156_v23 = vld [vmem:[%s7684_s0 + $0x78] sm:$0xff]  ;;  %v76_v24 = vadd.f32 %v75_v19, %v46_v18  ;;  %v50_v26 = vld [vmem:[%s7684_s0 + $0x60] sm:$0xff] }
   0x6   :  { %69 = vadd.xlane.f32.xlu1 %v68_v12  ;;  %v80_v25 = vadd.f32 %v79_v21, %v48_v20  ;;  %v83_v27 = vsel %vm58_vm0, %v5151_v22, 0.0  ;;  %v52_v28 = vld [vmem:[%s7684_s0 + $0x70] sm:$0xff]  ;;  %v87_v29 = vsel %vm58_vm0, %v5156_v23, 0.0  ;;  %v5171_v30 = vld [vmem:[%s7684_s0 + $0x88] sm:$0xff]  ;;  %v5176_v33 = vld [vmem:[%s7684_s0 + $0x80] sm:$0xff] }
   0x7   :  { %v84_v31 = vadd.f32 %v83_v27, %v50_v26  ;;  %v88_v32 = vadd.f32 %v87_v29, %v52_v28  ;;  %v91_v34 = vsel %vm58_vm0, %v5171_v30, 0.0 }
   0x8   :  { %v92_v35 = vadd.f32 %v91_v34, %v5176_v33 }
   0x9   :  { %65 = vadd.xlane.f32.xlu0 %v64_v16 }
   0xa   :  { %73 = vadd.xlane.f32.xlu1 %v72_v17 }
   0xd   :  { %77 = vadd.xlane.f32.xlu0 %v76_v24 }
   0xe   :  { %81 = vadd.xlane.f32.xlu1 %v80_v25 }
  0x11   :  { %85 = vadd.xlane.f32.xlu0 %v84_v31 }
  0x12   :  { %89 = vadd.xlane.f32.xlu1 %v88_v32 }
  0x15   :  { %93 = vadd.xlane.f32.xlu0 %v92_v35 }
  0x8e   :  { %v62_v36 = vpop.xlane.xlu0 %61 }
  0x8f   :  { %v96_v37 = vmul.f32 0.0064102565, %v62_v36  ;;  %v70_v38 = vpop.xlane.xlu1 %69 }
  0x90   :  { %v98_v39 = vmul.f32 0.0064102565, %v70_v38 }
  0x91   :  { %v5181_v40 = vsub.f32 %v38_v0, %v96_v37  ;;  %v5183_v41 = vsub.f32 %v39_v1, %v96_v37 }
  0x92   :  { %v5185_v42 = vsub.f32 %v42_v2, %v98_v39  ;;  %v5187_v43 = vsub.f32 %v43_v4, %v98_v39  ;;  %v66_v44 = vpop.xlane.xlu0 %65 }
  0x93   :  { %v97_v45 = vmul.f32 0.0064102565, %v66_v44  ;;  %v74_v46 = vpop.xlane.xlu1 %73  ;;  %v123_v47 = vmul.f32 %v5181_v40, %v5181_v40  ;;  %v124_v49 = vmul.f32 %v5183_v41, %v5183_v41 }
  0x94   :  { %v99_v48 = vmul.f32 0.0064102565, %v74_v46  ;;  %v127_v51 = vmul.f32 %v5185_v42, %v5185_v42  ;;  %v128_v52 = vmul.f32 %v5187_v43, %v5187_v43 }
  0x95   :  { %v5193_v50 = vsub.f32 %v40_v5, %v97_v45  ;;  %v5199_v53 = vsub.f32 %v41_v6, %v97_v45  ;;  %v141_v55 = vsel %vm58_vm0, %v124_v49, 0.0  ;;  %v4484_v49 = vld [vmem:[%s7685_s1 + $0x15c] ss:$24 sps:$4 sm:$0xff]  }
  0x96   :  { %v78_v54 = vpop.xlane.xlu0 %77  ;;  %v5202_v56 = vsub.f32 %v44_v10, %v99_v48  ;;  %v5204_v57 = vsub.f32 %v45_v11, %v99_v48  ;;  %v142_v59 = vadd.f32 %v141_v55, %v123_v47  ;;  %v149_v62 = vsel %vm58_vm0, %v128_v52, 0.0  ;;  %v4482_v48 = vld [vmem:[%s7685_s1 + $0x154] ss:$24 sps:$4 sm:$0xff]   ;;  %v4487_v52 = vld [vmem:[%s7685_s1 + $0x158] ss:$24 sps:$4 sm:$0xff]   ;;  %858 = vmatprep.subr.bf16.mxu1 %v4484_v49 }
  0x97   :  { %v100_v58 = vmul.f32 0.0064102565, %v78_v54  ;;  %v82_v60 = vpop.xlane.xlu1 %81  ;;  %v150_v63 = vadd.f32 %v149_v62, %v127_v51  ;;  %v125_v0 = vmul.f32 %v5193_v50, %v5193_v50  ;;  %v126_v3 = vmul.f32 %v5199_v53, %v5199_v53  ;;  %777 = vmatprep.subr.bf16.mxu0 %v4482_v48  ;;  %v4486_v51 = vld [vmem:[%s7685_s1 + $0x150] ss:$24 sps:$4 sm:$0xff]   ;;  %859 = vmatpush1.bf16.msra.mxu1 %v4487_v52  ;;  %v4488_v54 = vld [vmem:[%s7685_s1 + $0x124] ss:$24 sps:$4 sm:$0xff]  }
  0x98   :  { %v101_v61 = vmul.f32 0.0064102565, %v82_v60  ;;  %143 = vadd.xlane.f32.xlu1 %v142_v59  ;;  %v129_v7 = vmul.f32 %v5202_v56, %v5202_v56  ;;  %v130_v8 = vmul.f32 %v5204_v57, %v5204_v57  ;;  %778 = vmatpush1.bf16.msra.mxu0 %v4486_v51  ;;  %v4490_v55 = vld [vmem:[%s7685_s1 + $0x12c] ss:$24 sps:$4 sm:$0xff]   ;;  %v4493_v59 = vld [vmem:[%s7685_s1 + $0x128] ss:$24 sps:$4 sm:$0xff]  }
  0x99   :  { %v5209_v1 = vsub.f32 %v46_v18, %v100_v58  ;;  %v5214_v4 = vsub.f32 %v5131_v14, %v100_v58  ;;  %v145_v11 = vsel %vm58_vm0, %v126_v3, 0.0  ;;  %v4492_v58 = vld [vmem:[%s7685_s1 + $0x120] ss:$24 sps:$4 sm:$0xff]   ;;  %779 = vmatprep.subr.bf16.mxu0 %v4488_v54  ;;  %860 = vmatprep.subr.bf16.mxu1 %v4490_v55  ;;  %v4494_v60 = vld [vmem:[%s7685_s1 + $0xf4] ss:$24 sps:$4 sm:$0xff]  }
  0x9a   :  { %v86_v2 = vpop.xlane.xlu0 %85  ;;  %v5220_v9 = vsub.f32 %v48_v20, %v101_v61  ;;  %v5223_v10 = vsub.f32 %v5136_v15, %v101_v61  ;;  %v146_v14 = vadd.f32 %v145_v11, %v125_v0  ;;  %v153_v16 = vsel %vm58_vm0, %v130_v8, 0.0  ;;  %v4496_v61 = vld [vmem:[%s7685_s1 + $0xfc] ss:$24 sps:$4 sm:$0xff]   ;;  %v4498_v62 = vld [vmem:[%s7685_s1 + $0xf0] ss:$24 sps:$4 sm:$0xff]  }
  0x9b   :  { %v102_v5 = vmul.f32 0.0064102565, %v86_v2  ;;  %v90_v6 = vpop.xlane.xlu1 %89  ;;  %v131_v20 = vmul.f32 %v5209_v1, %v5209_v1  ;;  %v154_v24 = vadd.f32 %v153_v16, %v129_v7  ;;  %v132_v25 = vmul.f32 %v5214_v4, %v5214_v4  ;;  %861 = vmatpush1.bf16.msra.mxu1 %v4493_v59  ;;  %v4500_v0 = vld [vmem:[%s7685_s1 + $0xc4] ss:$24 sps:$4 sm:$0xff]   ;;  %v4504_v3 = vld [vmem:[%s7685_s1 + $0xc0] ss:$24 sps:$4 sm:$0xff]  }
  0x9c   :  { %v103_v12 = vmul.f32 0.0064102565, %v90_v6  ;;  %151 = vadd.xlane.f32.xlu1 %v150_v63  ;;  %147 = vadd.xlane.f32.xlu0 %v146_v14  ;;  %v4499_v63 = vld [vmem:[%s7685_s1 + $0xf8] ss:$24 sps:$4 sm:$0xff]   ;;  %v4502_v2 = vld [vmem:[%s7685_s1 + $0xcc] ss:$24 sps:$4 sm:$0xff]  }
  0x9d   :  { %v5226_v13 = vsub.f32 %v50_v26, %v102_v5  ;;  %v5230_v17 = vsub.f32 %v5151_v22, %v102_v5  ;;  %v133_v26 = vmul.f32 %v5220_v9, %v5220_v9  ;;  %v134_v22 = vmul.f32 %v5223_v10, %v5223_v10  ;;  %780 = vmatpush1.bf16.msra.mxu0 %v4492_v58  ;;  %v4505_v5 = vld [vmem:[%s7685_s1 + $0xc8] ss:$24 sps:$4 sm:$0xff]   ;;  %v4506_v6 = vld [vmem:[%s7685_s1 + $0x94] ss:$24 sps:$4 sm:$0xff]   ;;  %v4511_v11 = vld [vmem:[%s7685_s1 + $0x98] ss:$24 sps:$4 sm:$0xff]  }
  0x9e   :  { %v5232_v18 = vsub.f32 %v52_v28, %v103_v12  ;;  %v94_v19 = vpop.xlane.xlu0 %93  ;;  %v5237_v15 = vsub.f32 %v5156_v23, %v103_v12  ;;  %v157_v23 = vsel %vm58_vm0, %v132_v25, 0.0  ;;  %781 = vmatprep.subr.bf16.mxu0 %v4494_v60  ;;  %862 = vmatprep.subr.bf16.mxu1 %v4496_v61  ;;  %v4508_v7 = vld [vmem:[%s7685_s1 + $0x9c] ss:$24 sps:$4 sm:$0xff]   ;;  %v4510_v8 = vld [vmem:[%s7685_s1 + $0x90] ss:$24 sps:$4 sm:$0xff]  }
  0x9f   :  { %v104_v21 = vmul.f32 0.0064102565, %v94_v19  ;;  %v135_v29 = vmul.f32 %v5226_v13, %v5226_v13  ;;  %v158_v31 = vadd.f32 %v157_v23, %v131_v20  ;;  %v161_v32 = vsel %vm58_vm0, %v134_v22, 0.0  ;;  %863 = vmatpush1.bf16.msra.mxu1 %v4499_v63  ;;  %v4512_v12 = vld [vmem:[%s7685_s1 + $0x64] ss:$24 sps:$4 sm:$0xff]  }
  0xa0   :  { %v136_v34 = vmul.f32 %v5230_v17, %v5230_v17  ;;  %155 = vadd.xlane.f32.xlu0 %v154_v24  ;;  %v162_v35 = vadd.f32 %v161_v32, %v133_v26  ;;  %864 = vmatprep.subr.bf16.mxu1 %v4502_v2  ;;  %v4514_v14 = vld [vmem:[%s7685_s1 + $0x6c] ss:$24 sps:$4 sm:$0xff]   ;;  %v4516_v16 = vld [vmem:[%s7685_s1 + $0x60] ss:$24 sps:$4 sm:$0xff]   ;;  %v4522_v24 = vld [vmem:[%s7685_s1 + $0x30] ss:$24 sps:$4 sm:$0xff]   ;;  %v7696_v2 = vlaneseq }
  0xa1   :  { %v5246_v27 = vsub.f32 %v5176_v33, %v104_v21  ;;  %v5249_v28 = vsub.f32 %v5171_v30, %v104_v21  ;;  %v137_v33 = vmul.f32 %v5232_v18, %v5232_v18  ;;  %v138_v30 = vmul.f32 %v5237_v15, %v5237_v15  ;;  %159 = vadd.xlane.f32.xlu1 %v158_v31  ;;  %v4517_v19 = vld [vmem:[%s7685_s1 + $0x68] ss:$24 sps:$4 sm:$0xff]   ;;  %v4518_v20 = vld [vmem:[%s7685_s1 + $0x34] ss:$24 sps:$4 sm:$0xff]   ;;  %v4523_v25 = vld [vmem:[%s7685_s1 + $0x38] ss:$24 sps:$4 sm:$0xff]  }
  0xa2   :  { %v165_v36 = vsel %vm58_vm0, %v136_v34, 0.0  ;;  %782 = vmatpush1.bf16.msra.mxu0 %v4498_v62  ;;  %v4520_v21 = vld [vmem:[%s7685_s1 + $0x3c] ss:$24 sps:$4 sm:$0xff]   ;;  %v4526_v22 = vld [vmem:[%s7685_s1 + $0xc] ss:$24 sps:$4 sm:$0xff]  }
  0xa3   :  { %v139_v37 = vmul.f32 %v5246_v27, %v5246_v27  ;;  %v140_v38 = vmul.f32 %v5249_v28, %v5249_v28  ;;  %v166_v39 = vadd.f32 %v165_v36, %v135_v29  ;;  %v169_v44 = vsel %vm58_vm0, %v138_v30, 0.0  ;;  %783 = vmatprep.subr.bf16.mxu0 %v4500_v0  ;;  %865 = vmatpush1.bf16.msra.mxu1 %v4505_v5  ;;  %v4524_v26 = vld [vmem:[%s7685_s1 + $0x4] ss:$24 sps:$4 sm:$0xff]   ;;  %v4528_v23 = vld [vmem:[%s7685_s1] ss:$24 sps:$4 sm:$0xff]  }
  0xa4   :  { %163 = vadd.xlane.f32.xlu0 %v162_v35  ;;  %v170_v46 = vadd.f32 %v169_v44, %v137_v33  ;;  %866 = vmatprep.subr.bf16.mxu1 %v4508_v7  ;;  %v4529_v29 = vld [vmem:[%s7685_s1 + $0x8] ss:$24 sps:$4 sm:$0xff]   ;;  %v4530_v31 = vld [vmem:[%s7685_s1 + $0x1b4] ss:$24 sps:$4 sm:$0x3f]  }
  0xa5   :  { %v173_v45 = vsel %vm58_vm0, %v140_v38, 0.0  ;;  %167 = vadd.xlane.f32.xlu1 %v166_v39  ;;  %v4532_v32 = vld [vmem:[%s7685_s1 + $0x1bc] ss:$24 sps:$4 sm:$0x3f]   ;;  %v4538_v30 = vld [vmem:[%s7685_s1 + $0x18c] ss:$24 sps:$4 sm:$0xff]  }
  0xa6   :  { %v174_v47 = vadd.f32 %v173_v45, %v139_v37  ;;  %784 = vmatpush1.bf16.msra.mxu0 %v4504_v3  ;;  %v4534_v34 = vld [vmem:[%s7685_s1 + $0x1b0] ss:$24 sps:$4 sm:$0x3f]   ;;  %v4536_v35 = vld [vmem:[%s7685_s1 + $0x184] ss:$24 sps:$4 sm:$0xff]  }
  0xa7   :  { %785 = vmatprep.subr.bf16.mxu0 %v4506_v6  ;;  %867 = vmatpush1.bf16.msra.mxu1 %v4511_v11  ;;  %v4535_v33 = vld [vmem:[%s7685_s1 + $0x1b8] ss:$24 sps:$4 sm:$0x3f]   ;;  %v760_v36 = vsel %vm758_vm1, %v4534_v34, 0  ;;  %v4541_v39 = vld [vmem:[%s7685_s1 + $0x188] ss:$24 sps:$4 sm:$0xff]  }
  0xa8   :  { %171 = vadd.xlane.f32.xlu0 %v170_v46  ;;  %868 = vmatprep.subr.bf16.mxu1 %v4514_v14  ;;  %v766_v37 = vsel %vm758_vm1, %v4535_v33, 0  ;;  %v4540_v38 = vld [vmem:[%s7685_s1 + $0x180] ss:$24 sps:$4 sm:$0xff]   ;;  %v4544_v44 = vld [vmem:[%s7685_s1 + $0x164] ss:$24 sps:$4 sm:$0xff]  }
  0xa9   :  { %175 = vadd.xlane.f32.xlu1 %v174_v47 }
  0xaa   :  { %786 = vmatpush1.bf16.msra.mxu0 %v4510_v8 }
  0xab   :  { %787 = vmatprep.subr.bf16.mxu0 %v4512_v12  ;;  %869 = vmatpush1.bf16.msra.mxu1 %v4517_v19 }
  0xac   :  { %870 = vmatprep.subr.bf16.mxu1 %v4520_v21 }
  0xae   :  { %788 = vmatpush1.bf16.msra.mxu0 %v4516_v16 }
  0xaf   :  { %789 = vmatprep.subr.bf16.mxu0 %v4518_v20  ;;  %871 = vmatpush1.bf16.msra.mxu1 %v4523_v25  ;;  %v5413_v20 = vshrl.u32 %v7696_v2, 7 }
  0xb0   :  { %872 = vmatprep.subr.bf16.mxu1 %v4526_v22 }
  0xb1   :  { %7734 = vst [vmem:[#allocation2_spill] sm:$0xff] %v5413_v20 }
  0xb2   :  { %790 = vmatpush1.bf16.msra.mxu0 %v4522_v24 }
  0xb3   :  { %791 = vmatprep.subr.bf16.mxu0 %v4524_v26  ;;  %873 = vmatpush1.bf16.msra.mxu1 %v4529_v29 }
  0xb4   :  { %4263 = vmatprep.subr.msk.bf16.mxu1 %vm758_vm1, %v4532_v32  ;;  %v5417_v32 = vsub.s32 0, %v5413_v20 }
  0xb6   :  { %792 = vmatpush1.bf16.msra.mxu0 %v4528_v23 }
  0xb7   :  { %4257 = vmatprep.subr.msk.bf16.mxu0 %vm758_vm1, %v4530_v31  ;;  %887 = vmatpush2.bf16.msra.mxu1 %v766_v37 }
  0xb8   :  { %888 = vmatprep.subr.bf16.mxu1 %v4538_v30 }
  0xba   :  { %806 = vmatpush2.bf16.msra.mxu0 %v760_v36 }
  0xbb   :  { %807 = vmatprep.subr.bf16.mxu0 %v4536_v35  ;;  %889 = vmatpush2.bf16.msra.mxu1 %v4541_v39 }
  0xbe   :  { %808 = vmatpush2.bf16.msra.mxu0 %v4540_v38 }
  0xbf   :  { %939 = vmatprep.subr.bf16.mxu0 %v4544_v44 }
 0x121   :  { %v144_v45 = vpop.xlane.xlu1 %143 }
 0x122   :  { %v178_v46 = vmul.f32 0.006451613, %v144_v45 }
 0x124   :  { %4817 = vrsqrt.f32 %v178_v46  ;;  %vm189_vm2 = vcmp.eq.f32.partialorder %v178_v46, inf  ;;  %v192_v3 = vand.u32 2147483648, %v178_v46  ;;  %vm191_vm3 = vcmp.eq.f32.partialorder %v178_v46, 0.0 }
 0x125   :  { %v152_v47 = vpop.xlane.xlu1 %151  ;;  %v148_v49 = vpop.xlane.xlu0 %147 }
 0x126   :  { %v180_v48 = vmul.f32 0.006451613, %v152_v47  ;;  %v179_v51 = vmul.f32 0.006451613, %v148_v49 }
 0x128   :  { %4819 = vrsqrt.f32 %v180_v48  ;;  %vm203_vm4 = vcmp.eq.f32.partialorder %v180_v48, inf  ;;  %v206_v21 = vand.u32 2147483648, %v180_v48  ;;  %vm205_vm5 = vcmp.eq.f32.partialorder %v180_v48, 0.0 }
 0x129   :  { %4821 = vrsqrt.f32 %v179_v51  ;;  %v156_v52 = vpop.xlane.xlu0 %155  ;;  %vm196_vm6 = vcmp.eq.f32.partialorder %v179_v51, inf  ;;  %v199_v29 = vand.u32 2147483648, %v179_v51  ;;  %vm198_vm7 = vcmp.eq.f32.partialorder %v179_v51, 0.0 }
 0x12a   :  { %v160_v54 = vpop.xlane.xlu1 %159  ;;  %v5395_v55 = vmul.f32 0.006451613, %v156_v52 }
 0x12b   :  { %v5397_v58 = vmul.f32 0.006451613, %v160_v54 }
 0x12c   :  { %4823 = vrsqrt.f32 %v5395_v55  ;;  %vm210_vm8 = vcmp.eq.f32.partialorder %v5395_v55, inf  ;;  %vm212_vm9 = vcmp.eq.f32.partialorder %v5395_v55, 0.0  ;;  %v213_v36 = vand.u32 2147483648, %v5395_v55 }
 0x12d   :  { %4825 = vrsqrt.f32 %v5397_v58  ;;  %v164_v59 = vpop.xlane.xlu0 %163  ;;  %vm217_vm10 = vcmp.eq.f32.partialorder %v5397_v58, inf  ;;  %vm219_vm11 = vcmp.eq.f32.partialorder %v5397_v58, 0.0  ;;  %v220_v39 = vand.u32 2147483648, %v5397_v58 }
 0x12e   :  { %v168_v60 = vpop.xlane.xlu1 %167  ;;  %v5401_v61 = vmul.f32 0.006451613, %v164_v59 }
 0x12f   :  { %v5403_v63 = vmul.f32 0.006451613, %v168_v60 }
 0x130   :  { %4827 = vrsqrt.f32 %v5401_v61  ;;  %vm224_vm12 = vcmp.eq.f32.partialorder %v5401_v61, inf  ;;  %vm226_vm15 = vcmp.eq.f32.partialorder %v5401_v61, 0.0 }
 0x131   :  { %v4818_v62 = vpop.eup %4817  ;;  %4829 = vrsqrt.f32 %v5403_v63  ;;  %v172_v5 = vpop.xlane.xlu0 %171  ;;  %vm231_vm13 = vcmp.eq.f32.partialorder %v5403_v63, inf  ;;  %vm233_vm14 = vcmp.eq.f32.partialorder %v5403_v63, 0.0 }
 0x132   :  { %v188_v0 = vmul.f32 %v4818_v62, %v178_v46  ;;  %v176_v7 = vpop.xlane.xlu1 %175  ;;  %v5407_v8 = vmul.f32 0.006451613, %v172_v5 }
 0x133   :  { %v5409_v14 = vmul.f32 0.006451613, %v176_v7 }
 0x134   :  { %v190_v6 = vsel %vm189_vm2, %v178_v46, %v188_v0  ;;  %4831 = vrsqrt.f32 %v5407_v8  ;;  %v56_v46 = vld [vmem:[%s7686_s9] sm:$0x3f]  ;;  %vm238_vm2 = vcmp.eq.f32.partialorder %v5407_v8, inf }
 0x135   :  { %v4820_v11 = vpop.eup %4819  ;;  %v193_v12 = vsel %vm191_vm3, %v192_v3, %v190_v6  ;;  %4833 = vrsqrt.f32 %v5409_v14  ;;  %v5443_v0 = vrot.slane %v56_v46, %v5417_v32  ;;  %vm245_vm3 = vcmp.eq.f32.partialorder %v5409_v14, inf }
 0x136   :  { %v250_v16 = vadd.f32 1e-06, %v193_v12  ;;  %v202_v19 = vmul.f32 %v4820_v11, %v180_v48  ;;  %v4822_v24 = vpop.eup %4821 }
 0x137   :  { %v195_v22 = vmul.f32 %v4822_v24, %v179_v51  ;;  %v5457_v24 = vsub.s32 1, %v5413_v20 }
 0x138   :  { %v204_v25 = vsel %vm203_vm4, %v180_v48, %v202_v19  ;;  %4835 = vrcp.f32 %v250_v16  ;;  %vm240_vm4 = vcmp.eq.f32.partialorder %v5407_v8, 0.0 }
 0x139   :  { %v207_v26 = vsel %vm205_vm5, %v206_v21, %v204_v25  ;;  %v4824_v31 = vpop.eup %4823  ;;  %v197_v34 = vsel %vm196_vm6, %v179_v51, %v195_v22  ;;  %v57_v51 = vld [vmem:[%s7686_s9 + $0x8] sm:$0x3f]  ;;  %vm247_vm5 = vcmp.eq.f32.partialorder %v5409_v14, 0.0  ;;  %vm1490_vm6 = vcmask 1043456  }
 0x13a   :  { %v252_v23 = vadd.f32 1e-06, %v207_v26  ;;  %v4826_v35 = vpop.eup %4825  ;;  %v200_v33 = vsel %vm198_vm7, %v199_v29, %v197_v34  ;;  %v209_v30 = vmul.f32 %v4824_v31, %v5395_v55  ;;  %v5450_v6 = vrot.slane %v57_v51, %v5417_v32 }
 0x13b   :  { %v251_v37 = vadd.f32 1e-06, %v200_v33  ;;  %v216_v38 = vmul.f32 %v4826_v35, %v5397_v58  ;;  %v241_v26 = vand.u32 2147483648, %v5407_v8  ;;  %v248_v31 = vand.u32 2147483648, %v5409_v14 }
 0x13c   :  { %4837 = vrcp.f32 %v252_v23  ;;  %v211_v44 = vsel %vm210_vm8, %v5395_v55, %v209_v30  ;;  %v234_v55 = vand.u32 2147483648, %v5403_v63  ;;  %v286_v29 = vmul.f32 %v5450_v6, %v5183_v41 }
 0x13d   :  { %v4828_v45 = vpop.eup %4827  ;;  %4839 = vrcp.f32 %v251_v37  ;;  %v218_v47 = vsel %vm217_vm10, %v5397_v58, %v216_v38  ;;  %v214_v48 = vsel %vm212_vm9, %v213_v36, %v211_v44  ;;  %v227_v58 = vand.u32 2147483648, %v5401_v61 }
 0x13e   :  { %v4830_v49 = vpop.eup %4829  ;;  %v221_v52 = vsel %vm219_vm11, %v220_v39, %v218_v47  ;;  %v253_v54 = vadd.f32 1e-06, %v214_v48  ;;  %v223_v59 = vmul.f32 %v4828_v45, %v5401_v61  ;;  %v285_v35 = vmul.f32 %v5443_v0, %v5181_v40 }
 0x13f   :  { %v254_v60 = vadd.f32 1e-06, %v221_v52  ;;  %v230_v62 = vmul.f32 %v4830_v49, %v5403_v63  ;;  %v287_v37 = vmul.f32 %v5443_v0, %v5193_v50  ;;  %v288_v41 = vmul.f32 %v5450_v6, %v5199_v53 }
 0x140   :  { %4841 = vrcp.f32 %v253_v54  ;;  %v225_v3 = vsel %vm224_vm12, %v5401_v61, %v223_v59  ;;  %v5480_v39 = vrot.slane %v56_v46, %v5457_v24  ;;  %v290_v44 = vmul.f32 %v5450_v6, %v5187_v43 }
 0x141   :  { %v4832_v5 = vpop.eup %4831  ;;  %4843 = vrcp.f32 %v254_v60  ;;  %v232_v7 = vsel %vm231_vm13, %v5403_v63, %v230_v62  ;;  %v228_v11 = vsel %vm226_vm15, %v227_v58, %v225_v3  ;;  %v291_v47 = vmul.f32 %v5443_v0, %v5202_v56 }
 0x142   :  { %v4834_v12 = vpop.eup %4833  ;;  %v235_v16 = vsel %vm233_vm14, %v234_v55, %v232_v7  ;;  %v255_v19 = vadd.f32 1e-06, %v228_v11  ;;  %v237_v21 = vmul.f32 %v4832_v5, %v5407_v8  ;;  %v292_v50 = vmul.f32 %v5450_v6, %v5204_v57  ;;  %v4542_v7 = vld [vmem:[%s7685_s1 + $0x160] ss:$24 sps:$4 sm:$0xff]  }
 0x143   :  { %v256_v25 = vadd.f32 1e-06, %v235_v16  ;;  %v244_v61 = vmul.f32 %v4834_v12, %v5409_v14  ;;  %v294_v46 = vmul.f32 %v5450_v6, %v5214_v4  ;;  %v293_v57 = vmul.f32 %v5443_v0, %v5209_v1 }
 0x144   :  { %4845 = vrcp.f32 %v255_v19  ;;  %v239_v63 = vsel %vm238_vm2, %v5407_v8, %v237_v21  ;;  %v5473_v8 = vrot.slane %v57_v51, %v5457_v24  ;;  %v295_v60 = vmul.f32 %v5443_v0, %v5220_v9 }
 0x145   :  { %v4836_v22 = vpop.eup %4835  ;;  %4847 = vrcp.f32 %v256_v25  ;;  %v242_v23 = vsel %vm240_vm4, %v241_v26, %v239_v63  ;;  %v246_v33 = vsel %vm245_vm3, %v5409_v14, %v244_v61  ;;  %v289_v14 = vmul.f32 %v5443_v0, %v5185_v42  ;;  %v4547_v25 = vld [vmem:[%s7685_s1 + $0x134] ss:$24 sps:$4 sm:$0xff]  }
 0x146   :  { %v257_v34 = vadd.f32 1e-06, %v242_v23  ;;  %v304_v30 = vmul.f32 %v4836_v22, %v286_v29  ;;  %v303_v38 = vmul.f32 %v4836_v22, %v285_v35  ;;  %v249_v45 = vsel %vm247_vm5, %v248_v31, %v246_v33  ;;  %v4545_v29 = vld [vmem:[%s7685_s1 + $0x130] ss:$24 sps:$4 sm:$0xff]  }
 0x147   :  { %v258_v54 = vadd.f32 1e-06, %v249_v45  ;;  %v296_v58 = vmul.f32 %v5450_v6, %v5223_v10  ;;  %v297_v10 = vmul.f32 %v5443_v0, %v5226_v13  ;;  %v298_v21 = vmul.f32 %v5450_v6, %v5230_v17 }
 0x148   :  { %4849 = vrcp.f32 %v257_v34  ;;  %v330_v49 = vadd.f32 %v5473_v8, %v304_v30  ;;  %v329_v55 = vadd.f32 %v5480_v39, %v303_v38  ;;  %v299_v22 = vmul.f32 %v5443_v0, %v5232_v18  ;;  %v4550_v18 = vld [vmem:[%s7685_s1 + $0x104] ss:$24 sps:$4 sm:$0xff]  }
 0x149   :  { %v4838_v36 = vpop.eup %4837  ;;  %4851 = vrcp.f32 %v258_v54  ;;  %v300_v23 = vmul.f32 %v5450_v6, %v5237_v15  ;;  %v302_v54 = vmul.f32 %v5450_v6, %v5249_v28  ;;  %v4557_v28 = vld [vmem:[%s7685_s1 + $0x70] ss:$24 sps:$4 sm:$0xff]   ;;  %v4562_v6 = vld [vmem:[%s7685_s1 + $0x44] ss:$24 sps:$4 sm:$0xff]   ;;  %vm1370_vm5 = vcmask 588800  }
 0x14a   :  { %v4840_v40 = vpop.eup %4839  ;;  %v308_v51 = vmul.f32 %v4838_v36, %v290_v44  ;;  %v307_v52 = vmul.f32 %v4838_v36, %v289_v14  ;;  %v4548_v44 = vld [vmem:[%s7685_s1 + $0x100] ss:$24 sps:$4 sm:$0xff]  }
 0x14b   :  { %v306_v48 = vmul.f32 %v4840_v40, %v288_v41  ;;  %v305_v53 = vmul.f32 %v4840_v40, %v287_v37 }
 0x14c   :  { %v334_v12 = vadd.f32 %v5473_v8, %v308_v51  ;;  %v333_v9 = vadd.f32 %v5480_v39, %v307_v52  ;;  %v4551_v51 = vld [vmem:[%s7685_s1 + $0xd0] ss:$24 sps:$4 sm:$0xff]   ;;  %v4556_v52 = vld [vmem:[%s7685_s1 + $0xa4] ss:$24 sps:$4 sm:$0xff]  }
 0x14d   :  { %v4842_v42 = vpop.eup %4841  ;;  %v332_v43 = vadd.f32 %v5473_v8, %v306_v48  ;;  %v331_v56 = vadd.f32 %v5480_v39, %v305_v53  ;;  %v4553_v53 = vld [vmem:[%s7685_s1 + $0xd4] ss:$24 sps:$4 sm:$0xff]  }
 0x14e   :  { %v4844_v59 = vpop.eup %4843  ;;  %v310_v4 = vmul.f32 %v4842_v42, %v292_v50  ;;  %v309_v62 = vmul.f32 %v4842_v42, %v291_v47 }
 0x14f   :  { %v5502_v3 = vpack.c.bf16 %v332_v43, %v330_v49  ;;  %v5504_v5 = vpack.c.bf16 %v331_v56, %v329_v55  ;;  %v312_v11 = vmul.f32 %v4844_v59, %v294_v46  ;;  %v311_v61 = vmul.f32 %v4844_v59, %v293_v57  ;;  %v4554_v43 = vld [vmem:[%s7685_s1 + $0xa0] ss:$24 sps:$4 sm:$0xff]   ;;  %v4559_v55 = vld [vmem:[%s7685_s1 + $0x74] ss:$24 sps:$4 sm:$0xff]  }
 0x150   :  { %v336_v1 = vadd.f32 %v5473_v8, %v310_v4  ;;  %v335_v16 = vadd.f32 %v5480_v39, %v309_v62  ;;  %v301_v57 = vmul.f32 %v5443_v0, %v5246_v27  ;;  %v4563_v27 = vld [vmem:[%s7685_s1 + $0x10] ss:$24 sps:$4 sm:$0xff]  }
 0x151   :  { %v4846_v19 = vpop.eup %4845  ;;  %4258 = vmatprep.mubr.msk.bf16.mxu0 %vm58_vm0, %v5502_v3  ;;  %4264 = vmatprep.mubr.msk.bf16.mxu1 %vm58_vm0, %v5502_v3  ;;  %v338_v31 = vadd.f32 %v5473_v8, %v312_v11  ;;  %v337_v36 = vadd.f32 %v5480_v39, %v311_v61 }
 0x152   :  { %v4848_v26 = vpop.eup %4847  ;;  %810 = vmatmul.mubr.bf16.vlgmr.msra.gmra.mxu0 %v5504_v5  ;;  %891 = vmatmul.mubr.bf16.vlgmr.msra.gmra.mxu1 %v5504_v5  ;;  %v5526_v13 = vpack.c.bf16 %v336_v1, %v334_v12  ;;  %v5528_v17 = vpack.c.bf16 %v335_v16, %v333_v9  ;;  %v314_v63 = vmul.f32 %v4846_v19, %v296_v58  ;;  %v4565_v58 = vld [vmem:[%s7685_s1 + $0x14] ss:$24 sps:$4 sm:$0xff]  }
 0x153   :  { %940 = vmatpush1.bf16.msra.mxu0 %v4542_v7  ;;  %v313_v34 = vmul.f32 %v4846_v19, %v295_v60  ;;  %v316_v35 = vmul.f32 %v4848_v26, %v298_v21  ;;  %v315_v33 = vmul.f32 %v4848_v26, %v297_v10  ;;  %v4560_v60 = vld [vmem:[%s7685_s1 + $0x40] ss:$24 sps:$4 sm:$0xff]   ;;  %v4571_v1 = vld [vmem:[%s7685_s1 + $0x194] ss:$24 sps:$4 sm:$0xff]  }
 0x154   :  { %4259 = vmatprep.mubr.msk.bf16.mxu0 %vm58_vm0, %v5526_v13  ;;  %4265 = vmatprep.mubr.msk.bf16.mxu1 %vm58_vm0, %v5526_v13  ;;  %v340_v15 = vadd.f32 %v5473_v8, %v314_v63  ;;  %v4568_v7 = vld [vmem:[%s7685_s1 + $0x1c0] ss:$24 sps:$4 sm:$0x3f]  }
 0x155   :  { %v4850_v30 = vpop.eup %4849  ;;  %941 = vmatprep.subr.bf16.mxu0 %v4547_v25  ;;  %v339_v37 = vadd.f32 %v5480_v39, %v313_v34  ;;  %v342_v45 = vadd.f32 %v5473_v8, %v316_v35  ;;  %v341_v50 = vadd.f32 %v5480_v39, %v315_v33  ;;  %v772_v12 = vsel %vm758_vm1, %v4568_v7, 0 }
 0x156   :  { %v5548_v41 = vpack.c.bf16 %v340_v15, %v338_v31  ;;  %v318_v38 = vmul.f32 %v4850_v30, %v300_v23  ;;  %v317_v40 = vmul.f32 %v4850_v30, %v299_v22  ;;  %v4852_v42 = vpop.eup %4851 }
 0x157   :  { %942 = vmatpush1.bf16.msra.mxu0 %v4545_v29  ;;  %v5550_v14 = vpack.c.bf16 %v339_v37, %v337_v36  ;;  %v320_v56 = vmul.f32 %v4852_v42, %v302_v54  ;;  %v319_v4 = vmul.f32 %v4852_v42, %v301_v57 }
 0x158   :  { %943 = vmatprep.subr.bf16.mxu0 %v4550_v18  ;;  %v344_v47 = vadd.f32 %v5473_v8, %v318_v38  ;;  %v343_v48 = vadd.f32 %v5480_v39, %v317_v40 }
 0x159   :  { %v346_v59 = vadd.f32 %v5473_v8, %v320_v56  ;;  %v345_v0 = vadd.f32 %v5480_v39, %v319_v4  ;;  %v4566_v8 = vld [vmem:[%s7685_s1 + $0x1c4] ss:$24 sps:$4 sm:$0x3f]   ;;  %v4569_v39 = vld [vmem:[%s7685_s1 + $0x190] ss:$24 sps:$4 sm:$0xff]  }
 0x15a   :  { %820 = vmatmul.mubr.bf16.gmra.mxu0 %v5528_v17  ;;  %901 = vmatmul.mubr.bf16.gmra.mxu1 %v5528_v17  ;;  %v354_v46 = vpack.c.bf16 %v344_v47, %v342_v45  ;;  %v353_v49 = vpack.c.bf16 %v343_v48, %v341_v50 }
 0x15b   :  { %4260 = vmatprep.mubr.msk.bf16.mxu0 %vm58_vm0, %v5548_v41  ;;  %4266 = vmatprep.mubr.msk.bf16.mxu1 %vm58_vm0, %v5548_v41  ;;  %v356_v62 = vpack.c.bf16 %v346_v59, %v346_v59  ;;  %v355_v11 = vpack.c.bf16 %v345_v0, %v345_v0  ;;  %v5712_v0 = vsub.s32 3, %v5413_v20 }
 0x15c   :  { %944 = vmatpush1.bf16.msra.mxu0 %v4548_v44 }
 0x15d   :  { %945 = vmatprep.subr.bf16.mxu0 %v4553_v53 }
 0x160   :  { %946 = vmatpush1.bf16.msra.mxu0 %v4551_v51 }
 0x161   :  { %947 = vmatprep.subr.bf16.mxu0 %v4556_v52 }
 0x162   :  { %830 = vmatmul.mubr.bf16.gmra.mxu0 %v5550_v14  ;;  %911 = vmatmul.mubr.bf16.gmra.mxu1 %v5550_v14 }
 0x163   :  { %4261 = vmatprep.mubr.msk.bf16.mxu0 %vm58_vm0, %v354_v46  ;;  %4267 = vmatprep.mubr.msk.bf16.mxu1 %vm58_vm0, %v354_v46 }
 0x164   :  { %948 = vmatpush1.bf16.msra.mxu0 %v4554_v43 }
 0x165   :  { %949 = vmatprep.subr.bf16.mxu0 %v4559_v55 }
 0x168   :  { %950 = vmatpush1.bf16.msra.mxu0 %v4557_v28 }
 0x169   :  { %951 = vmatprep.subr.bf16.mxu0 %v4562_v6 }
 0x16a   :  { %840 = vmatmul.mubr.bf16.gmra.mxu0 %v353_v49  ;;  %921 = vmatmul.mubr.bf16.gmra.mxu1 %v353_v49 }
 0x16b   :  { %4262 = vmatprep.mubr.msk.bf16.mxu0 %vm58_vm0, %v356_v62  ;;  %4268 = vmatprep.mubr.msk.bf16.mxu1 %vm58_vm0, %v356_v62 }
 0x16c   :  { %952 = vmatpush1.bf16.msra.mxu0 %v4560_v60 }
 0x16d   :  { %953 = vmatprep.subr.bf16.mxu0 %v4565_v58 }
 0x170   :  { %954 = vmatpush1.bf16.msra.mxu0 %v4563_v27 }
 0x171   :  { %4269 = vmatprep.subr.msk.bf16.mxu0 %vm758_vm1, %v4566_v8 }
 0x172   :  { %850 = vmatmul.mubr.bf16.gmra.mxu0 %v355_v11  ;;  %931 = vmatmul.mubr.bf16.gmra.mxu1 %v355_v11 }
 0x173   :  { %4270 = vmatprep.mubr.msk.bf16.mxu0 %vm58_vm0, %v5502_v3  ;;  %v5635_v3 = vld [vmem:[%s7687_s2] sm:$0x3f] }
 0x174   :  { %968 = vmatpush2.bf16.msra.mxu0 %v772_v12  ;;  %v5641_v16 = vrot.slane %v5635_v3, %v5417_v32  ;;  %v5647_v21 = vrot.slane %v5635_v3, %v5457_v24 }
 0x175   :  { %969 = vmatprep.subr.bf16.mxu0 %v4571_v1 }
 0x178   :  { %970 = vmatpush2.bf16.msra.mxu0 %v4569_v39 }
 0x17b   :  { %972 = vmatmul.mubr.bf16.vlgmr.msra.gmra.mxu0 %v5504_v5 }
 0x17c   :  { %4271 = vmatprep.mubr.msk.bf16.mxu0 %vm58_vm0, %v5526_v13 }
 0x183   :  { %982 = vmatmul.mubr.bf16.gmra.mxu0 %v5528_v17 }
 0x184   :  { %4272 = vmatprep.mubr.msk.bf16.mxu0 %vm58_vm0, %v5548_v41 }
 0x18b   :  { %992 = vmatmul.mubr.bf16.gmra.mxu0 %v5550_v14 }
 0x18c   :  { %4273 = vmatprep.mubr.msk.bf16.mxu0 %vm58_vm0, %v354_v46 }
 0x193   :  { %1002 = vmatmul.mubr.bf16.gmra.mxu0 %v353_v49 }
 0x194   :  { %4274 = vmatprep.mubr.msk.bf16.mxu0 %vm58_vm0, %v356_v62  ;;  %v5709_v62 = vsub.s32 2, %v5413_v20 }
 0x19b   :  { %1012 = vmatmul.mubr.bf16.gmra.mxu0 %v355_v11 }
 0x212   :  { %v811_v5 = vpop.f32.mrf.mxu0  ;;  %v5637_v9 = vpop.f32.mrf.mxu1 }
 0x213   :  { %v5652_v26 = vadd.f32 %v811_v5, %v5641_v16  ;;  %v430_v5 = vrot.slane %v5635_v3, %v5709_v62 }
 0x214   :  { %v813_v19 = vpop.f32.mrf.mxu0  ;;  %v5643_v10 = vpop.f32.mrf.mxu1 }
 0x215   :  { %v814_v22 = vadd.f32 %v813_v19, %v5647_v21 }
 0x216   :  { %v815_v25 = vpop.f32.mrf.mxu0  ;;  %v5649_v61 = vpop.f32.mrf.mxu1 }
 0x217   :  { %v5655_v13 = vadd.f32 %v815_v25, %v5641_v16 }
 0x218   :  { %v817_v17 = vpop.f32.mrf.mxu0  ;;  %v5657_v63 = vpop.f32.mrf.mxu1 }
 0x219   :  { %v1250_v23 = vpack.c.bf16 %v5655_v13, %v5652_v26  ;;  %v818_v29 = vadd.f32 %v817_v17, %v5647_v21  ;;  %v434_v17 = vrot.slane %v5635_v3, %v5712_v0 }
 0x21a   :  { %v821_v31 = vpop.f32.mrf.mxu0  ;;  %v5663_v34 = vpop.f32.mrf.mxu1 }
 0x21b   :  { %v1251_v18 = vpack.c.bf16 %v818_v29, %v814_v22  ;;  %v5673_v37 = vadd.f32 %v821_v31, %v5641_v16 }
 0x21c   :  { %v823_v15 = vpop.f32.mrf.mxu0  ;;  %v5665_v35 = vpop.f32.mrf.mxu1 }
 0x21d   :  { %v5668_v33 = vadd.f32 %v823_v15, %v5647_v21  ;;  %1312 = vmatprep.mubr.bf16.mxu1 %v1251_v18 }
 0x21e   :  { %v825_v30 = vpop.f32.mrf.mxu0  ;;  %v5670_v36 = vpop.f32.mrf.mxu1 }
 0x21f   :  { %v5676_v41 = vadd.f32 %v825_v30, %v5641_v16 }
 0x220   :  { %v827_v38 = vpop.f32.mrf.mxu0  ;;  %v5678_v40 = vpop.f32.mrf.mxu1 }
 0x221   :  { %v1252_v14 = vpack.c.bf16 %v5676_v41, %v5673_v37  ;;  %v5683_v44 = vadd.f32 %v827_v38, %v5647_v21 }
 0x222   :  { %v831_v45 = vpop.f32.mrf.mxu0  ;;  %v5685_v47 = vpop.f32.mrf.mxu1 }
 0x223   :  { %v1253_v50 = vpack.c.bf16 %v5683_v44, %v5668_v33  ;;  %v5693_v52 = vadd.f32 %v831_v45, %v5641_v16 }
 0x224   :  { %v833_v48 = vpop.f32.mrf.mxu0  ;;  %v914_v53 = vpop.f32.mrf.mxu1 }
 0x225   :  { %v5690_v46 = vadd.f32 %v833_v48, %v5647_v21 }
 0x226   :  { %v835_v49 = vpop.f32.mrf.mxu0  ;;  %v916_v51 = vpop.f32.mrf.mxu1 }
 0x227   :  { %v5696_v42 = vadd.f32 %v835_v49, %v5641_v16 }
 0x228   :  { %v837_v54 = vpop.f32.mrf.mxu0  ;;  %v918_v43 = vpop.f32.mrf.mxu1 }
 0x229   :  { %v1254_v55 = vpack.c.bf16 %v5696_v42, %v5693_v52  ;;  %v5701_v56 = vadd.f32 %v837_v54, %v5647_v21  ;;  %v919_v1 = vadd.f32 %v918_v43, %v434_v17  ;;  %v913_v43 = vadd.f32 %v5685_v47, %v430_v5 }
 0x22a   :  { %v841_v28 = vpop.f32.mrf.mxu0  ;;  %v922_v6 = vpop.f32.mrf.mxu1  ;;  %v7697_v52 = vmov 0   ;;  %v7737_v42 = vlaneseq }
 0x22b   :  { %v1255_v59 = vpack.c.bf16 %v5701_v56, %v5690_v46  ;;  %v5715_v8 = vadd.f32 %v841_v28, %v5641_v16  ;;  %1529 = vmatprep.mubr.bf16.mxu0 %v7697_v52 }
 0x22c   :  { %v843_v57 = vpop.f32.mrf.mxu0  ;;  %v924_v60 = vpop.f32.mrf.mxu1 }
 0x22d   :  { %v5706_v4 = vadd.f32 %v843_v57, %v5647_v21  ;;  %v925_v49 = vadd.f32 %v924_v60, %v434_v17 }
 0x22e   :  { %v845_v58 = vpop.f32.mrf.mxu0  ;;  %v926_v27 = vpop.f32.mrf.mxu1 }
 0x22f   :  { %v5718_v7 = vadd.f32 %v845_v58, %v5641_v16 }
 0x230   :  { %v847_v11 = vpop.f32.mrf.mxu0  ;;  %v928_v12 = vpop.f32.mrf.mxu1 }
 0x231   :  { %v5723_v39 = vadd.f32 %v847_v11, %v5647_v21  ;;  %v929_v15 = vadd.f32 %v928_v12, %v434_v17  ;;  %v7736_v46 = vpack.c.bf16 %v5718_v7, %v5715_v8 }
 0x232   :  { %v5727_v19 = vpop.f32.mrf.mxu0  ;;  %v932_v25 = vpop.f32.mrf.mxu1 }
 0x233   :  { %v1257_v22 = vpack.c.bf16 %v5723_v39, %v5706_v4  ;;  %v933_v29 = vadd.f32 %v932_v25, %v430_v5  ;;  %v1267_v11 = vpack.c.bf16 %v929_v15, %v925_v49  ;;  %v927_v25 = vadd.f32 %v926_v27, %v430_v5 }
 0x234   :  { %v853_v31 = vpop.f32.mrf.mxu0  ;;  %v934_v18 = vpop.f32.mrf.mxu1  ;;  %v917_v15 = vadd.f32 %v916_v51, %v430_v5  ;;  %v905_v27 = vadd.f32 %v5665_v35, %v434_v17  ;;  %v903_v51 = vadd.f32 %v5663_v34, %v430_v5  ;;  %v5759_v34 = vsub.s32 5, %v5413_v20 }
 0x235   :  { %v5734_v30 = vadd.f32 %v853_v31, %v5647_v21  ;;  %v935_v38 = vadd.f32 %v934_v18, %v434_v17  ;;  %v1268_v28 = vpack.c.bf16 %v933_v29, %v933_v29  ;;  %v923_v21 = vadd.f32 %v922_v6, %v430_v5 }
 0x236   :  { %v855_v45 = vpop.f32.mrf.mxu0  ;;  %v936_v48 = vpop.f32.mrf.mxu1  ;;  %v915_v31 = vadd.f32 %v914_v53, %v434_v17  ;;  %v1264_v53 = vpack.c.bf16 %v917_v15, %v913_v43  ;;  %v893_v15 = vadd.f32 %v5637_v9, %v430_v5  ;;  %7735 = vst [vmem:[#allocation3_spill] sm:$0xff] %v5759_v34 }
 0x237   :  { %v1269_v54 = vpack.c.bf16 %v935_v38, %v935_v38  ;;  %v1266_v45 = vpack.c.bf16 %v927_v25, %v923_v21  ;;  %v909_v48 = vadd.f32 %v5678_v40, %v434_v17  ;;  %v895_v40 = vadd.f32 %v5643_v10, %v434_v17 }
 0x238   :  { %v856_v57 = vpop.f32.mrf.mxu0  ;;  %v937_v58 = vpop.f32.mrf.mxu1  ;;  %v1265_v60 = vpack.c.bf16 %v919_v1, %v915_v31 }
 0x239   :  { %1286 = vmatprep.subr.bf16.mxu1 %v1269_v54  ;;  %v1263_v54 = vpack.c.bf16 %v909_v48, %v905_v27  ;;  %v907_v57 = vadd.f32 %v5670_v36, %v430_v5  ;;  %v899_v58 = vadd.f32 %v5657_v63, %v434_v17  ;;  %v5756_v36 = vsub.s32 4, %v5413_v20 }
 0x23a   :  { %1287 = vmatpush1.bf16.xpose.msra.mxu1 %v1268_v28 }
 0x23b   :  { %v5736_v2 = vpop.f32.mrf.mxu0  ;;  %1288 = vmatprep.subr.bf16.mxu1 %v1267_v11  ;;  %v1262_v47 = vpack.c.bf16 %v907_v57, %v903_v51  ;;  %v1261_v21 = vpack.c.bf16 %v899_v58, %v895_v40  ;;  %v438_v17 = vrot.slane %v5635_v3, %v5756_v36 }
 0x23d   :  { %v5738_v12 = vpop.f32.mrf.mxu0  ;;  %v974_v37 = vadd.f32 %v5736_v2, %v438_v17  ;;  %v852_v2 = vadd.f32 %v5727_v19, %v5641_v16 }
 0x23f   :  { %v5740_v18 = vpop.f32.mrf.mxu0  ;;  %v1258_v56 = vpack.c.bf16 %v852_v2, %v852_v2 }
 0x241   :  { %v5742_v38 = vpop.f32.mrf.mxu0 }
 0x242   :  { %1289 = vmatpush1.bf16.xpose.msra.mxu1 %v1266_v45  ;;  %v897_v45 = vadd.f32 %v5649_v61, %v430_v5  ;;  %v442_v61 = vrot.slane %v5635_v3, %v5759_v34 }
 0x243   :  { %v5744_v29 = vpop.f32.mrf.mxu0  ;;  %1290 = vmatprep.subr.bf16.mxu1 %v1265_v60 }
 0x244   :  { %v1260_v48 = vpack.c.bf16 %v897_v45, %v893_v15  ;;  %v980_v33 = vadd.f32 %v5742_v38, %v442_v61 }
 0x245   :  { %v985_v49 = vpop.f32.mrf.mxu0 }
 0x246   :  { %v986_v13 = vadd.f32 %v985_v49, %v442_v61  ;;  %v978_v49 = vadd.f32 %v5740_v18, %v438_v17 }
 0x247   :  { %v987_v6 = vpop.f32.mrf.mxu0 }
 0x248   :  { %v1270_v41 = vpack.c.bf16 %v978_v49, %v974_v37  ;;  %v1028_v49 = vadd.s32 56, %v5413_v20 }
 0x249   :  { %v989_v28 = vpop.f32.mrf.mxu0 }
 0x24a   :  { %1291 = vmatpush1.bf16.xpose.msra.mxu1 %v1264_v53 }
 0x24b   :  { %v993_v1 = vpop.f32.mrf.mxu0  ;;  %1292 = vmatprep.subr.bf16.mxu1 %v1263_v54 }
 0x24c   :  { %v994_v26 = vadd.f32 %v993_v1, %v438_v17 }
 0x24d   :  { %v995_v11 = vpop.f32.mrf.mxu0 }
 0x24f   :  { %v997_v25 = vpop.f32.mrf.mxu0 }
 0x251   :  { %v999_v35 = vpop.f32.mrf.mxu0 }
 0x252   :  { %1293 = vmatpush1.bf16.xpose.msra.mxu1 %v1262_v47 }
 0x253   :  { %v1003_v31 = vpop.f32.mrf.mxu0  ;;  %1294 = vmatprep.subr.bf16.mxu1 %v1261_v21  ;;  %v1000_v21 = vadd.f32 %v999_v35, %v442_v61 }
 0x254   :  { %v1004_v3 = vadd.f32 %v1003_v31, %v438_v17  ;;  %v1024_v31 = vadd.s32 24, %v5413_v20 }
 0x255   :  { %v1005_v60 = vpop.f32.mrf.mxu0 }
 0x256   :  { %v1006_v58 = vadd.f32 %v1005_v60, %v442_v61  ;;  %v996_v60 = vadd.f32 %v995_v11, %v442_v61  ;;  %v1023_v11 = vadd.s32 16, %v5413_v20  ;;  %vm1085_vm3 = vcmp.ge.s32.totalorder %v1024_v31, 27 }
 0x257   :  { %v1007_v63 = vpop.f32.mrf.mxu0 }
 0x258   :  { %v1008_v40 = vadd.f32 %v1007_v63, %v438_v17  ;;  %v998_v63 = vadd.f32 %v997_v25, %v438_v17  ;;  %vm1054_vm15 = vcmp.ge.s32.totalorder %v1023_v11, 18 }
 0x259   :  { %v1009_v10 = vpop.f32.mrf.mxu0 }
 0x25a   :  { %1295 = vmatpush1.bf16.xpose.msra.mxu1 %v1260_v48  ;;  %v1010_v9 = vadd.f32 %v1009_v10, %v442_v61  ;;  %v1276_v48 = vpack.c.bf16 %v1008_v40, %v1004_v3  ;;  %v990_v10 = vadd.f32 %v989_v28, %v442_v61  ;;  %v1274_v35 = vpack.c.bf16 %v998_v63, %v994_v26 }
 0x25b   :  { %v1013_v43 = vpop.f32.mrf.mxu0  ;;  %v976_v28 = vadd.f32 %v5738_v12, %v442_v61 }
 0x25c   :  { %v1014_v27 = vadd.f32 %v1013_v43, %v438_v17  ;;  %v1277_v45 = vpack.c.bf16 %v1010_v9, %v1006_v58  ;;  %v1275_v43 = vpack.c.bf16 %v1000_v21, %v996_v60  ;;  %v1273_v44 = vpack.c.bf16 %v990_v10, %v986_v13 }
 0x25d   :  { %v1015_v53 = vpop.f32.mrf.mxu0  ;;  %v1271_v1 = vpack.c.bf16 %v980_v33, %v976_v28  ;;  %v5038_v9 = vmov -1e+30  }
 0x25e   :  { %v1278_v5 = vpack.c.bf16 %v1014_v27, %v1014_v27  ;;  %v1016_v54 = vadd.f32 %v1015_v53, %v442_v61  ;;  %v1063_v61 = vsel %vm1054_vm15, 1, %v7697_v52  ;;  %v1025_v27 = vadd.s32 32, %v5413_v20 }
 0x25f   :  { %v1017_v57 = vpop.f32.mrf.mxu0 }
 0x260   :  { %v1279_v51 = vpack.c.bf16 %v1016_v54, %v1016_v54  ;;  %v1492_v15 = vsel %vm1490_vm6, %v1278_v5, 0  ;;  %v1072_v57 = vadd.s32 1, %v1063_v61 }
 0x261   :  { %v1018_v47 = vpop.f32.mrf.mxu0  ;;  %1313 = vmatmul.mubr.bf16.vlgmr.msra.gmra.mxu1 %v1250_v23  ;;  %v988_v23 = vadd.f32 %v987_v6, %v438_v17 }
 0x262   :  { %4277 = vmatprep.subr.msk.bf16.mxu0 %vm1490_vm6, %v1279_v51  ;;  %1320 = vmatprep.mubr.bf16.mxu1 %v1253_v50  ;;  %v984_v50 = vadd.f32 %v5744_v29, %v438_v17  ;;  %v1022_v29 = vadd.s32 8, %v5413_v20  ;;  %v1094_v51 = vsel %vm1085_vm3, 1, %v7697_v52  ;;  %v1026_v47 = vadd.s32 40, %v5413_v20 }
 0x263   :  { %1504 = vmatpush1.bf16.msra.mxu0 %v1492_v15  ;;  %v1103_v60 = vadd.s32 2, %v1094_v51 }
 0x264   :  { %1505 = vmatprep.subr.bf16.mxu0 %v1277_v45  ;;  %v1272_v6 = vpack.c.bf16 %v988_v23, %v984_v50  ;;  %vm1033_vm14 = vcmp.ge.s32.totalorder %v1022_v29, 9 }
 0x265   :  { %v1042_v17 = vsel %vm1033_vm14, 1, %v7697_v52 }
 0x267   :  { %1506 = vmatpush1.bf16.msra.mxu0 %v1276_v48 }
 0x268   :  { %1507 = vmatprep.subr.bf16.mxu0 %v1275_v43  ;;  %v1027_v43 = vadd.s32 48, %v5413_v20 }
 0x269   :  { %1321 = vmatmul.mubr.bf16.gmra.mxu1 %v1252_v14  ;;  %v1259_v14 = vpack.c.bf16 %v5734_v30, %v5734_v30 }
 0x26a   :  { %1328 = vmatprep.mubr.bf16.mxu1 %v1255_v59 }
 0x26b   :  { %1508 = vmatpush1.bf16.msra.mxu0 %v1274_v35 }
 0x26c   :  { %1509 = vmatprep.subr.bf16.mxu0 %v1273_v44 }
 0x26f   :  { %1510 = vmatpush1.bf16.msra.mxu0 %v1272_v6 }
 0x270   :  { %1511 = vmatprep.subr.bf16.mxu0 %v1271_v1 }
 0x271   :  { %1329 = vmatmul.mubr.bf16.gmra.mxu1 %v1254_v55  ;;  %v5799_v55 = vand.u32 127, %v7737_v42 }
 0x272   :  { %1336 = vmatprep.mubr.bf16.mxu1 %v1257_v22 }
 0x273   :  { %1512 = vmatpush1.bf16.msra.mxu0 %v1270_v41  ;;  %7738 = vst [vmem:[#allocation4_spill] sm:$0xff] %v5799_v55  ;;  %vm1050_vm7 = vcmp.ge.s32.totalorder %v5799_v55, 9  ;;  %vm1079_vm8 = vcmp.ge.s32.totalorder %v5799_v55, 18  ;;  %vm1109_vm9 = vcmp.ge.s32.totalorder %v5799_v55, 27  ;;  %vm1139_vm10 = vcmp.ge.s32.totalorder %v5799_v55, 36 }
 0x274   :  { %v1051_v59 = vsel %vm1050_vm7, 1, %v7697_v52  ;;  %v1080_v4 = vsel %vm1079_vm8, 1, %v7697_v52  ;;  %v1110_v16 = vsel %vm1109_vm9, 1, %v7697_v52  ;;  %v1140_v39 = vsel %vm1139_vm10, 1, %v7697_v52 }
 0x275   :  { %v1081_v8 = vadd.s32 %v1080_v4, %v1051_v59  ;;  %vm1169_vm11 = vcmp.ge.s32.totalorder %v5799_v55, 45  ;;  %vm1199_vm12 = vcmp.ge.s32.totalorder %v5799_v55, 54  ;;  %vm1229_vm13 = vcmp.ge.s32.totalorder %v5799_v55, 63 }
 0x276   :  { %v1170_v22 = vsel %vm1169_vm11, 1, %v7697_v52  ;;  %v1200_v12 = vsel %vm1199_vm12, 1, %v7697_v52  ;;  %v1230_v38 = vsel %vm1229_vm13, 1, %v7697_v52  ;;  %vm1116_vm7 = vcmp.ge.s32.totalorder %v1025_v27, 36 }
 0x277   :  { %v1111_v7 = vadd.s32 %v1110_v16, %v1081_v8  ;;  %v1125_v48 = vsel %vm1116_vm7, 1, %v7697_v52  ;;  %vm1147_vm9 = vcmp.ge.s32.totalorder %v1026_v47, 45  ;;  %vm1178_vm11 = vcmp.ge.s32.totalorder %v1027_v43, 54 }
 0x278   :  { %v1134_v33 = vadd.s32 3, %v1125_v48  ;;  %v1156_v50 = vsel %vm1147_vm9, 1, %v7697_v52  ;;  %v1187_v2 = vsel %vm1178_vm11, 1, %v7697_v52  ;;  %vm1209_vm13 = vcmp.ge.s32.totalorder %v1028_v49, 63 }
 0x279   :  { %1337 = vmatmul.mubr.bf16.gmra.mxu1 %v7736_v46  ;;  %v1141_v19 = vadd.s32 %v1140_v39, %v1111_v7  ;;  %v1196_v16 = vadd.s32 5, %v1187_v2  ;;  %v1218_v39 = vsel %vm1209_vm13, 1, %v7697_v52 }
 0x27a   :  { %1344 = vmatprep.mubr.bf16.mxu1 %v1259_v14  ;;  %v1165_v14 = vadd.s32 4, %v1156_v50 }
 0x27b   :  { %v1171_v30 = vadd.s32 %v1170_v22, %v1141_v19 }
 0x27d   :  { %v1201_v18 = vadd.s32 %v1200_v12, %v1171_v30 }
 0x27f   :  { %v5817_v25 = vadd.s32 %v1230_v38, %v1201_v18  ;;  %v1227_v38 = vadd.s32 6, %v1218_v39 }
 0x281   :  { %1345 = vmatmul.mubr.bf16.gmra.mxu1 %v1258_v56  ;;  %vm4275_vm2 = vcmp.eq.s32.totalorder %v5817_v25, 0  ;;  %vm1233_vm4 = vcmp.eq.s32.totalorder %v1042_v17, %v5817_v25  ;;  %vm1234_vm8 = vcmp.eq.s32.totalorder %v1072_v57, %v5817_v25  ;;  %vm1235_vm10 = vcmp.eq.s32.totalorder %v1103_v60, %v5817_v25 }
 0x282   :  { %v1241_v5 = vsel %vm4275_vm2, 0.0, %v5038_v9  ;;  %v1242_v45 = vsel %vm1233_vm4, 0.0, %v5038_v9  ;;  %v1243_v13 = vsel %vm1234_vm8, 0.0, %v5038_v9  ;;  %v1244_v1 = vsel %vm1235_vm10, 0.0, %v5038_v9 }
 0x283   :  { %vm1236_vm12 = vcmp.eq.s32.totalorder %v1134_v33, %v5817_v25  ;;  %vm1237_vm14 = vcmp.eq.s32.totalorder %v1165_v14, %v5817_v25  ;;  %vm1238_vm15 = vcmp.eq.s32.totalorder %v1196_v16, %v5817_v25  ;;  %vm1239_vm2 = vcmp.eq.s32.totalorder %v1227_v38, %v5817_v25 }
 0x284   :  { %v1245_v59 = vsel %vm1236_vm12, 0.0, %v5038_v9  ;;  %v1246_v30 = vsel %vm1237_vm14, 0.0, %v5038_v9  ;;  %v1247_v17 = vsel %vm1238_vm15, 0.0, %v5038_v9  ;;  %v1248_v57 = vsel %vm1239_vm2, 0.0, %v5038_v9 }
 0x285   :  { %vm4276_vm3 = vcmp.eq.s32.totalorder %v5817_v25, 7 }
 0x321   :  { %v1314_v53 = vpop.f32.mrf.mxu1 }
 0x322   :  { %v1352_v54 = vmul.f32 0.08006407, %v1314_v53 }
 0x323   :  { %v1316_v58 = vpop.f32.mrf.mxu1 }
 0x324   :  { %v5827_v40 = vadd.f32 %v1352_v54, %v1241_v5 }
 0x325   :  { %v1317_v21 = vpop.f32.mrf.mxu1 }
 0x326   :  { %v1353_v15 = vmul.f32 0.08006407, %v1317_v21  ;;  %v1371_v3 = vsel %vm1370_vm5, %v5827_v40, -inf }
 0x327   :  { %1372 = vmax.xlane.f32.xlu0 %v1371_v3  ;;  %v1319_v63 = vpop.f32.mrf.mxu1 }
 0x328   :  { %v5835_v10 = vadd.f32 %v1353_v15, %v1242_v45  ;;  %v1249_v15 = vsel %vm4276_vm3, 0.0, %v5038_v9 }
 0x329   :  { %v1322_v26 = vpop.f32.mrf.mxu1 }
 0x32a   :  { %v1354_v23 = vmul.f32 0.08006407, %v1322_v26  ;;  %v1374_v35 = vsel %vm1370_vm5, %v5835_v10, -inf }
 0x32b   :  { %1375 = vmax.xlane.f32.xlu1 %v1374_v35  ;;  %v1324_v44 = vpop.f32.mrf.mxu1 }
 0x32c   :  { %v5843_v28 = vadd.f32 %v1354_v23, %v1243_v13 }
 0x32d   :  { %v1325_v6 = vpop.f32.mrf.mxu1 }
 0x32e   :  { %v1355_v37 = vmul.f32 0.08006407, %v1325_v6  ;;  %v1377_v41 = vsel %vm1370_vm5, %v5843_v28, -inf }
 0x32f   :  { %1378 = vmax.xlane.f32.xlu0 %v1377_v41  ;;  %v1327_v46 = vpop.f32.mrf.mxu1 }
 0x330   :  { %v1364_v56 = vadd.f32 %v1355_v37, %v1244_v1 }
 0x331   :  { %v1330_v42 = vpop.f32.mrf.mxu1 }
 0x332   :  { %v1356_v4 = vmul.f32 0.08006407, %v1330_v42  ;;  %v1380_v8 = vsel %vm1370_vm5, %v1364_v56, -inf }
 0x333   :  { %1381 = vmax.xlane.f32.xlu1 %v1380_v8  ;;  %v1332_v7 = vpop.f32.mrf.mxu1 }
 0x334   :  { %v1365_v19 = vadd.f32 %v1356_v4, %v1245_v59 }
 0x335   :  { %v1333_v22 = vpop.f32.mrf.mxu1 }
 0x336   :  { %v1357_v12 = vmul.f32 0.08006407, %v1333_v22  ;;  %v1383_v18 = vsel %vm1370_vm5, %v1365_v19, -inf }
 0x337   :  { %1384 = vmax.xlane.f32.xlu0 %v1383_v18  ;;  %v1335_v29 = vpop.f32.mrf.mxu1 }
 0x338   :  { %v1366_v11 = vadd.f32 %v1357_v12, %v1246_v30 }
 0x339   :  { %v1338_v31 = vpop.f32.mrf.mxu1 }
 0x33a   :  { %v1358_v61 = vmul.f32 0.08006407, %v1338_v31  ;;  %v1386_v27 = vsel %vm1370_vm5, %v1366_v11, -inf }
 0x33b   :  { %1387 = vmax.xlane.f32.xlu1 %v1386_v27  ;;  %v1340_v53 = vpop.f32.mrf.mxu1 }
 0x33c   :  { %v1367_v5 = vadd.f32 %v1358_v61, %v1247_v17 }
 0x33d   :  { %v1341_v54 = vpop.f32.mrf.mxu1 }
 0x33e   :  { %v1359_v58 = vmul.f32 0.08006407, %v1341_v54  ;;  %v1389_v51 = vsel %vm1370_vm5, %v1367_v5, -inf }
 0x33f   :  { %1390 = vmax.xlane.f32.xlu0 %v1389_v51  ;;  %v1343_v47 = vpop.f32.mrf.mxu1 }
 0x340   :  { %v1368_v21 = vadd.f32 %v1359_v58, %v1248_v57 }
 0x341   :  { %v1346_v45 = vpop.f32.mrf.mxu1 }
 0x342   :  { %v1360_v3 = vmul.f32 0.08006407, %v1346_v45  ;;  %v1392_v60 = vsel %vm1370_vm5, %v1368_v21, -inf  ;;  %v4574_v45 = vld [vmem:[%s7688_s3 + $0x74] ss:$8 sps:$4 sm:$0xff]  }
 0x343   :  { %1393 = vmax.xlane.f32.xlu1 %v1392_v60  ;;  %v1348_v63 = vpop.f32.mrf.mxu1  ;;  %1788 = vmatprep.subr.bf16.mxu1 %v4574_v45  ;;  %v4580_v60 = vld [vmem:[%s7688_s3 + $0x54] ss:$8 sps:$4 sm:$0xff]  }
 0x344   :  { %v1369_v48 = vadd.f32 %v1360_v3, %v1249_v15  ;;  %v4577_v15 = vld [vmem:[%s7688_s3 + $0x64] ss:$8 sps:$4 sm:$0xff]   ;;  %v4575_v3 = vld [vmem:[%s7688_s3 + $0x60] ss:$8 sps:$4 sm:$0xff]   ;;  %v4578_v63 = vld [vmem:[%s7688_s3 + $0x50] ss:$8 sps:$4 sm:$0xff]  }
 0x345   :  { %v1349_v43 = vpop.f32.mrf.mxu1 }
 0x346   :  { %v1395_v26 = vsel %vm1370_vm5, %v1369_v48, -inf  ;;  %v4581_v43 = vld [vmem:[%s7688_s3 + $0x40] ss:$8 sps:$4 sm:$0xff]  }
 0x347   :  { %1396 = vmax.xlane.f32.xlu0 %v1395_v26  ;;  %v1350_v13 = vpop.f32.mrf.mxu1  ;;  %v4586_v26 = vld [vmem:[%s7688_s3 + $0x34] ss:$8 sps:$4 sm:$0xff]  }
 0x348   :  { %v4584_v13 = vld [vmem:[%s7688_s3 + $0x30] ss:$8 sps:$4 sm:$0xff]  }
 0x3b0   :  { %v1373_v23 = vpop.xlane.xlu0 %1372 }
 0x3b1   :  { %v1398_v25 = vsub.f32 %v5827_v40, %v1373_v23  ;;  %v4589_v23 = vld [vmem:[%s7688_s3 + $0x24] ss:$8 sps:$4 sm:$0xff]  }
 0x3b3   :  { %v1407_v35 = vmul.f32 1.442695, %v1398_v25  ;;  %v4587_v25 = vld [vmem:[%s7688_s3 + $0x20] ss:$8 sps:$4 sm:$0xff]  }
 0x3b4   :  { %v1376_v33 = vpop.xlane.xlu1 %1375 }
 0x3b5   :  { %4853 = vpow2.f32 %v1407_v35  ;;  %v1399_v44 = vsub.f32 %v5835_v10, %v1376_v33  ;;  %v4592_v35 = vld [vmem:[%s7688_s3 + $0x14] ss:$8 sps:$4 sm:$0xff]   ;;  %v4590_v33 = vld [vmem:[%s7688_s3 + $0x10] ss:$8 sps:$4 sm:$0xff]  }
 0x3b7   :  { %v1409_v9 = vmul.f32 1.442695, %v1399_v44  ;;  %v4595_v44 = vld [vmem:[%s7688_s3 + $0x4] ss:$8 sps:$4 sm:$0xff]  }
 0x3b8   :  { %v1379_v50 = vpop.xlane.xlu0 %1378 }
 0x3b9   :  { %4855 = vpow2.f32 %v1409_v9  ;;  %v1400_v49 = vsub.f32 %v5843_v28, %v1379_v50  ;;  %v4593_v9 = vld [vmem:[%s7688_s3] ss:$8 sps:$4 sm:$0xff]   ;;  %v4598_v50 = vld [vmem:[%s7688_s3 + $0xf4] ss:$8 sps:$4 sm:$0xff]  }
 0x3bb   :  { %v1411_v6 = vmul.f32 1.442695, %v1400_v49  ;;  %v4596_v49 = vld [vmem:[%s7688_s3 + $0xf0] ss:$8 sps:$4 sm:$0xff]  }
 0x3bc   :  { %v1382_v1 = vpop.xlane.xlu1 %1381 }
 0x3bd   :  { %4857 = vpow2.f32 %v1411_v6  ;;  %v1401_v37 = vsub.f32 %v1364_v56, %v1382_v1  ;;  %v4601_v6 = vld [vmem:[%s7688_s3 + $0xe4] ss:$8 sps:$4 sm:$0xff]   ;;  %v4599_v1 = vld [vmem:[%s7688_s3 + $0xe0] ss:$8 sps:$4 sm:$0xff]  }
 0x3bf   :  { %v1413_v41 = vmul.f32 1.442695, %v1401_v37  ;;  %v4604_v37 = vld [vmem:[%s7688_s3 + $0xd4] ss:$8 sps:$4 sm:$0xff]  }
 0x3c0   :  { %v1385_v14 = vpop.xlane.xlu0 %1384 }
 0x3c1   :  { %4859 = vpow2.f32 %v1413_v41  ;;  %v1402_v46 = vsub.f32 %v1365_v19, %v1385_v14  ;;  %v4602_v41 = vld [vmem:[%s7688_s3 + $0xd0] ss:$8 sps:$4 sm:$0xff]   ;;  %v4607_v14 = vld [vmem:[%s7688_s3 + $0xc4] ss:$8 sps:$4 sm:$0xff]  }
 0x3c2   :  { %v5870_v2 = vpop.eup %4853 }
 0x3c3   :  { %v1415_v40 = vmul.f32 1.442695, %v1402_v46  ;;  %v1425_v42 = vsel %vm1370_vm5, %v5870_v2, 0.0  ;;  %v4605_v46 = vld [vmem:[%s7688_s3 + $0xc0] ss:$8 sps:$4 sm:$0xff]  }
 0x3c4   :  { %v1388_v10 = vpop.xlane.xlu1 %1387  ;;  %1426 = vadd.xlane.f32.xlu1 %v1425_v42  ;;  %v4608_v42 = vld [vmem:[%s7688_s3 + $0xb0] ss:$8 sps:$4 sm:$0xff]  }
 0x3c5   :  { %4861 = vpow2.f32 %v1415_v40  ;;  %v1403_v59 = vsub.f32 %v1366_v11, %v1388_v10  ;;  %v4610_v40 = vld [vmem:[%s7688_s3 + $0xb4] ss:$8 sps:$4 sm:$0xff]   ;;  %v4613_v10 = vld [vmem:[%s7688_s3 + $0xa4] ss:$8 sps:$4 sm:$0xff]  }
 0x3c6   :  { %v5874_v4 = vpop.eup %4855 }
 0x3c7   :  { %v1417_v28 = vmul.f32 1.442695, %v1403_v59  ;;  %v1428_v56 = vsel %vm1370_vm5, %v5874_v4, 0.0  ;;  %v4611_v59 = vld [vmem:[%s7688_s3 + $0xa0] ss:$8 sps:$4 sm:$0xff]  }
 0x3c8   :  { %v1391_v8 = vpop.xlane.xlu0 %1390  ;;  %1429 = vadd.xlane.f32.xlu0 %v1428_v56 }
 0x3c9   :  { %4863 = vpow2.f32 %v1417_v28  ;;  %v1404_v16 = vsub.f32 %v1367_v5, %v1391_v8 }
 0x3ca   :  { %v5878_v7 = vpop.eup %4857 }
 0x3cb   :  { %v1419_v39 = vmul.f32 1.442695, %v1404_v16  ;;  %v1431_v19 = vsel %vm1370_vm5, %v5878_v7, 0.0 }
 0x3cc   :  { %1432 = vadd.xlane.f32.xlu1 %v1431_v19  ;;  %v1394_v22 = vpop.xlane.xlu1 %1393 }
 0x3cd   :  { %4865 = vpow2.f32 %v1419_v39  ;;  %v1405_v30 = vsub.f32 %v1368_v21, %v1394_v22  ;;  %v4572_v21 = vld [vmem:[%s7688_s3 + $0x70] ss:$8 sps:$4 sm:$0xff]  }
 0x3ce   :  { %v5882_v12 = vpop.eup %4859  ;;  %1789 = vmatpush1.bf16.msra.mxu1 %v4572_v21 }
 0x3cf   :  { %v1421_v18 = vmul.f32 1.442695, %v1405_v30  ;;  %v1434_v38 = vsel %vm1370_vm5, %v5882_v12, 0.0  ;;  %1790 = vmatprep.subr.bf16.mxu1 %v4577_v15 }
 0x3d0   :  { %1435 = vadd.xlane.f32.xlu0 %v1434_v38  ;;  %v1397_v29 = vpop.xlane.xlu0 %1396 }
 0x3d1   :  { %4867 = vpow2.f32 %v1421_v18  ;;  %v1406_v11 = vsub.f32 %v1369_v48, %v1397_v29  ;;  %v4583_v48 = vld [vmem:[%s7688_s3 + $0x44] ss:$8 sps:$4 sm:$0xff]  }
 0x3d2   :  { %v5886_v31 = vpop.eup %4861  ;;  %1791 = vmatpush1.bf16.msra.mxu1 %v4575_v3 }
 0x3d3   :  { %v1423_v17 = vmul.f32 1.442695, %v1406_v11  ;;  %v1437_v61 = vsel %vm1370_vm5, %v5886_v31, 0.0  ;;  %1792 = vmatprep.subr.bf16.mxu1 %v4580_v60 }
 0x3d4   :  { %1438 = vadd.xlane.f32.xlu1 %v1437_v61 }
 0x3d5   :  { %4869 = vpow2.f32 %v1423_v17 }
 0x3d6   :  { %v5890_v27 = vpop.eup %4863  ;;  %1793 = vmatpush1.bf16.msra.mxu1 %v4578_v63 }
 0x3d7   :  { %v1440_v53 = vsel %vm1370_vm5, %v5890_v27, 0.0  ;;  %1794 = vmatprep.subr.bf16.mxu1 %v4583_v48 }
 0x3d8   :  { %1441 = vadd.xlane.f32.xlu0 %v1440_v53 }
 0x3da   :  { %v5894_v5 = vpop.eup %4865  ;;  %1795 = vmatpush1.bf16.msra.mxu1 %v4581_v43 }
 0x3db   :  { %v1443_v54 = vsel %vm1370_vm5, %v5894_v5, 0.0  ;;  %1796 = vmatprep.subr.bf16.mxu1 %v4586_v26  ;;  %v4616_v26 = vld [vmem:[%s7688_s3 + $0x94] ss:$8 sps:$4 sm:$0xff]  }
 0x3dc   :  { %1444 = vadd.xlane.f32.xlu1 %v1443_v54 }
 0x3de   :  { %v5898_v57 = vpop.eup %4867  ;;  %1797 = vmatpush1.bf16.msra.mxu1 %v4584_v13 }
 0x3df   :  { %v1446_v58 = vsel %vm1370_vm5, %v5898_v57, 0.0  ;;  %1798 = vmatprep.subr.bf16.mxu1 %v4589_v23 }
 0x3e0   :  { %1447 = vadd.xlane.f32.xlu0 %v1446_v58 }
 0x3e2   :  { %v5902_v51 = vpop.eup %4869  ;;  %1799 = vmatpush1.bf16.msra.mxu1 %v4587_v25 }
 0x3e3   :  { %v1449_v47 = vsel %vm1370_vm5, %v5902_v51, 0.0  ;;  %1800 = vmatprep.subr.bf16.mxu1 %v4592_v35 }
 0x3e4   :  { %1450 = vadd.xlane.f32.xlu1 %v1449_v47 }
 0x3e6   :  { %1801 = vmatpush1.bf16.msra.mxu1 %v4590_v33 }
 0x3e7   :  { %1802 = vmatprep.subr.bf16.mxu1 %v4595_v44 }
 0x3ea   :  { %1803 = vmatpush1.bf16.msra.mxu1 %v4593_v9 }
 0x3eb   :  { %1804 = vmatprep.subr.bf16.mxu1 %v4598_v50 }
 0x3ee   :  { %1805 = vmatpush2.bf16.msra.mxu1 %v4596_v49 }
 0x3ef   :  { %1806 = vmatprep.subr.bf16.mxu1 %v4601_v6 }
 0x3f2   :  { %1807 = vmatpush2.bf16.msra.mxu1 %v4599_v1 }
 0x3f3   :  { %1808 = vmatprep.subr.bf16.mxu1 %v4604_v37 }
 0x3f6   :  { %1809 = vmatpush2.bf16.msra.mxu1 %v4602_v41 }
 0x3f7   :  { %1810 = vmatprep.subr.bf16.mxu1 %v4607_v14 }
 0x3fa   :  { %1811 = vmatpush2.bf16.msra.mxu1 %v4605_v46 }
 0x3fb   :  { %1812 = vmatprep.subr.bf16.mxu1 %v4610_v40 }
 0x3fe   :  { %1813 = vmatpush2.bf16.msra.mxu1 %v4608_v42 }
 0x3ff   :  { %1814 = vmatprep.subr.bf16.mxu1 %v4613_v10 }
 0x402   :  { %1815 = vmatpush2.bf16.msra.mxu1 %v4611_v59 }
 0x403   :  { %1816 = vmatprep.subr.bf16.mxu1 %v4616_v26  ;;  %v5020_v26 = vld [vmem:[%s7684_s0 + $0x10] sm:$0xff] }
 0x44d   :  { %v1427_v28 = vpop.xlane.xlu1 %1426 }
 0x44e   :  { %4871 = vrcp.f32 %v1427_v28 }
 0x451   :  { %v1430_v56 = vpop.xlane.xlu0 %1429 }
 0x452   :  { %4873 = vrcp.f32 %v1430_v56 }
 0x455   :  { %v1433_v8 = vpop.xlane.xlu1 %1432 }
 0x456   :  { %4875 = vrcp.f32 %v1433_v8 }
 0x459   :  { %v1436_v16 = vpop.xlane.xlu0 %1435 }
 0x45a   :  { %4877 = vrcp.f32 %v1436_v16 }
 0x45b   :  { %v4872_v39 = vpop.eup %4871 }
 0x45c   :  { %v1461_v30 = vmul.f32 %v4872_v39, %v5870_v2 }
 0x45d   :  { %v1439_v19 = vpop.xlane.xlu1 %1438 }
 0x45e   :  { %4879 = vrcp.f32 %v1439_v19 }
 0x45f   :  { %v4874_v22 = vpop.eup %4873 }
 0x460   :  { %v1462_v18 = vmul.f32 %v4874_v22, %v5874_v4 }
 0x461   :  { %v1442_v38 = vpop.xlane.xlu0 %1441 }
 0x462   :  { %v1470_v29 = vpack.c.bf16 %v1462_v18, %v1461_v30  ;;  %4881 = vrcp.f32 %v1442_v38 }
 0x463   :  { %v4876_v11 = vpop.eup %4875 }
 0x464   :  { %4278 = vmatmul.mubr.msk.bf16.vlgmr.msra.gmra.mxu0 %vm1370_vm5, %v1470_v29  ;;  %v1463_v53 = vmul.f32 %v4876_v11, %v5878_v7  ;;  %v6023_v11 = vld [vmem:[%s7686_s9] sm:$0x3f] }
 0x465   :  { %v1445_v17 = vpop.xlane.xlu1 %1444  ;;  %1539 = vmatprep.mubr.bf16.mxu0 %v7697_v52 }
 0x466   :  { %4883 = vrcp.f32 %v1445_v17  ;;  %v6027_v17 = vrot.slane %v6023_v11, %v5756_v36 }
 0x467   :  { %v4878_v61 = vpop.eup %4877 }
 0x468   :  { %v1464_v54 = vmul.f32 %v4878_v61, %v5882_v12  ;;  %v6032_v61 = vld [vmem:[%s7686_s9 + $0x8] sm:$0x3f] }
 0x469   :  { %v1448_v58 = vpop.xlane.xlu0 %1447 }
 0x46a   :  { %4885 = vrcp.f32 %v1448_v58  ;;  %v1471_v2 = vpack.c.bf16 %v1464_v54, %v1463_v53  ;;  %v6036_v53 = vrot.slane %v6032_v61, %v5756_v36 }
 0x46b   :  { %v4880_v4 = vpop.eup %4879 }
 0x46c   :  { %4279 = vmatmul.mubr.msk.bf16.gmra.mxu0 %vm1370_vm5, %v1471_v2  ;;  %v1465_v45 = vmul.f32 %v4880_v4, %v5886_v31 }
 0x46d   :  { %v1451_v47 = vpop.xlane.xlu1 %1450  ;;  %1549 = vmatprep.mubr.bf16.mxu0 %v7697_v52 }
 0x46e   :  { %4887 = vrcp.f32 %v1451_v47 }
 0x46f   :  { %v4882_v21 = vpop.eup %4881 }
 0x470   :  { %v1466_v15 = vmul.f32 %v4882_v21, %v5890_v27  ;;  %v5017_v21 = vld [vmem:[%s7684_s0 + $0x8] sm:$0xff] }
 0x472   :  { %v1472_v3 = vpack.c.bf16 %v1466_v15, %v1465_v45  ;;  %v5018_v15 = vld [vmem:[%s7684_s0] sm:$0xff] }
 0x473   :  { %v4884_v7 = vpop.eup %4883 }
 0x474   :  { %4280 = vmatmul.mubr.msk.bf16.gmra.mxu0 %vm1370_vm5, %v1472_v3  ;;  %v1467_v60 = vmul.f32 %v4884_v7, %v5894_v5  ;;  %v4614_v5 = vld [vmem:[%s7688_s3 + $0x90] ss:$8 sps:$4 sm:$0xff]  }
 0x475   :  { %1559 = vmatprep.mubr.bf16.mxu0 %v7697_v52  ;;  %1817 = vmatpush2.bf16.msra.mxu1 %v4614_v5 }
 0x477   :  { %v4886_v12 = vpop.eup %4885 }
 0x478   :  { %v1468_v63 = vmul.f32 %v4886_v12, %v5898_v57  ;;  %v4619_v57 = vld [vmem:[%s7688_s3 + $0x84] ss:$8 sps:$4 sm:$0xff]  }
 0x479   :  { %1818 = vmatprep.subr.bf16.mxu1 %v4619_v57 }
 0x47a   :  { %v1473_v48 = vpack.c.bf16 %v1468_v63, %v1467_v60 }
 0x47b   :  { %v4888_v43 = vpop.eup %4887 }
 0x47c   :  { %4281 = vmatmul.mubr.msk.bf16.gmra.mxu0 %vm1370_vm5, %v1473_v48  ;;  %v1469_v31 = vmul.f32 %v4888_v43, %v5902_v51  ;;  %v4617_v51 = vld [vmem:[%s7688_s3 + $0x80] ss:$8 sps:$4 sm:$0xff]  }
 0x47d   :  { %1569 = vmatprep.mubr.bf16.mxu0 %v7697_v52  ;;  %1819 = vmatpush2.bf16.msra.mxu1 %v4617_v51 }
 0x47e   :  { %v1474_v27 = vpack.c.bf16 %v1469_v31, %v1469_v31  ;;  %v5019_v31 = vld [vmem:[%s7684_s0 + $0x18] sm:$0xff] }
 0x484   :  { %4282 = vmatmul.mubr.msk.bf16.gmra.mxu0 %vm1370_vm5, %v1474_v27 }
 0x524   :  { %v1531_v13 = vpop.f32.mrf.mxu0 }
 0x526   :  { %v1533_v23 = vpop.f32.mrf.mxu0 }
 0x528   :  { %v1535_v25 = vpop.f32.mrf.mxu0 }
 0x529   :  { %v1578_v44 = vpack.c.bf16 %v1535_v25, %v1531_v13 }
 0x52a   :  { %v1537_v35 = vpop.f32.mrf.mxu0 }
 0x52b   :  { %v1579_v33 = vpack.c.bf16 %v1537_v35, %v1533_v23 }
 0x52c   :  { %v1541_v9 = vpop.f32.mrf.mxu0 }
 0x52d   :  { %1820 = vmatprep.mubr.bf16.mxu1 %v1579_v33  ;;  %v5021_v33 = vld [vmem:[%s7684_s0 + $0x28] sm:$0xff] }
 0x52e   :  { %v1543_v50 = vpop.f32.mrf.mxu0  ;;  %1821 = vmatmul.mubr.bf16.vlgmr.msra.gmra.mxu1 %v1578_v44 }
 0x530   :  { %v1545_v49 = vpop.f32.mrf.mxu0 }
 0x531   :  { %v1580_v37 = vpack.c.bf16 %v1545_v49, %v1541_v9  ;;  %v5022_v9 = vld [vmem:[%s7684_s0 + $0x20] sm:$0xff] }
 0x532   :  { %v1547_v6 = vpop.f32.mrf.mxu0 }
 0x533   :  { %v1581_v1 = vpack.c.bf16 %v1547_v6, %v1543_v50 }
 0x534   :  { %v1551_v41 = vpop.f32.mrf.mxu0 }
 0x535   :  { %1830 = vmatprep.mubr.bf16.mxu1 %v1581_v1 }
 0x536   :  { %v1553_v14 = vpop.f32.mrf.mxu0  ;;  %1831 = vmatmul.mubr.bf16.gmra.mxu1 %v1580_v37 }
 0x538   :  { %v1555_v46 = vpop.f32.mrf.mxu0 }
 0x539   :  { %v1582_v10 = vpack.c.bf16 %v1555_v46, %v1551_v41  ;;  %v5023_v46 = vld [vmem:[%s7684_s0 + $0x38] sm:$0xff] }
 0x53a   :  { %v1557_v40 = vpop.f32.mrf.mxu0 }
 0x53b   :  { %v1583_v42 = vpack.c.bf16 %v1557_v40, %v1553_v14 }
 0x53c   :  { %v1561_v59 = vpop.f32.mrf.mxu0 }
 0x53d   :  { %1840 = vmatprep.mubr.bf16.mxu1 %v1583_v42  ;;  %v5024_v42 = vld [vmem:[%s7684_s0 + $0x30] sm:$0xff] }
 0x53e   :  { %v1563_v28 = vpop.f32.mrf.mxu0  ;;  %1841 = vmatmul.mubr.bf16.gmra.mxu1 %v1582_v10 }
 0x540   :  { %v1565_v56 = vpop.f32.mrf.mxu0 }
 0x541   :  { %v1584_v39 = vpack.c.bf16 %v1565_v56, %v1561_v59 }
 0x542   :  { %v1567_v8 = vpop.f32.mrf.mxu0 }
 0x543   :  { %v1585_v16 = vpack.c.bf16 %v1567_v8, %v1563_v28 }
 0x544   :  { %v1571_v19 = vpop.f32.mrf.mxu0 }
 0x545   :  { %1850 = vmatprep.mubr.bf16.mxu1 %v1585_v16  ;;  %v1586_v29 = vpack.c.bf16 %v1571_v19, %v1571_v19  ;;  %v5025_v19 = vld [vmem:[%s7684_s0 + $0x48] sm:$0xff] }
 0x546   :  { %v1573_v22 = vpop.f32.mrf.mxu0  ;;  %1851 = vmatmul.mubr.bf16.gmra.mxu1 %v1584_v39 }
 0x547   :  { %v1587_v30 = vpack.c.bf16 %v1573_v22, %v1573_v22 }
 0x548   :  { %v1575_v18 = vpop.f32.mrf.mxu0 }
 0x549   :  { %1860 = vmatprep.mubr.bf16.mxu1 %v1587_v30  ;;  %v5026_v30 = vld [vmem:[%s7684_s0 + $0x40] sm:$0xff] }
 0x54a   :  { %v1576_v38 = vpop.f32.mrf.mxu0 }
 0x54e   :  { %1861 = vmatmul.mubr.bf16.gmra.mxu1 %v1586_v29 }
 0x5ee   :  { %v1822_v54 = vpop.f32.mrf.mxu1 }
 0x5ef   :  { %v1823_v58 = vadd.f32 %v1822_v54, %v6027_v17 }
 0x5f0   :  { %v1824_v2 = vpop.f32.mrf.mxu1 }
 0x5f1   :  { %v1825_v4 = vadd.f32 %v1824_v2, %v6036_v53  ;;  %v6048_v3 = vadd.f32 %v5018_v15, %v1823_v58  ;;  %v5028_v15 = vld [vmem:[%s7684_s0 + $0x50] sm:$0xff] }
 0x5f2   :  { %v1826_v47 = vpop.f32.mrf.mxu1 }
 0x5f3   :  { %v6043_v45 = vadd.f32 %v5017_v21, %v1825_v4  ;;  %7740 = vst [vmem:[#allocation6_spill] sm:$0xff] %v6048_v3  ;;  %v1827_v7 = vadd.f32 %v1826_v47, %v6027_v17  ;;  %v5027_v47 = vld [vmem:[%s7684_s0 + $0x58] sm:$0xff] }
 0x5f4   :  { %v1828_v12 = vpop.f32.mrf.mxu1 }
 0x5f5   :  { %7739 = vst [vmem:[#allocation5_spill] sm:$0xff] %v6043_v45  ;;  %v1829_v60 = vadd.f32 %v1828_v12, %v6036_v53  ;;  %v1887_v63 = vsel %vm58_vm0, %v6043_v45, 0.0  ;;  %v6063_v5 = vadd.f32 %v5020_v26, %v1827_v7  ;;  %v5029_v26 = vld [vmem:[%s7684_s0 + $0x68] sm:$0xff] }
 0x5f6   :  { %v1832_v48 = vpop.f32.mrf.mxu1  ;;  %v1888_v43 = vadd.f32 %v1887_v63, %v6048_v3 }
 0x5f7   :  { %v6058_v27 = vadd.f32 %v5019_v31, %v1829_v60  ;;  %7742 = vst [vmem:[#allocation8_spill] sm:$0xff] %v6063_v5  ;;  %v1833_v57 = vadd.f32 %v1832_v48, %v6027_v17 }
 0x5f8   :  { %v1834_v51 = vpop.f32.mrf.mxu1  ;;  %1889 = vadd.xlane.f32.xlu0 %v1888_v43 }
 0x5f9   :  { %7741 = vst [vmem:[#allocation7_spill] sm:$0xff] %v6058_v27  ;;  %v1835_v13 = vadd.f32 %v1834_v51, %v6036_v53  ;;  %v1891_v23 = vsel %vm58_vm0, %v6058_v27, 0.0  ;;  %v6078_v50 = vadd.f32 %v5022_v9, %v1833_v57  ;;  %v5030_v51 = vld [vmem:[%s7684_s0 + $0x60] sm:$0xff] }
 0x5fa   :  { %v1836_v25 = vpop.f32.mrf.mxu1  ;;  %v1892_v35 = vadd.f32 %v1891_v23, %v6063_v5 }
 0x5fb   :  { %v6073_v44 = vadd.f32 %v5021_v33, %v1835_v13  ;;  %7744 = vst [vmem:[#allocation10_spill] sm:$0xff] %v6078_v50  ;;  %v1837_v49 = vadd.f32 %v1836_v25, %v6027_v17 }
 0x5fc   :  { %v1838_v6 = vpop.f32.mrf.mxu1  ;;  %1893 = vadd.xlane.f32.xlu1 %v1892_v35 }
 0x5fd   :  { %7743 = vst [vmem:[#allocation9_spill] sm:$0xff] %v6073_v44  ;;  %v1839_v1 = vadd.f32 %v1838_v6, %v6036_v53  ;;  %v1895_v37 = vsel %vm58_vm0, %v6073_v44, 0.0  ;;  %v6093_v10 = vadd.f32 %v5024_v42, %v1837_v49  ;;  %v5031_v6 = vld [vmem:[%s7684_s0 + $0x78] sm:$0xff] }
 0x5fe   :  { %v1842_v41 = vpop.f32.mrf.mxu1  ;;  %v1896_v14 = vadd.f32 %v1895_v37, %v6078_v50  ;;  %v5032_v37 = vld [vmem:[%s7684_s0 + $0x70] sm:$0xff] }
 0x5ff   :  { %v6088_v40 = vadd.f32 %v5023_v46, %v1839_v1  ;;  %7746 = vst [vmem:[#allocation12_spill] sm:$0xff] %v6093_v10  ;;  %v1843_v59 = vadd.f32 %v1842_v41, %v6027_v17 }
 0x600   :  { %v1844_v28 = vpop.f32.mrf.mxu1  ;;  %1897 = vadd.xlane.f32.xlu0 %v1896_v14 }
 0x601   :  { %7745 = vst [vmem:[#allocation11_spill] sm:$0xff] %v6088_v40  ;;  %v1845_v56 = vadd.f32 %v1844_v28, %v6036_v53  ;;  %v1899_v8 = vsel %vm58_vm0, %v6088_v40, 0.0  ;;  %v6108_v18 = vadd.f32 %v5026_v30, %v1843_v59 }
 0x602   :  { %v1846_v16 = vpop.f32.mrf.mxu1  ;;  %v1900_v39 = vadd.f32 %v1899_v8, %v6093_v10  ;;  %v5033_v8 = vld [vmem:[%s7684_s0 + $0x88] sm:$0xff] }
 0x603   :  { %v6103_v22 = vadd.f32 %v5025_v19, %v1845_v56  ;;  %7748 = vst [vmem:[#allocation14_spill] sm:$0xff] %v6108_v18  ;;  %v1847_v38 = vadd.f32 %v1846_v16, %v6027_v17 }
 0x604   :  { %v1848_v29 = vpop.f32.mrf.mxu1  ;;  %1901 = vadd.xlane.f32.xlu1 %v1900_v39 }
 0x605   :  { %7747 = vst [vmem:[#allocation13_spill] sm:$0xff] %v6103_v22  ;;  %v1849_v54 = vadd.f32 %v1848_v29, %v6036_v53  ;;  %v1903_v58 = vsel %vm58_vm0, %v6103_v22, 0.0  ;;  %v6123_v7 = vadd.f32 %v5028_v15, %v1847_v38 }
 0x606   :  { %v1852_v2 = vpop.f32.mrf.mxu1  ;;  %v1904_v4 = vadd.f32 %v1903_v58, %v6108_v18 }
 0x607   :  { %v6118_v21 = vadd.f32 %v5027_v47, %v1849_v54  ;;  %7750 = vst [vmem:[#allocation16_spill] sm:$0xff] %v6123_v7  ;;  %v1853_v12 = vadd.f32 %v1852_v2, %v6027_v17 }
 0x608   :  { %v1854_v60 = vpop.f32.mrf.mxu1  ;;  %1905 = vadd.xlane.f32.xlu0 %v1904_v4 }
 0x609   :  { %7749 = vst [vmem:[#allocation15_spill] sm:$0xff] %v6118_v21  ;;  %v1855_v63 = vadd.f32 %v1854_v60, %v6036_v53  ;;  %v1907_v48 = vsel %vm58_vm0, %v6118_v21, 0.0  ;;  %v6138_v13 = vadd.f32 %v5030_v51, %v1853_v12 }
 0x60a   :  { %v1856_v43 = vpop.f32.mrf.mxu1  ;;  %v1908_v31 = vadd.f32 %v1907_v48, %v6123_v7 }
 0x60b   :  { %v6133_v57 = vadd.f32 %v5029_v26, %v1855_v63  ;;  %7752 = vst [vmem:[#allocation18_spill] sm:$0xff] %v6138_v13  ;;  %v1857_v23 = vadd.f32 %v1856_v43, %v6027_v17 }
 0x60c   :  { %v1858_v25 = vpop.f32.mrf.mxu1  ;;  %1909 = vadd.xlane.f32.xlu1 %v1908_v31 }
 0x60d   :  { %7751 = vst [vmem:[#allocation17_spill] sm:$0xff] %v6133_v57  ;;  %v1859_v35 = vadd.f32 %v1858_v25, %v6036_v53  ;;  %v1911_v33 = vsel %vm58_vm0, %v6133_v57, 0.0  ;;  %v6153_v41 = vadd.f32 %v5032_v37, %v1857_v23 }
 0x60e   :  { %v1862_v9 = vpop.f32.mrf.mxu1  ;;  %v1912_v49 = vadd.f32 %v1911_v33, %v6138_v13 }
 0x60f   :  { %v6148_v1 = vadd.f32 %v5031_v6, %v1859_v35  ;;  %7754 = vst [vmem:[#allocation20_spill] sm:$0xff] %v6153_v41  ;;  %v1863_v14 = vadd.f32 %v1862_v9, %v6027_v17  ;;  %v5034_v17 = vld [vmem:[%s7684_s0 + $0x80] sm:$0xff] }
 0x610   :  { %v1864_v46 = vpop.f32.mrf.mxu1  ;;  %1913 = vadd.xlane.f32.xlu0 %v1912_v49 }
 0x611   :  { %7753 = vst [vmem:[#allocation19_spill] sm:$0xff] %v6148_v1  ;;  %v1865_v42 = vadd.f32 %v1864_v46, %v6036_v53  ;;  %v1915_v59 = vsel %vm58_vm0, %v6148_v1, 0.0  ;;  %v6168_v39 = vadd.f32 %v5034_v17, %v1863_v14 }
 0x612   :  { %v1866_v28 = vpop.f32.mrf.mxu1  ;;  %v1916_v56 = vadd.f32 %v1915_v59, %v6153_v41 }
 0x613   :  { %v6163_v16 = vadd.f32 %v5033_v8, %v1865_v42  ;;  %7756 = vst [vmem:[#allocation22_spill] sm:$0xff] %v6168_v39 }
 0x614   :  { %v1867_v19 = vpop.f32.mrf.mxu1  ;;  %1917 = vadd.xlane.f32.xlu1 %v1916_v56 }
 0x615   :  { %7755 = vst [vmem:[#allocation21_spill] sm:$0xff] %v6163_v16  ;;  %v1919_v53 = vsel %vm58_vm0, %v6163_v16, 0.0 }
 0x616   :  { %v1920_v30 = vadd.f32 %v1919_v53, %v6168_v39 }
 0x618   :  { %1921 = vadd.xlane.f32.xlu0 %v1920_v30 }
 0x681   :  { %v1890_v38 = vpop.xlane.xlu0 %1889 }
 0x682   :  { %v1923_v29 = vmul.f32 0.0064102565, %v1890_v38 }
 0x684   :  { %v6174_v54 = vsub.f32 %v6048_v3, %v1923_v29  ;;  %v6177_v58 = vsub.f32 %v6043_v45, %v1923_v29 }
 0x685   :  { %v1894_v2 = vpop.xlane.xlu1 %1893 }
 0x686   :  { %v1924_v4 = vmul.f32 0.0064102565, %v1894_v2  ;;  %v1950_v47 = vmul.f32 %v6174_v54, %v6174_v54  ;;  %v1951_v15 = vmul.f32 %v6177_v58, %v6177_v58 }
 0x688   :  { %v6184_v12 = vsub.f32 %v6063_v5, %v1924_v4  ;;  %v6187_v60 = vsub.f32 %v6058_v27, %v1924_v4  ;;  %v1968_v48 = vsel %vm58_vm0, %v1951_v15, 0.0 }
 0x689   :  { %v1898_v63 = vpop.xlane.xlu0 %1897  ;;  %v1969_v31 = vadd.f32 %v1968_v48, %v1950_v47 }
 0x68a   :  { %v1925_v43 = vmul.f32 0.0064102565, %v1898_v63  ;;  %v1952_v26 = vmul.f32 %v6184_v12, %v6184_v12  ;;  %v1953_v51 = vmul.f32 %v6187_v60, %v6187_v60 }
 0x68b   :  { %1970 = vadd.xlane.f32.xlu1 %v1969_v31 }
 0x68c   :  { %v6195_v23 = vsub.f32 %v6078_v50, %v1925_v43  ;;  %v6198_v25 = vsub.f32 %v6073_v44, %v1925_v43  ;;  %v1972_v33 = vsel %vm58_vm0, %v1953_v51, 0.0 }
 0x68d   :  { %v1902_v35 = vpop.xlane.xlu1 %1901  ;;  %v1973_v49 = vadd.f32 %v1972_v33, %v1952_v26  ;;  %v4622_v33 = vld [vmem:[%s7689_s4 + $0x11c] ss:$20 sps:$4 sm:$0xff]  }
 0x68e   :  { %v1926_v9 = vmul.f32 0.0064102565, %v1902_v35  ;;  %v1954_v6 = vmul.f32 %v6195_v23, %v6195_v23  ;;  %v1955_v37 = vmul.f32 %v6198_v25, %v6198_v25  ;;  %2555 = vmatprep.subr.bf16.mxu0 %v4622_v33 }
 0x68f   :  { %1974 = vadd.xlane.f32.xlu0 %v1973_v49 }
 0x690   :  { %v6206_v14 = vsub.f32 %v6093_v10, %v1926_v9  ;;  %v6209_v46 = vsub.f32 %v6088_v40, %v1926_v9  ;;  %v1976_v59 = vsel %vm58_vm0, %v1955_v37, 0.0 }
 0x691   :  { %v1906_v42 = vpop.xlane.xlu0 %1905  ;;  %v1977_v56 = vadd.f32 %v1976_v59, %v1954_v6  ;;  %v4620_v6 = vld [vmem:[%s7689_s4 + $0x118] ss:$20 sps:$4 sm:$0xff]   ;;  %v4623_v59 = vld [vmem:[%s7689_s4 + $0x120] ss:$20 sps:$4 sm:$0xff]  }
 0x692   :  { %v1927_v28 = vmul.f32 0.0064102565, %v1906_v42  ;;  %v1956_v8 = vmul.f32 %v6206_v14, %v6206_v14  ;;  %v1957_v17 = vmul.f32 %v6209_v46, %v6209_v46  ;;  %2556 = vmatpush1.bf16.msra.mxu0 %v4620_v6  ;;  %v4634_v6 = vld [vmem:[%s7689_s4 + $0xcc] ss:$20 sps:$4 sm:$0xff]  }
 0x693   :  { %1978 = vadd.xlane.f32.xlu1 %v1977_v56 }
 0x694   :  { %v6217_v19 = vsub.f32 %v6108_v18, %v1927_v28  ;;  %v6220_v53 = vsub.f32 %v6103_v22, %v1927_v28  ;;  %v1980_v38 = vsel %vm58_vm0, %v1957_v17, 0.0  ;;  %v4625_v28 = vld [vmem:[%s7689_s4 + $0x124] ss:$20 sps:$4 sm:$0xff]  }
 0x695   :  { %v1910_v30 = vpop.xlane.xlu1 %1909  ;;  %v1981_v2 = vadd.f32 %v1980_v38, %v1956_v8  ;;  %2636 = vmatprep.subr.bf16.mxu1 %v4625_v28  ;;  %v4628_v38 = vld [vmem:[%s7689_s4 + $0xf4] ss:$20 sps:$4 sm:$0xff]  }
 0x696   :  { %v1928_v29 = vmul.f32 0.0064102565, %v1910_v30  ;;  %v1958_v4 = vmul.f32 %v6217_v19, %v6217_v19  ;;  %v1959_v47 = vmul.f32 %v6220_v53, %v6220_v53  ;;  %2637 = vmatpush1.bf16.msra.mxu1 %v4623_v59  ;;  %2557 = vmatprep.subr.bf16.mxu0 %v4628_v38  ;;  %v4632_v28 = vld [vmem:[%s7689_s4 + $0xc8] ss:$20 sps:$4 sm:$0xff]  }
 0x697   :  { %1982 = vadd.xlane.f32.xlu0 %v1981_v2 }
 0x698   :  { %v6228_v15 = vsub.f32 %v6123_v7, %v1928_v29  ;;  %v6231_v63 = vsub.f32 %v6118_v21, %v1928_v29  ;;  %v1984_v43 = vsel %vm58_vm0, %v1959_v47, 0.0  ;;  %v4631_v29 = vld [vmem:[%s7689_s4 + $0xfc] ss:$20 sps:$4 sm:$0xff]  }
 0x699   :  { %v1914_v48 = vpop.xlane.xlu0 %1913  ;;  %v1985_v26 = vadd.f32 %v1984_v43, %v1958_v4  ;;  %v4626_v47 = vld [vmem:[%s7689_s4 + $0xf0] ss:$20 sps:$4 sm:$0xff]   ;;  %2638 = vmatprep.subr.bf16.mxu1 %v4631_v29 }
 0x69a   :  { %v1929_v31 = vmul.f32 0.0064102565, %v1914_v48  ;;  %v1960_v51 = vmul.f32 %v6228_v15, %v6228_v15  ;;  %v1961_v35 = vmul.f32 %v6231_v63, %v6231_v63  ;;  %v4629_v48 = vld [vmem:[%s7689_s4 + $0xf8] ss:$20 sps:$4 sm:$0xff]   ;;  %2558 = vmatpush1.bf16.msra.mxu0 %v4626_v47 }
 0x69b   :  { %1986 = vadd.xlane.f32.xlu1 %v1985_v26  ;;  %2639 = vmatpush1.bf16.msra.mxu1 %v4629_v48  ;;  %v4640_v29 = vld [vmem:[%s7689_s4 + $0xa4] ss:$20 sps:$4 sm:$0xff]   ;;  %v4643_v47 = vld [vmem:[%s7689_s4 + $0xac] ss:$20 sps:$4 sm:$0xff]  }
 0x69c   :  { %v6242_v9 = vsub.f32 %v6138_v13, %v1929_v31  ;;  %v6245_v49 = vsub.f32 %v6133_v57, %v1929_v31  ;;  %v1988_v42 = vsel %vm58_vm0, %v1961_v35, 0.0  ;;  %2559 = vmatprep.subr.bf16.mxu0 %v4634_v6  ;;  %v4647_v6 = vld [vmem:[%s7689_s4 + $0x80] ss:$20 sps:$4 sm:$0xff]  }
 0x69d   :  { %v1918_v37 = vpop.xlane.xlu1 %1917  ;;  %v1989_v8 = vadd.f32 %v1988_v42, %v1960_v51 }
 0x69e   :  { %v1930_v56 = vmul.f32 0.0064102565, %v1918_v37  ;;  %v1962_v17 = vmul.f32 %v6242_v9, %v6242_v9  ;;  %v1963_v30 = vmul.f32 %v6245_v49, %v6245_v49  ;;  %v4637_v37 = vld [vmem:[%s7689_s4 + $0xd4] ss:$20 sps:$4 sm:$0xff]   ;;  %2560 = vmatpush1.bf16.msra.mxu0 %v4632_v28  ;;  %v4655_v28 = vld [vmem:[%s7689_s4 + $0x5c] ss:$20 sps:$4 sm:$0xff]  }
 0x69f   :  { %1990 = vadd.xlane.f32.xlu0 %v1989_v8  ;;  %2640 = vmatprep.subr.bf16.mxu1 %v4637_v37  ;;  %v4652_v37 = vld [vmem:[%s7689_s4 + $0x54] ss:$20 sps:$4 sm:$0xff]  }
 0x6a0   :  { %v6268_v2 = vsub.f32 %v6153_v41, %v1930_v56  ;;  %v6271_v4 = vsub.f32 %v6148_v1, %v1930_v56  ;;  %v1992_v31 = vsel %vm58_vm0, %v1963_v30, 0.0  ;;  %v4635_v56 = vld [vmem:[%s7689_s4 + $0xd0] ss:$20 sps:$4 sm:$0xff]   ;;  %2561 = vmatprep.subr.bf16.mxu0 %v4640_v29 }
 0x6a1   :  { %v1922_v43 = vpop.xlane.xlu0 %1921  ;;  %v1993_v51 = vadd.f32 %v1992_v31, %v1962_v17  ;;  %2641 = vmatpush1.bf16.msra.mxu1 %v4635_v56  ;;  %v4641_v31 = vld [vmem:[%s7689_s4 + $0xa8] ss:$20 sps:$4 sm:$0xff]   ;;  %v4650_v56 = vld [vmem:[%s7689_s4 + $0x50] ss:$20 sps:$4 sm:$0xff]  }
 0x6a2   :  { %v1931_v26 = vmul.f32 0.0064102565, %v1922_v43  ;;  %v1964_v35 = vmul.f32 %v6268_v2, %v6268_v2  ;;  %v1965_v33 = vmul.f32 %v6271_v4, %v6271_v4  ;;  %v4638_v43 = vld [vmem:[%s7689_s4 + $0xa0] ss:$20 sps:$4 sm:$0xff]   ;;  %2642 = vmatprep.subr.bf16.mxu1 %v4643_v47  ;;  %v4659_v29 = vld [vmem:[%s7689_s4 + $0x30] ss:$20 sps:$4 sm:$0xff]  }
 0x6a3   :  { %1994 = vadd.xlane.f32.xlu1 %v1993_v51  ;;  %2562 = vmatpush1.bf16.msra.mxu0 %v4638_v43  ;;  %v4646_v51 = vld [vmem:[%s7689_s4 + $0x7c] ss:$20 sps:$4 sm:$0xff]   ;;  %v4664_v47 = vld [vmem:[%s7689_s4 + $0x4] ss:$20 sps:$4 sm:$0xff]   ;;  %v4662_v43 = vld [vmem:[%s7689_s4] ss:$20 sps:$4 sm:$0xff]  }
 0x6a4   :  { %v6291_v42 = vsub.f32 %v6168_v39, %v1931_v26  ;;  %v6294_v59 = vsub.f32 %v6163_v16, %v1931_v26  ;;  %v1996_v8 = vsel %vm58_vm0, %v1965_v33, 0.0  ;;  %v4644_v33 = vld [vmem:[%s7689_s4 + $0x78] ss:$20 sps:$4 sm:$0xff]   ;;  %2563 = vmatprep.subr.bf16.mxu0 %v4646_v51  ;;  %v4670_v51 = vld [vmem:[%s7689_s4 + $0x174] ss:$20 sps:$4 sm:$0x3f]  }
 0x6a5   :  { %v1997_v17 = vadd.f32 %v1996_v8, %v1964_v35  ;;  %2643 = vmatpush1.bf16.msra.mxu1 %v4641_v31  ;;  %v4649_v35 = vld [vmem:[%s7689_s4 + $0x84] ss:$20 sps:$4 sm:$0xff]   ;;  %v4665_v31 = vld [vmem:[%s7689_s4 + $0x8] ss:$20 sps:$4 sm:$0xff]  }
 0x6a6   :  { %v1966_v30 = vmul.f32 %v6291_v42, %v6291_v42  ;;  %v1967_v38 = vmul.f32 %v6294_v59, %v6294_v59  ;;  %2644 = vmatprep.subr.bf16.mxu1 %v4649_v35  ;;  %v4653_v8 = vld [vmem:[%s7689_s4 + $0x58] ss:$20 sps:$4 sm:$0xff]   ;;  %v4672_v35 = vld [vmem:[%s7689_s4 + $0x168] ss:$20 sps:$4 sm:$0x3f]  }
 0x6a7   :  { %1998 = vadd.xlane.f32.xlu0 %v1997_v17  ;;  %2564 = vmatpush1.bf16.msra.mxu0 %v4644_v33  ;;  %v4658_v17 = vld [vmem:[%s7689_s4 + $0x2c] ss:$20 sps:$4 sm:$0xff]   ;;  %v4673_v33 = vld [vmem:[%s7689_s4 + $0x170] ss:$20 sps:$4 sm:$0x3f]  }
 0x6a8   :  { %v2000_v48 = vsel %vm58_vm0, %v1967_v38, 0.0  ;;  %2565 = vmatprep.subr.bf16.mxu0 %v4652_v37  ;;  %v4656_v38 = vld [vmem:[%s7689_s4 + $0x28] ss:$20 sps:$4 sm:$0xff]   ;;  %v2547_v37 = vsel %vm758_vm1, %v4673_v33, 0 }
 0x6a9   :  { %v2001_v26 = vadd.f32 %v2000_v48, %v1966_v30  ;;  %2645 = vmatpush1.bf16.msra.mxu1 %v4647_v6  ;;  %v4661_v30 = vld [vmem:[%s7689_s4 + $0x34] ss:$20 sps:$4 sm:$0xff]   ;;  %v4667_v48 = vld [vmem:[%s7689_s4 + $0xc] ss:$20 sps:$4 sm:$0xff]   ;;  %v2541_v6 = vsel %vm758_vm1, %v4672_v35, 0 }
 0x6aa   :  { %2646 = vmatprep.subr.bf16.mxu1 %v4655_v28  ;;  %v4676_v28 = vld [vmem:[%s7689_s4 + $0x144] ss:$20 sps:$4 sm:$0xff]  }
 0x6ab   :  { %2002 = vadd.xlane.f32.xlu1 %v2001_v26  ;;  %2566 = vmatpush1.bf16.msra.mxu0 %v4650_v56  ;;  %v4668_v26 = vld [vmem:[%s7689_s4 + $0x16c] ss:$20 sps:$4 sm:$0x3f]  }
 0x6ac   :  { %2567 = vmatprep.subr.bf16.mxu0 %v4658_v17  ;;  %v4679_v56 = vld [vmem:[%s7689_s4 + $0x14c] ss:$20 sps:$4 sm:$0xff]   ;;  %v4677_v17 = vld [vmem:[%s7689_s4 + $0x148] ss:$20 sps:$4 sm:$0xff]  }
 0x6ad   :  { %2647 = vmatpush1.bf16.msra.mxu1 %v4653_v8  ;;  %v4674_v8 = vld [vmem:[%s7689_s4 + $0x140] ss:$20 sps:$4 sm:$0xff]  }
 0x6ae   :  { %2648 = vmatprep.subr.bf16.mxu1 %v4661_v30  ;;  %v4692_v30 = vld [vmem:[%s7690_s6 + $0x74] ss:$8 sps:$4 sm:$0xff]  }
 0x6af   :  { %2568 = vmatpush1.bf16.msra.mxu0 %v4656_v38 }
 0x6b0   :  { %2569 = vmatprep.subr.bf16.mxu0 %v4664_v47 }
 0x6b1   :  { %2649 = vmatpush1.bf16.msra.mxu1 %v4659_v29 }
 0x6b2   :  { %2650 = vmatprep.subr.bf16.mxu1 %v4667_v48 }
 0x6b3   :  { %2570 = vmatpush1.bf16.msra.mxu0 %v4662_v43 }
 0x6b4   :  { %4365 = vmatprep.subr.msk.bf16.mxu0 %vm758_vm1, %v4668_v26 }
 0x6b5   :  { %2651 = vmatpush1.bf16.msra.mxu1 %v4665_v31 }
 0x6b6   :  { %4371 = vmatprep.subr.msk.bf16.mxu1 %vm758_vm1, %v4670_v51 }
 0x6b7   :  { %2584 = vmatpush2.bf16.msra.mxu0 %v2541_v6 }
 0x6b8   :  { %2585 = vmatprep.subr.bf16.mxu0 %v4676_v28 }
 0x6b9   :  { %2665 = vmatpush2.bf16.msra.mxu1 %v2547_v37 }
 0x6ba   :  { %2666 = vmatprep.subr.bf16.mxu1 %v4679_v56 }
 0x6bb   :  { %2586 = vmatpush2.bf16.msra.mxu0 %v4674_v8 }
 0x6bc   :  { %2717 = vmatprep.subr.bf16.mxu0 %v7697_v52 }
 0x6bd   :  { %2667 = vmatpush2.bf16.msra.mxu1 %v4677_v17 }
 0x6be   :  { %3711 = vmatprep.subr.bf16.mxu1 %v4692_v30 }
 0x714   :  { %v1971_v38 = vpop.xlane.xlu1 %1970 }
 0x715   :  { %v2004_v29 = vmul.f32 0.006451613, %v1971_v38 }
 0x717   :  { %4889 = vrsqrt.f32 %v2004_v29  ;;  %vm2015_vm4 = vcmp.eq.f32.partialorder %v2004_v29, inf  ;;  %v2018_v28 = vand.u32 2147483648, %v2004_v29  ;;  %vm2017_vm7 = vcmp.eq.f32.partialorder %v2004_v29, 0.0 }
 0x718   :  { %v1975_v47 = vpop.xlane.xlu0 %1974 }
 0x719   :  { %v2005_v48 = vmul.f32 0.006451613, %v1975_v47 }
 0x71b   :  { %4891 = vrsqrt.f32 %v2005_v48  ;;  %vm2022_vm8 = vcmp.eq.f32.partialorder %v2005_v48, inf  ;;  %vm2024_vm9 = vcmp.eq.f32.partialorder %v2005_v48, 0.0 }
 0x71c   :  { %v1979_v43 = vpop.xlane.xlu1 %1978 }
 0x71d   :  { %v2006_v31 = vmul.f32 0.006451613, %v1979_v43  ;;  %v2025_v43 = vand.u32 2147483648, %v2005_v48 }
 0x71f   :  { %4893 = vrsqrt.f32 %v2006_v31  ;;  %vm2029_vm10 = vcmp.eq.f32.partialorder %v2006_v31, inf  ;;  %vm2031_vm11 = vcmp.eq.f32.partialorder %v2006_v31, 0.0 }
 0x720   :  { %v1983_v26 = vpop.xlane.xlu0 %1982 }
 0x721   :  { %v2007_v51 = vmul.f32 0.006451613, %v1983_v26 }
 0x723   :  { %4895 = vrsqrt.f32 %v2007_v51  ;;  %vm2036_vm12 = vcmp.eq.f32.partialorder %v2007_v51, inf  ;;  %vm2038_vm13 = vcmp.eq.f32.partialorder %v2007_v51, 0.0 }
 0x724   :  { %v4890_v35 = vpop.eup %4889  ;;  %v1987_v33 = vpop.xlane.xlu1 %1986 }
 0x725   :  { %v2014_v6 = vmul.f32 %v4890_v35, %v2004_v29  ;;  %v2008_v37 = vmul.f32 0.006451613, %v1987_v33 }
 0x727   :  { %v2016_v56 = vsel %vm2015_vm4, %v2004_v29, %v2014_v6  ;;  %4897 = vrsqrt.f32 %v2008_v37  ;;  %vm2043_vm14 = vcmp.eq.f32.partialorder %v2008_v37, inf  ;;  %vm2045_vm15 = vcmp.eq.f32.partialorder %v2008_v37, 0.0 }
 0x728   :  { %v4892_v8 = vpop.eup %4891  ;;  %v2019_v17 = vsel %vm2017_vm7, %v2018_v28, %v2016_v56  ;;  %v1991_v30 = vpop.xlane.xlu0 %1990  ;;  %v2032_v28 = vand.u32 2147483648, %v2006_v31 }
 0x729   :  { %v2076_v38 = vadd.f32 1e-06, %v2019_v17  ;;  %v2021_v47 = vmul.f32 %v4892_v8, %v2005_v48  ;;  %v6400_v52 = vmul.f32 0.006451613, %v1991_v30 }
 0x72b   :  { %4899 = vrcp.f32 %v2076_v38  ;;  %v2023_v26 = vsel %vm2022_vm8, %v2005_v48, %v2021_v47  ;;  %vm2050_vm2 = vcmp.eq.f32.partialorder %v6400_v52, inf  ;;  %vm2052_vm3 = vcmp.eq.f32.partialorder %v6400_v52, 0.0 }
 0x72c   :  { %v4894_v55 = vpop.eup %4893  ;;  %v2026_v35 = vsel %vm2024_vm9, %v2025_v43, %v2023_v26  ;;  %4901 = vrsqrt.f32 %v6400_v52  ;;  %v1995_v33 = vpop.xlane.xlu1 %1994  ;;  %v2039_v43 = vand.u32 2147483648, %v2007_v51 }
 0x72d   :  { %v2077_v6 = vadd.f32 1e-06, %v2026_v35  ;;  %v2028_v29 = vmul.f32 %v4894_v55, %v2006_v31  ;;  %v6403_v20 = vmul.f32 0.006451613, %v1995_v33  ;;  %v6410_v35 = vrot.slane %v6023_v11, %v5709_v62 }
 0x72f   :  { %4903 = vrcp.f32 %v2077_v6  ;;  %v2030_v56 = vsel %vm2029_vm10, %v2006_v31, %v2028_v29  ;;  %v6415_v6 = vrot.slane %v6032_v61, %v5709_v62  ;;  %vm2057_vm4 = vcmp.eq.f32.partialorder %v6403_v20, inf }
 0x730   :  { %v4896_v8 = vpop.eup %4895  ;;  %v2033_v17 = vsel %vm2031_vm11, %v2032_v28, %v2030_v56  ;;  %4905 = vrsqrt.f32 %v6403_v20  ;;  %v1999_v30 = vpop.xlane.xlu0 %1998  ;;  %v2060_v16 = vand.u32 2147483648, %v6403_v20  ;;  %vm2059_vm7 = vcmp.eq.f32.partialorder %v6403_v20, 0.0 }
 0x731   :  { %v2078_v48 = vadd.f32 1e-06, %v2033_v17  ;;  %v2035_v38 = vmul.f32 %v4896_v8, %v2007_v51  ;;  %v6406_v47 = vmul.f32 0.006451613, %v1999_v30  ;;  %v2046_v8 = vand.u32 2147483648, %v2008_v37 }
 0x733   :  { %4907 = vrcp.f32 %v2078_v48  ;;  %v2037_v55 = vsel %vm2036_vm12, %v2007_v51, %v2035_v38  ;;  %v2111_v38 = vmul.f32 %v6410_v35, %v6174_v54  ;;  %v2053_v54 = vand.u32 2147483648, %v6400_v52 }
 0x734   :  { %v4898_v26 = vpop.eup %4897  ;;  %v2040_v31 = vsel %vm2038_vm13, %v2039_v43, %v2037_v55  ;;  %4909 = vrsqrt.f32 %v6406_v47  ;;  %v2003_v33 = vpop.xlane.xlu1 %2002  ;;  %v2112_v43 = vmul.f32 %v6415_v6, %v6177_v58  ;;  %v2113_v55 = vmul.f32 %v6410_v35, %v6184_v12 }
 0x735   :  { %v2079_v29 = vadd.f32 1e-06, %v2040_v31  ;;  %v2042_v28 = vmul.f32 %v4898_v26, %v2008_v37  ;;  %v6417_v56 = vmul.f32 0.006451613, %v2003_v33  ;;  %v2114_v31 = vmul.f32 %v6415_v6, %v6187_v60 }
 0x736   :  { %v6431_v33 = vrot.slane %v6032_v61, %v5712_v0  ;;  %vm2064_vm8 = vcmp.eq.f32.partialorder %v6406_v47, inf  ;;  %vm2066_vm9 = vcmp.eq.f32.partialorder %v6406_v47, 0.0  ;;  %vm3695_vm12 = vcmask 916480  }
 0x737   :  { %4911 = vrcp.f32 %v2079_v29  ;;  %v2044_v51 = vsel %vm2043_vm14, %v2008_v37, %v2042_v28  ;;  %v6435_v29 = vrot.slane %v6023_v11, %v5712_v0  ;;  %vm2071_vm10 = vcmp.eq.f32.partialorder %v6417_v56, inf }
 0x738   :  { %v4900_v17 = vpop.eup %4899  ;;  %v2047_v30 = vsel %vm2045_vm15, %v2046_v8, %v2044_v51  ;;  %4913 = vrsqrt.f32 %v6417_v56  ;;  %vm2073_vm11 = vcmp.eq.f32.partialorder %v6417_v56, 0.0 }
 0x739   :  { %v4902_v48 = vpop.eup %4901  ;;  %v2080_v26 = vadd.f32 1e-06, %v2047_v30  ;;  %v2130_v58 = vmul.f32 %v4900_v17, %v2112_v43  ;;  %v2129_v12 = vmul.f32 %v4900_v17, %v2111_v38 }
 0x73a   :  { %v2049_v37 = vmul.f32 %v4902_v48, %v6400_v52 }
 0x73b   :  { %4915 = vrcp.f32 %v2080_v26  ;;  %v2156_v43 = vadd.f32 %v6431_v33, %v2130_v58  ;;  %v2155_v38 = vadd.f32 %v6435_v29, %v2129_v12  ;;  %v4680_v12 = vld [vmem:[%s7689_s4 + $0x128] ss:$20 sps:$4 sm:$0xff]  }
 0x73c   :  { %v4904_v28 = vpop.eup %4903  ;;  %v2051_v60 = vsel %vm2050_vm2, %v6400_v52, %v2049_v37 }
 0x73d   :  { %v4906_v8 = vpop.eup %4905  ;;  %v2054_v51 = vsel %vm2052_vm3, %v2053_v54, %v2051_v60  ;;  %v2132_v61 = vmul.f32 %v4904_v28, %v2114_v31  ;;  %v2131_v30 = vmul.f32 %v4904_v28, %v2113_v55  ;;  %v2115_v31 = vmul.f32 %v6410_v35, %v6195_v23  ;;  %v4690_v23 = vld [vmem:[%s7690_s6 + $0x70] ss:$8 sps:$4 sm:$0xff]  }
 0x73e   :  { %v2081_v48 = vadd.f32 1e-06, %v2054_v51  ;;  %v2056_v11 = vmul.f32 %v4906_v8, %v6403_v20  ;;  %v2116_v54 = vmul.f32 %v6415_v6, %v6198_v25  ;;  %v2118_v8 = vmul.f32 %v6415_v6, %v6209_v46  ;;  %v4698_v51 = vld [vmem:[%s7690_s6 + $0x64] ss:$8 sps:$4 sm:$0xff]  }
 0x73f   :  { %v2158_v17 = vadd.f32 %v6431_v33, %v2132_v61  ;;  %v2157_v26 = vadd.f32 %v6435_v29, %v2131_v30  ;;  %v2067_v61 = vand.u32 2147483648, %v6406_v47 }
 0x740   :  { %v4908_v52 = vpop.eup %4907  ;;  %4917 = vrcp.f32 %v2081_v48  ;;  %v2058_v55 = vsel %vm2057_vm4, %v6403_v20, %v2056_v11  ;;  %v2117_v20 = vmul.f32 %v6410_v35, %v6206_v14 }
 0x741   :  { %v4910_v37 = vpop.eup %4909  ;;  %v2061_v58 = vsel %vm2059_vm7, %v2060_v16, %v2058_v55  ;;  %v6454_v28 = vpack.c.bf16 %v2158_v17, %v2156_v43  ;;  %v6456_v60 = vpack.c.bf16 %v2157_v26, %v2155_v38  ;;  %v2134_v14 = vmul.f32 %v4908_v52, %v2116_v54  ;;  %v4681_v17 = vld [vmem:[%s7689_s4 + $0x100] ss:$20 sps:$4 sm:$0xff]  }
 0x742   :  { %v2082_v25 = vadd.f32 1e-06, %v2061_v58  ;;  %v2063_v16 = vmul.f32 %v4910_v37, %v6406_v47  ;;  %v2133_v30 = vmul.f32 %v4908_v52, %v2115_v31  ;;  %v7757_v55 = vmov 0   ;;  %v4696_v37 = vld [vmem:[%s7690_s6 + $0x60] ss:$8 sps:$4 sm:$0xff]  }
 0x743   :  { %4366 = vmatprep.mubr.msk.bf16.mxu0 %vm58_vm0, %v6454_v28  ;;  %4372 = vmatprep.mubr.msk.bf16.mxu1 %vm58_vm0, %v6454_v28  ;;  %v2160_v54 = vadd.f32 %v6431_v33, %v2134_v14  ;;  %v4704_v14 = vld [vmem:[%s7690_s6 + $0x54] ss:$8 sps:$4 sm:$0xff]  }
 0x744   :  { %v4912_v46 = vpop.eup %4911  ;;  %4919 = vrcp.f32 %v2082_v25  ;;  %v2065_v48 = vsel %vm2064_vm8, %v6406_v47, %v2063_v16  ;;  %2588 = vmatmul.mubr.bf16.vlgmr.msra.gmra.mxu0 %v6456_v60  ;;  %2669 = vmatmul.mubr.bf16.vlgmr.msra.gmra.mxu1 %v6456_v60  ;;  %v2074_v47 = vand.u32 2147483648, %v6417_v56 }
 0x745   :  { %v4914_v11 = vpop.eup %4913  ;;  %v2068_v43 = vsel %vm2066_vm9, %v2067_v61, %v2065_v48  ;;  %2718 = vmatpush1.bf16.msra.mxu0 %v4680_v12  ;;  %v2136_v38 = vmul.f32 %v4912_v46, %v2118_v8  ;;  %v2135_v26 = vmul.f32 %v4912_v46, %v2117_v20  ;;  %3712 = vmatpush1.bf16.msra.mxu1 %v4690_v23  ;;  %v4702_v48 = vld [vmem:[%s7690_s6 + $0x50] ss:$8 sps:$4 sm:$0xff]  }
 0x746   :  { %v2083_v52 = vadd.f32 1e-06, %v2068_v43  ;;  %v2070_v31 = vmul.f32 %v4914_v11, %v6417_v56  ;;  %2719 = vmatprep.subr.bf16.mxu0 %v7757_v55  ;;  %3713 = vmatprep.subr.bf16.mxu1 %v4698_v51  ;;  %v2159_v12 = vadd.f32 %v6435_v29, %v2133_v30  ;;  %v4682_v51 = vld [vmem:[%s7689_s4 + $0xd8] ss:$20 sps:$4 sm:$0xff]   ;;  %v2119_v30 = vmul.f32 %v6410_v35, %v6217_v19 }
 0x747   :  { %v2162_v58 = vadd.f32 %v6431_v33, %v2136_v38  ;;  %v2161_v23 = vadd.f32 %v6435_v29, %v2135_v26  ;;  %v2121_v11 = vmul.f32 %v6410_v35, %v6228_v15  ;;  %v4710_v19 = vld [vmem:[%s7690_s6 + $0x44] ss:$8 sps:$4 sm:$0xff]  }
 0x748   :  { %4921 = vrcp.f32 %v2083_v52  ;;  %v2072_v20 = vsel %vm2071_vm10, %v6417_v56, %v2070_v31  ;;  %v4916_v8 = vpop.eup %4915  ;;  %v2120_v56 = vmul.f32 %v6415_v6, %v6220_v53  ;;  %v2122_v53 = vmul.f32 %v6415_v6, %v6231_v63  ;;  %v4683_v38 = vld [vmem:[%s7689_s4 + $0xb0] ss:$20 sps:$4 sm:$0xff]   ;;  %v4708_v63 = vld [vmem:[%s7690_s6 + $0x40] ss:$8 sps:$4 sm:$0xff]  }
 0x749   :  { %v2075_v25 = vsel %vm2073_vm11, %v2074_v47, %v2072_v20  ;;  %2720 = vmatpush1.bf16.msra.mxu0 %v4681_v17  ;;  %v6498_v16 = vpack.c.bf16 %v2162_v58, %v2160_v54  ;;  %v6500_v61 = vpack.c.bf16 %v2161_v23, %v2159_v12  ;;  %3714 = vmatpush1.bf16.msra.mxu1 %v4696_v37 }
 0x74a   :  { %v2084_v46 = vadd.f32 1e-06, %v2075_v25  ;;  %2721 = vmatprep.subr.bf16.mxu0 %v7757_v55  ;;  %v2138_v43 = vmul.f32 %v4916_v8, %v2120_v56  ;;  %v2137_v15 = vmul.f32 %v4916_v8, %v2119_v30  ;;  %3715 = vmatprep.subr.bf16.mxu1 %v4704_v14  ;;  %v2123_v12 = vmul.f32 %v6410_v35, %v6242_v9  ;;  %v4684_v25 = vld [vmem:[%s7689_s4 + $0x88] ss:$20 sps:$4 sm:$0xff]  }
 0x74b   :  { %4367 = vmatprep.mubr.msk.bf16.mxu0 %vm58_vm0, %v6498_v16  ;;  %4373 = vmatprep.mubr.msk.bf16.mxu1 %vm58_vm0, %v6498_v16  ;;  %v2124_v23 = vmul.f32 %v6415_v6, %v6245_v49  ;;  %v2125_v9 = vmul.f32 %v6410_v35, %v6268_v2  ;;  %v4714_v49 = vld [vmem:[%s7690_s6 + $0x30] ss:$8 sps:$4 sm:$0xff]   ;;  %v2126_v14 = vmul.f32 %v6415_v6, %v6271_v4  ;;  %v4722_v2 = vld [vmem:[%s7690_s6 + $0x24] ss:$8 sps:$4 sm:$0xff]   ;;  %v4685_v4 = vld [vmem:[%s7689_s4 + $0x60] ss:$20 sps:$4 sm:$0xff]  }
 0x74c   :  { %4923 = vrcp.f32 %v2084_v46  ;;  %2598 = vmatmul.mubr.bf16.gmra.mxu0 %v6500_v61  ;;  %2679 = vmatmul.mubr.bf16.gmra.mxu1 %v6500_v61  ;;  %v2164_v31 = vadd.f32 %v6431_v33, %v2138_v43  ;;  %v2163_v37 = vadd.f32 %v6435_v29, %v2137_v15 }
 0x74d   :  { %v4918_v17 = vpop.eup %4917  ;;  %2722 = vmatpush1.bf16.msra.mxu0 %v4682_v51  ;;  %3716 = vmatpush1.bf16.msra.mxu1 %v4702_v48  ;;  %v4716_v51 = vld [vmem:[%s7690_s6 + $0x34] ss:$8 sps:$4 sm:$0xff]  }
 0x74e   :  { %2723 = vmatprep.subr.bf16.mxu0 %v7757_v55  ;;  %v2140_v26 = vmul.f32 %v4918_v17, %v2122_v53  ;;  %v2139_v52 = vmul.f32 %v4918_v17, %v2121_v11  ;;  %3717 = vmatprep.subr.bf16.mxu1 %v4710_v19  ;;  %v2128_v19 = vmul.f32 %v6415_v6, %v6294_v59  ;;  %v4720_v53 = vld [vmem:[%s7690_s6 + $0x20] ss:$8 sps:$4 sm:$0xff]  }
 0x74f   :  { %v2127_v59 = vmul.f32 %v6410_v35, %v6291_v42  ;;  %v4687_v35 = vld [vmem:[%s7689_s4 + $0x10] ss:$20 sps:$4 sm:$0xff]  }
 0x750   :  { %v2166_v47 = vadd.f32 %v6431_v33, %v2140_v26  ;;  %v2165_v54 = vadd.f32 %v6435_v29, %v2139_v52 }
 0x751   :  { %v4920_v58 = vpop.eup %4919  ;;  %2724 = vmatpush1.bf16.msra.mxu0 %v4683_v38  ;;  %3718 = vmatpush1.bf16.msra.mxu1 %v4708_v63  ;;  %v4686_v63 = vld [vmem:[%s7689_s4 + $0x38] ss:$20 sps:$4 sm:$0xff]  }
 0x752   :  { %v6544_v20 = vpack.c.bf16 %v2166_v47, %v2164_v31  ;;  %v6546_v8 = vpack.c.bf16 %v2165_v54, %v2163_v37  ;;  %2725 = vmatprep.subr.bf16.mxu0 %v7757_v55  ;;  %v2142_v30 = vmul.f32 %v4920_v58, %v2124_v23  ;;  %v2141_v56 = vmul.f32 %v4920_v58, %v2123_v12  ;;  %v4688_v58 = vld [vmem:[%s7689_s4 + $0x178] ss:$20 sps:$4 sm:$0x3f]   ;;  %v4695_v23 = vld [vmem:[%s7690_s6 + $0x174] ss:$8 sps:$4 sm:$0xff]  }
 0x753   :  { %3719 = vmatprep.subr.bf16.mxu1 %v4716_v51  ;;  %v2553_v12 = vsel %vm758_vm1, %v4688_v58, 0  ;;  %v4699_v51 = vld [vmem:[%s7690_s6 + $0x160] ss:$8 sps:$4 sm:$0xff]   ;;  %v4764_v58 = vld [vmem:[%s7690_s6 + $0xb4] ss:$8 sps:$4 sm:$0xff]  }
 0x754   :  { %4368 = vmatprep.mubr.msk.bf16.mxu0 %vm58_vm0, %v6544_v20  ;;  %4374 = vmatprep.mubr.msk.bf16.mxu1 %vm58_vm0, %v6544_v20  ;;  %v2168_v43 = vadd.f32 %v6431_v33, %v2142_v30  ;;  %v2167_v17 = vadd.f32 %v6435_v29, %v2141_v56  ;;  %v4717_v30 = vld [vmem:[%s7690_s6 + $0x130] ss:$8 sps:$4 sm:$0xff]   ;;  %v4728_v56 = vld [vmem:[%s7690_s6 + $0x14] ss:$8 sps:$4 sm:$0xff]  }
 0x755   :  { %v4922_v46 = vpop.eup %4921  ;;  %2608 = vmatmul.mubr.bf16.gmra.mxu0 %v6546_v8  ;;  %2689 = vmatmul.mubr.bf16.gmra.mxu1 %v6546_v8 }
 0x756   :  { %2726 = vmatpush1.bf16.msra.mxu0 %v4684_v25  ;;  %v2144_v48 = vmul.f32 %v4922_v46, %v2126_v14  ;;  %v2143_v11 = vmul.f32 %v4922_v46, %v2125_v9  ;;  %3720 = vmatpush1.bf16.msra.mxu1 %v4714_v49  ;;  %v4693_v25 = vld [vmem:[%s7690_s6 + $0x170] ss:$8 sps:$4 sm:$0xff]   ;;  %v4707_v9 = vld [vmem:[%s7690_s6 + $0x154] ss:$8 sps:$4 sm:$0xff]  }
 0x757   :  { %2727 = vmatprep.subr.bf16.mxu0 %v7757_v55  ;;  %3721 = vmatprep.subr.bf16.mxu1 %v4722_v2  ;;  %v4705_v49 = vld [vmem:[%s7690_s6 + $0x150] ss:$8 sps:$4 sm:$0xff]   ;;  %v4719_v14 = vld [vmem:[%s7690_s6 + $0x134] ss:$8 sps:$4 sm:$0xff]  }
 0x758   :  { %v2170_v15 = vadd.f32 %v6431_v33, %v2144_v48  ;;  %v2169_v38 = vadd.f32 %v6435_v29, %v2143_v11  ;;  %v4731_v2 = vld [vmem:[%s7690_s6 + $0x114] ss:$8 sps:$4 sm:$0xff]   ;;  %v4729_v46 = vld [vmem:[%s7690_s6 + $0x110] ss:$8 sps:$4 sm:$0xff]   ;;  %v4737_v48 = vld [vmem:[%s7690_s6 + $0x104] ss:$8 sps:$4 sm:$0xff]  }
 0x759   :  { %v4924_v26 = vpop.eup %4923  ;;  %v4732_v11 = vld [vmem:[%s7690_s6] ss:$8 sps:$4 sm:$0xff]  }
 0x75a   :  { %2728 = vmatpush1.bf16.msra.mxu0 %v4685_v4  ;;  %v2180_v6 = vpack.c.bf16 %v2170_v15, %v2168_v43  ;;  %v6586_v52 = vpack.c.bf16 %v2169_v38, %v2167_v17  ;;  %v2146_v31 = vmul.f32 %v4924_v26, %v2128_v19  ;;  %v2145_v47 = vmul.f32 %v4924_v26, %v2127_v59  ;;  %v4734_v4 = vld [vmem:[%s7690_s6 + $0x4] ss:$8 sps:$4 sm:$0xff]   ;;  %v4735_v19 = vld [vmem:[%s7690_s6 + $0x100] ss:$8 sps:$4 sm:$0xff]   ;;  %v4743_v43 = vld [vmem:[%s7690_s6 + $0x1f4] ss:$8 sps:$4 sm:$0xff]  }
 0x75b   :  { %2729 = vmatprep.subr.bf16.mxu0 %v7757_v55  ;;  %3722 = vmatpush1.bf16.msra.mxu1 %v4720_v53  ;;  %v4740_v53 = vld [vmem:[%s7690_s6 + $0xf4] ss:$8 sps:$4 sm:$0xff]   ;;  %v4738_v15 = vld [vmem:[%s7690_s6 + $0xf0] ss:$8 sps:$4 sm:$0xff]   ;;  %v4746_v38 = vld [vmem:[%s7690_s6 + $0xe4] ss:$8 sps:$4 sm:$0xff]  }
 0x75c   :  { %4369 = vmatprep.mubr.msk.bf16.mxu0 %vm58_vm0, %v2180_v6  ;;  %4375 = vmatprep.mubr.msk.bf16.mxu1 %vm58_vm0, %v2180_v6  ;;  %v2172_v37 = vadd.f32 %v6431_v33, %v2146_v31  ;;  %v2171_v54 = vadd.f32 %v6435_v29, %v2145_v47  ;;  %v4689_v29 = vld [vmem:[%s7689_s4 + $0x150] ss:$20 sps:$4 sm:$0xff]   ;;  %v4744_v59 = vld [vmem:[%s7690_s6 + $0xe0] ss:$8 sps:$4 sm:$0xff]  }
 0x75d   :  { %2618 = vmatmul.mubr.bf16.gmra.mxu0 %v6586_v52  ;;  %2699 = vmatmul.mubr.bf16.gmra.mxu1 %v6586_v52  ;;  %v4741_v17 = vld [vmem:[%s7690_s6 + $0x1f0] ss:$8 sps:$4 sm:$0xff]   ;;  %v4749_v26 = vld [vmem:[%s7690_s6 + $0x1e4] ss:$8 sps:$4 sm:$0xff]  }
 0x75e   :  { %2730 = vmatpush1.bf16.msra.mxu0 %v4686_v63  ;;  %v2182_v42 = vpack.c.bf16 %v2172_v37, %v2172_v37  ;;  %v2181_v33 = vpack.c.bf16 %v2171_v54, %v2171_v54  ;;  %3723 = vmatprep.subr.bf16.mxu1 %v4728_v56  ;;  %v4755_v63 = vld [vmem:[%s7690_s6 + $0x1d4] ss:$8 sps:$4 sm:$0xff]   ;;  %v4750_v31 = vld [vmem:[%s7690_s6 + $0xd0] ss:$8 sps:$4 sm:$0xff]   ;;  %v4758_v37 = vld [vmem:[%s7690_s6 + $0xc4] ss:$8 sps:$4 sm:$0xff]  }
 0x75f   :  { %2731 = vmatprep.subr.bf16.mxu0 %v7757_v55  ;;  %v4753_v47 = vld [vmem:[%s7690_s6 + $0x1d0] ss:$8 sps:$4 sm:$0xff]   ;;  %v4759_v54 = vld [vmem:[%s7690_s6 + $0x1c0] ss:$8 sps:$4 sm:$0xff]   ;;  %v4788_v56 = vld [vmem:[%s7690_s6 + $0x264] ss:$8 sps:$4 sm:$0xff]  }
 0x760   :  { %4370 = vmatprep.mubr.msk.bf16.mxu0 %vm58_vm0, %v2182_v42  ;;  %4376 = vmatprep.mubr.msk.bf16.mxu1 %vm58_vm0, %v2182_v42 }
 0x762   :  { %2732 = vmatpush1.bf16.msra.mxu0 %v4687_v35  ;;  %v4756_v35 = vld [vmem:[%s7690_s6 + $0xc0] ss:$8 sps:$4 sm:$0xff]  }
 0x763   :  { %2745 = vmatprep.subr.bf16.mxu0 %v7757_v55 }
 0x765   :  { %2628 = vmatmul.mubr.bf16.gmra.mxu0 %v2181_v33  ;;  %2709 = vmatmul.mubr.bf16.gmra.mxu1 %v2181_v33 }
 0x766   :  { %2746 = vmatpush2.bf16.msra.mxu0 %v2553_v12  ;;  %4377 = vmatprep.mubr.msk.bf16.mxu0 %vm58_vm0, %v6454_v28  ;;  %v4701_v28 = vld [vmem:[%s7690_s6 + $0x164] ss:$8 sps:$4 sm:$0xff]   ;;  %v4762_v12 = vld [vmem:[%s7690_s6 + $0xb0] ss:$8 sps:$4 sm:$0xff]  }
 0x767   :  { %2747 = vmatprep.subr.bf16.mxu0 %v7757_v55 }
 0x76a   :  { %2748 = vmatpush2.bf16.msra.mxu0 %v4689_v29  ;;  %v4765_v29 = vld [vmem:[%s7690_s6 + $0x1b0] ss:$8 sps:$4 sm:$0xff]  }
 0x76b   :  { %3792 = vmatprep.subr.bf16.mxu0 %v4695_v23  ;;  %v4770_v23 = vld [vmem:[%s7690_s6 + $0xa4] ss:$8 sps:$4 sm:$0xff]  }
 0x76d   :  { %2750 = vmatmul.mubr.bf16.vlgmr.msra.gmra.mxu0 %v6456_v60  ;;  %v4713_v60 = vld [vmem:[%s7690_s6 + $0x144] ss:$8 sps:$4 sm:$0xff]  }
 0x76e   :  { %4378 = vmatprep.mubr.msk.bf16.mxu0 %vm58_vm0, %v6498_v16  ;;  %3793 = vmatpush1.bf16.msra.mxu0 %v4693_v25  ;;  %v4711_v16 = vld [vmem:[%s7690_s6 + $0x140] ss:$8 sps:$4 sm:$0xff]   ;;  %v4773_v25 = vld [vmem:[%s7690_s6 + $0x1a4] ss:$8 sps:$4 sm:$0xff]  }
 0x76f   :  { %3794 = vmatprep.subr.bf16.mxu0 %v4701_v28  ;;  %v4768_v28 = vld [vmem:[%s7690_s6 + $0xa0] ss:$8 sps:$4 sm:$0xff]  }
 0x772   :  { %3795 = vmatpush1.bf16.msra.mxu0 %v4699_v51  ;;  %v4771_v51 = vld [vmem:[%s7690_s6 + $0x1a0] ss:$8 sps:$4 sm:$0xff]  }
 0x773   :  { %3796 = vmatprep.subr.bf16.mxu0 %v4707_v9  ;;  %v4776_v9 = vld [vmem:[%s7690_s6 + $0x94] ss:$8 sps:$4 sm:$0xff]  }
 0x775   :  { %2758 = vmatmul.mubr.bf16.gmra.mxu0 %v6500_v61  ;;  %v4725_v61 = vld [vmem:[%s7690_s6 + $0x124] ss:$8 sps:$4 sm:$0xff]  }
 0x776   :  { %4379 = vmatprep.mubr.msk.bf16.mxu0 %vm58_vm0, %v6544_v20  ;;  %3797 = vmatpush1.bf16.msra.mxu0 %v4705_v49  ;;  %v4723_v20 = vld [vmem:[%s7690_s6 + $0x120] ss:$8 sps:$4 sm:$0xff]   ;;  %v4779_v49 = vld [vmem:[%s7690_s6 + $0x194] ss:$8 sps:$4 sm:$0xff]  }
 0x777   :  { %3798 = vmatprep.subr.bf16.mxu0 %v4713_v60  ;;  %v4774_v60 = vld [vmem:[%s7690_s6 + $0x90] ss:$8 sps:$4 sm:$0xff]  }
 0x77a   :  { %3799 = vmatpush1.bf16.msra.mxu0 %v4711_v16  ;;  %v4777_v16 = vld [vmem:[%s7690_s6 + $0x190] ss:$8 sps:$4 sm:$0xff]  }
 0x77b   :  { %3800 = vmatprep.subr.bf16.mxu0 %v4719_v14  ;;  %v4782_v14 = vld [vmem:[%s7690_s6 + $0x84] ss:$8 sps:$4 sm:$0xff]  }
 0x77d   :  { %2766 = vmatmul.mubr.bf16.gmra.mxu0 %v6546_v8  ;;  %v4726_v8 = vld [vmem:[%s7690_s6 + $0x10] ss:$8 sps:$4 sm:$0xff]  }
 0x77e   :  { %4380 = vmatprep.mubr.msk.bf16.mxu0 %vm58_vm0, %v2180_v6  ;;  %3801 = vmatpush1.bf16.msra.mxu0 %v4717_v30  ;;  %v4747_v6 = vld [vmem:[%s7690_s6 + $0x1e0] ss:$8 sps:$4 sm:$0xff]   ;;  %v4785_v30 = vld [vmem:[%s7690_s6 + $0x184] ss:$8 sps:$4 sm:$0xff]  }
 0x77f   :  { %3802 = vmatprep.subr.bf16.mxu0 %v4725_v61  ;;  %3724 = vmatpush1.bf16.msra.mxu1 %v4726_v8  ;;  %v4780_v61 = vld [vmem:[%s7690_s6 + $0x80] ss:$8 sps:$4 sm:$0xff]  }
 0x780   :  { %3725 = vmatprep.subr.bf16.mxu1 %v4734_v4 }
 0x782   :  { %3803 = vmatpush1.bf16.msra.mxu0 %v4723_v20  ;;  %v4783_v20 = vld [vmem:[%s7690_s6 + $0x180] ss:$8 sps:$4 sm:$0xff]  }
 0x783   :  { %3804 = vmatprep.subr.bf16.mxu0 %v4731_v2  ;;  %3726 = vmatpush1.bf16.msra.mxu1 %v4732_v11  ;;  %v2243_v2 = vld [vmem:[%s7691_s5] sm:$0x1f] }
 0x784   :  { %3727 = vmatprep.subr.bf16.mxu1 %v4740_v53  ;;  %v6788_v4 = vrot.slane %v2243_v2, %v5417_v32  ;;  %v6797_v32 = vrot.slane %v2243_v2, %v5457_v24 }
 0x785   :  { %2774 = vmatmul.mubr.bf16.gmra.mxu0 %v6586_v52  ;;  %v4752_v52 = vld [vmem:[%s7690_s6 + $0xd4] ss:$8 sps:$4 sm:$0xff]  }
 0x786   :  { %4381 = vmatprep.mubr.msk.bf16.mxu0 %vm58_vm0, %v2182_v42  ;;  %3805 = vmatpush1.bf16.msra.mxu0 %v4729_v46  ;;  %v4761_v42 = vld [vmem:[%s7690_s6 + $0x1c4] ss:$8 sps:$4 sm:$0xff]  }
 0x787   :  { %3806 = vmatprep.subr.bf16.mxu0 %v4737_v48  ;;  %3728 = vmatpush2.bf16.msra.mxu1 %v4738_v15 }
 0x788   :  { %3729 = vmatprep.subr.bf16.mxu1 %v4746_v38 }
 0x78a   :  { %3807 = vmatpush1.bf16.msra.mxu0 %v4735_v19  ;;  %v6791_v19 = vrot.slane %v2243_v2, %v5709_v62 }
 0x78b   :  { %3808 = vmatprep.subr.bf16.mxu0 %v4743_v43  ;;  %3730 = vmatpush2.bf16.msra.mxu1 %v4744_v59 }
 0x78c   :  { %3731 = vmatprep.subr.bf16.mxu1 %v4752_v52 }
 0x78d   :  { %2782 = vmatmul.mubr.bf16.gmra.mxu0 %v2181_v33  ;;  %v4767_v33 = vld [vmem:[%s7690_s6 + $0x1b4] ss:$8 sps:$4 sm:$0xff]  }
 0x78e   :  { %3809 = vmatpush2.bf16.msra.mxu0 %v4741_v17 }
 0x78f   :  { %3810 = vmatprep.subr.bf16.mxu0 %v4749_v26  ;;  %3732 = vmatpush2.bf16.msra.mxu1 %v4750_v31 }
 0x790   :  { %3733 = vmatprep.subr.bf16.mxu1 %v4758_v37 }
 0x792   :  { %3811 = vmatpush2.bf16.msra.mxu0 %v4747_v6 }
 0x793   :  { %3812 = vmatprep.subr.bf16.mxu0 %v4755_v63  ;;  %3734 = vmatpush2.bf16.msra.mxu1 %v4756_v35 }
 0x794   :  { %3735 = vmatprep.subr.bf16.mxu1 %v4764_v58  ;;  %v6801_v58 = vrot.slane %v2243_v2, %v5712_v0 }
 0x796   :  { %3813 = vmatpush2.bf16.msra.mxu0 %v4753_v47 }
 0x797   :  { %3814 = vmatprep.subr.bf16.mxu0 %v4761_v42  ;;  %3736 = vmatpush2.bf16.msra.mxu1 %v4762_v12 }
 0x798   :  { %3737 = vmatprep.subr.bf16.mxu1 %v4770_v23 }
 0x79a   :  { %3815 = vmatpush2.bf16.msra.mxu0 %v4759_v54 }
 0x79b   :  { %3816 = vmatprep.subr.bf16.mxu0 %v4767_v33  ;;  %3738 = vmatpush2.bf16.msra.mxu1 %v4768_v28 }
 0x79c   :  { %3739 = vmatprep.subr.bf16.mxu1 %v4776_v9 }
 0x79e   :  { %3817 = vmatpush2.bf16.msra.mxu0 %v4765_v29 }
 0x79f   :  { %3818 = vmatprep.subr.bf16.mxu0 %v4773_v25  ;;  %3740 = vmatpush2.bf16.msra.mxu1 %v4774_v60 }
 0x7a0   :  { %3741 = vmatprep.subr.bf16.mxu1 %v4782_v14 }
 0x7a2   :  { %3819 = vmatpush2.bf16.msra.mxu0 %v4771_v51 }
 0x7a3   :  { %3820 = vmatprep.subr.bf16.mxu0 %v4779_v49  ;;  %3742 = vmatpush2.bf16.msra.mxu1 %v4780_v61 }
 0x7a4   :  { %3875 = vmatprep.subr.bf16.mxu1 %v4788_v56 }
 0x7a6   :  { %3821 = vmatpush2.bf16.msra.mxu0 %v4777_v16 }
 0x7a7   :  { %3822 = vmatprep.subr.bf16.mxu0 %v4785_v30 }
 0x7aa   :  { %3823 = vmatpush2.bf16.msra.mxu0 %v4783_v20 }
 0x804   :  { %v2589_v8 = vpop.f32.mrf.mxu0  ;;  %v2670_v46 = vpop.f32.mrf.mxu1 }
 0x805   :  { %v2590_v15 = vadd.f32 %v2589_v8, %v6788_v4  ;;  %v2671_v26 = vadd.f32 %v2670_v46, %v6791_v19 }
 0x806   :  { %v2591_v48 = vpop.f32.mrf.mxu0  ;;  %v2672_v11 = vpop.f32.mrf.mxu1 }
 0x807   :  { %v2834_v52 = vmul.f32 0.044715, %v2590_v15  ;;  %v2836_v37 = vmul.f32 0.044715, %v2671_v26  ;;  %v6804_v12 = vadd.f32 %v2591_v48, %v6797_v32  ;;  %v6807_v51 = vadd.f32 %v2672_v11, %v6801_v58 }
 0x808   :  { %v2593_v53 = vpop.f32.mrf.mxu0  ;;  %v2674_v43 = vpop.f32.mrf.mxu1 }
 0x809   :  { %v2594_v63 = vadd.f32 %v2593_v53, %v6788_v4  ;;  %v2675_v31 = vadd.f32 %v2674_v43, %v6791_v19  ;;  %v2879_v54 = vmul.f32 %v2834_v52, %v2590_v15  ;;  %v2881_v24 = vmul.f32 %v2836_v37, %v2671_v26 }
 0x80a   :  { %v2595_v17 = vpop.f32.mrf.mxu0  ;;  %v2676_v38 = vpop.f32.mrf.mxu1  ;;  %v2835_v16 = vmul.f32 0.044715, %v6804_v12  ;;  %v2837_v8 = vmul.f32 0.044715, %v6807_v51  ;;  %v6825_v53 = vrot.slane %v2243_v2, %v5756_v36  ;;  %v6827_v43 = vmul.f32 0.5, %v2590_v15 }
 0x80b   :  { %v2839_v33 = vmul.f32 0.044715, %v2594_v63  ;;  %v2841_v29 = vmul.f32 0.044715, %v2675_v31  ;;  %v2924_v28 = vmul.f32 %v2879_v54, %v2590_v15  ;;  %v2926_v61 = vmul.f32 %v2881_v24, %v2671_v26 }
 0x80c   :  { %v2599_v59 = vpop.f32.mrf.mxu0  ;;  %v2680_v6 = vpop.f32.mrf.mxu1  ;;  %v6817_v20 = vadd.f32 %v2595_v17, %v6797_v32  ;;  %7758 = vst [vmem:[#allocation23_spill] sm:$0xff] %v6825_v53  ;;  %7759 = vst [vmem:[#allocation24_spill] sm:$0xff] %v6827_v43  ;;  %v2880_v52 = vmul.f32 %v2835_v16, %v6804_v12  ;;  %v6831_v54 = vadd.f32 %v2676_v38, %v6801_v58  ;;  %v6833_v17 = vmul.f32 0.5, %v2671_v26 }
 0x80d   :  { %v2884_v9 = vmul.f32 %v2839_v33, %v2594_v63  ;;  %v2886_v0 = vmul.f32 %v2841_v29, %v2675_v31  ;;  %v2969_v56 = vadd.f32 %v2924_v28, %v2590_v15  ;;  %v6836_v33 = vadd.f32 %v2599_v59, %v6788_v4 }
 0x80e   :  { %v2601_v62 = vpop.f32.mrf.mxu0  ;;  %v2682_v47 = vpop.f32.mrf.mxu1  ;;  %7760 = vst [vmem:[#allocation25_spill] sm:$0xff] %v6833_v17  ;;  %v6839_v29 = vadd.f32 %v2680_v6, %v6791_v19  ;;  %v6846_v2 = vmul.f32 0.5, %v6804_v12  ;;  %v2971_v15 = vadd.f32 %v2926_v61, %v2671_v26  ;;  %v6848_v28 = vmul.f32 0.5, %v2594_v63 }
 0x80f   :  { %v2929_v46 = vmul.f32 %v2884_v9, %v2594_v63  ;;  %v2931_v37 = vmul.f32 %v2886_v0, %v2675_v31  ;;  %v2840_v38 = vmul.f32 0.044715, %v6817_v20  ;;  %v6852_v9 = vmul.f32 0.5, %v6807_v51 }
 0x810   :  { %v2603_v42 = vpop.f32.mrf.mxu0  ;;  %v2684_v35 = vpop.f32.mrf.mxu1  ;;  %7761 = vst [vmem:[#allocation26_spill] sm:$0xff] %v6846_v2  ;;  %v3014_v59 = vmul.f32 0.7978846, %v2969_v56  ;;  %v2882_v16 = vmul.f32 %v2837_v8, %v6807_v51  ;;  %v6856_v0 = vadd.f32 %v2601_v62, %v6797_v32  ;;  %v6863_v26 = vmul.f32 %v2880_v52, %v6804_v12 }
 0x811   :  { %7762 = vst [vmem:[#allocation27_spill] sm:$0xff] %v6852_v9  ;;  %v2974_v6 = vadd.f32 %v2929_v46, %v2594_v63  ;;  %v6865_v61 = vmul.f32 0.5, %v2675_v31  ;;  %v2976_v41 = vadd.f32 %v2931_v37, %v2675_v31  ;;  %v2842_v57 = vmul.f32 0.044715, %v6831_v54 }
 0x812   :  { %v2605_v23 = vpop.f32.mrf.mxu0  ;;  %v2686_v25 = vpop.f32.mrf.mxu1  ;;  %v2844_v56 = vmul.f32 0.044715, %v6836_v33  ;;  %v2846_v8 = vmul.f32 0.044715, %v6839_v29  ;;  %v6871_v63 = vadd.f32 %v2682_v47, %v6801_v58  ;;  %v6874_v62 = vadd.f32 %v2603_v42, %v6788_v4 }
 0x813   :  { %7763 = vst [vmem:[#allocation28_spill] sm:$0xff] %v6865_v61  ;;  %v3016_v52 = vmul.f32 0.7978846, %v2971_v15  ;;  %v2885_v21 = vmul.f32 %v2840_v38, %v6817_v20  ;;  %v6882_v31 = vadd.f32 %v2684_v35, %v6791_v19  ;;  %v6885_v37 = vadd.f32 %v2605_v23, %v6797_v32 }
 0x814   :  { %4925 = vtanh.f32 %v3014_v59  ;;  %v6888_v47 = vmul.f32 %v2882_v16, %v6807_v51  ;;  %v3019_v7 = vmul.f32 0.7978846, %v2974_v6  ;;  %v2845_v42 = vmul.f32 0.044715, %v6856_v0 }
 0x815   :  { %v2609_v49 = vpop.f32.mrf.mxu0  ;;  %v6809_v60 = vpop.f32.mrf.mxu1  ;;  %7764 = vst [vmem:[#allocation29_spill] sm:$0xff] %v6882_v31  ;;  %v3021_v15 = vmul.f32 0.7978846, %v2976_v41  ;;  %v2887_v38 = vmul.f32 %v2842_v57, %v6831_v54  ;;  %v6897_v35 = vadd.f32 %v2686_v25, %v6801_v58  ;;  %v2889_v59 = vmul.f32 %v2844_v56, %v6836_v33 }
 0x816   :  { %v6900_v23 = vadd.f32 %v2609_v49, %v6788_v4  ;;  %v2891_v16 = vmul.f32 %v2846_v8, %v6839_v29  ;;  %v2847_v6 = vmul.f32 0.044715, %v6871_v63  ;;  %v2849_v40 = vmul.f32 0.044715, %v6874_v62 }
 0x817   :  { %v6812_v14 = vpop.f32.mrf.mxu0  ;;  %v6814_v30 = vpop.f32.mrf.mxu1  ;;  %4927 = vtanh.f32 %v3016_v52  ;;  %v2930_v57 = vmul.f32 %v2885_v21, %v6817_v20  ;;  %v2851_v41 = vmul.f32 0.044715, %v6882_v31  ;;  %v2850_v25 = vmul.f32 0.044715, %v6885_v37 }
 0x818   :  { %7765 = vst [vmem:[#allocation30_spill] sm:$0xff] %v6900_v23  ;;  %4929 = vtanh.f32 %v3019_v7  ;;  %v2890_v49 = vmul.f32 %v2845_v42, %v6856_v0  ;;  %v6916_v56 = vadd.f32 %v6809_v60, %v6791_v19  ;;  %v6920_v8 = vadd.f32 %v6812_v14, %v6797_v32 }
 0x819   :  { %v6820_v48 = vpop.f32.mrf.mxu0  ;;  %v6822_v11 = vpop.f32.mrf.mxu1  ;;  %4931 = vtanh.f32 %v3021_v15  ;;  %v2932_v21 = vmul.f32 %v2887_v38, %v6831_v54  ;;  %v2852_v52 = vmul.f32 0.044715, %v6897_v35  ;;  %v2854_v7 = vmul.f32 0.044715, %v6900_v23 }
 0x81a   :  { %v6928_v42 = vmul.f32 %v2889_v59, %v6836_v33  ;;  %v6931_v60 = vmul.f32 %v2891_v16, %v6839_v29  ;;  %v2892_v5 = vmul.f32 %v2847_v6, %v6871_v63  ;;  %v2894_v14 = vmul.f32 %v2849_v40, %v6874_v62 }
 0x81b   :  { %v6841_v24 = vpop.f32.mrf.mxu0  ;;  %v6843_v36 = vpop.f32.mrf.mxu1  ;;  %v2896_v15 = vmul.f32 %v2851_v41, %v6882_v31  ;;  %v2895_v38 = vmul.f32 %v2850_v25, %v6885_v37  ;;  %v6943_v34 = vadd.f32 %v6814_v30, %v6801_v58  ;;  %v6949_v16 = vmul.f32 %v2890_v49, %v6856_v0 }
 0x81c   :  { %v2856_v40 = vmul.f32 0.044715, %v6916_v56  ;;  %v2855_v6 = vmul.f32 0.044715, %v6920_v8  ;;  %v6955_v55 = vadd.f32 %v6820_v48, %v6788_v4  ;;  %v2897_v53 = vmul.f32 %v2852_v52, %v6897_v35 }
 0x81d   :  { %v6858_v39 = vpop.f32.mrf.mxu0  ;;  %v6860_v1 = vpop.f32.mrf.mxu1  ;;  %v2899_v30 = vmul.f32 %v2854_v7, %v6900_v23  ;;  %v6971_v48 = vmul.f32 %v2894_v14, %v6874_v62  ;;  %v6979_v52 = vadd.f32 %v6843_v36, %v6801_v58 }
 0x81e   :  { %v6965_v49 = vadd.f32 %v6860_v1, %v6791_v19  ;;  %v6985_v1 = vmul.f32 %v2895_v38, %v6885_v37  ;;  %v6990_v14 = vadd.f32 %v6858_v39, %v6788_v4  ;;  %v2859_v36 = vmul.f32 0.044715, %v6955_v55 }
 0x81f   :  { %v6876_v46 = vpop.f32.mrf.mxu0  ;;  %v6878_v13 = vpop.f32.mrf.mxu1  ;;  %v7007_v39 = vmul.f32 %v2899_v30, %v6900_v23  ;;  %v2862_v9 = vmul.f32 0.044715, %v6979_v52 }
 0x820   :  { %7769 = vst [vmem:[#allocation34_spill] sm:$0xff] %v6965_v49  ;;  %7771 = vst [vmem:[#allocation36_spill] sm:$0xff] %v6990_v14  ;;  %v2864_v43 = vmul.f32 0.044715, %v6990_v14  ;;  %v7020_v30 = vadd.f32 %v6878_v13, %v6801_v58  ;;  %v2904_v2 = vmul.f32 %v2859_v36, %v6955_v55 }
 0x821   :  { %v6891_v22 = vpop.f32.mrf.mxu0  ;;  %v6893_v18 = vpop.f32.mrf.mxu1  ;;  %7773 = vst [vmem:[#allocation38_spill] sm:$0xff] %v7007_v39  ;;  %v2972_v39 = vadd.f32 %v6888_v47, %v6807_v51 }
 0x822   :  { %v7001_v38 = vpop.eup %4925  ;;  %v7033_v13 = vadd.f32 %v6891_v22, %v6788_v4 }
 0x823   :  { %v6906_v10 = vpop.f32.mrf.mxu0  ;;  %v6908_v44 = vpop.f32.mrf.mxu1  ;;  %v3017_v51 = vmul.f32 0.7978846, %v2972_v39 }
 0x824   :  { %v7024_v23 = vpop.eup %4927  ;;  %7776 = vst [vmem:[#allocation41_spill] sm:$0xff] %v7033_v13 }
 0x825   :  { %v2629_v50 = vpop.f32.mrf.mxu0  ;;  %v6922_v27 = vpop.f32.mrf.mxu1  ;;  %7774 = vst [vmem:[#allocation39_spill] sm:$0xff] %v7024_v23 }
 0x826   :  { %v6946_v59 = vadd.f32 %v2629_v50, %v6788_v4  ;;  %v6961_v50 = vadd.f32 %v6822_v11, %v6791_v19 }
 0x827   :  { %v6935_v45 = vpop.f32.mrf.mxu0  ;;  %v6937_v3 = vpop.f32.mrf.mxu1 }
 0x828   :  { %7766 = vst [vmem:[#allocation31_spill] sm:$0xff] %v6935_v45  ;;  %7767 = vst [vmem:[#allocation32_spill] sm:$0xff] %v6937_v3  ;;  %v6968_v3 = vmul.f32 %v2892_v5, %v6871_v63  ;;  %v2857_v5 = vmul.f32 0.044715, %v6943_v34  ;;  %v2900_v45 = vmul.f32 %v2855_v6, %v6920_v8  ;;  %v2866_v6 = vmul.f32 0.044715, %v6965_v49 }
 0x829   :  { %7768 = vst [vmem:[#allocation33_spill] sm:$0xff] %v6946_v59  ;;  %v2633_v41 = vpop.f32.mrf.mxu0  ;;  %v2714_v25 = vpop.f32.mrf.mxu1 }
 0x82a   :  { %v6975_v41 = vadd.f32 %v6841_v24, %v6797_v32  ;;  %v6982_v25 = vmul.f32 %v2896_v15, %v6882_v31  ;;  %v2901_v24 = vmul.f32 %v2856_v40, %v6916_v56  ;;  %v2861_v40 = vmul.f32 0.044715, %v6961_v50 }
 0x82b   :  { %v2634_v11 = vpop.f32.mrf.mxu0  ;;  %v2715_v7 = vpop.f32.mrf.mxu1  ;;  %v2977_v31 = vadd.f32 %v2932_v21, %v6831_v54  ;;  %v7050_v21 = vmul.f32 %v2900_v45, %v6920_v8 }
 0x82c   :  { %7770 = vst [vmem:[#allocation35_spill] sm:$0xff] %v6982_v25  ;;  %v6997_v11 = vadd.f32 %v6876_v46, %v6797_v32  ;;  %v7004_v7 = vmul.f32 %v2897_v53, %v6897_v35  ;;  %v2860_v17 = vmul.f32 0.044715, %v6975_v41  ;;  %v2970_v46 = vadd.f32 %v6863_v26, %v6804_v12 }
 0x82d   :  { %v6999_v15 = vpop.f32.mrf.mxu0  ;;  %v2902_v53 = vmul.f32 %v2857_v5, %v6943_v34  ;;  %v4930_v5 = vpop.eup %4929  ;;  %v2911_v25 = vmul.f32 %v2866_v6, %v6965_v49  ;;  %v2906_v36 = vmul.f32 %v2861_v40, %v6961_v50  ;;  %v7044_v6 = vadd.f32 %v6893_v18, %v6791_v19 }
 0x82e   :  { %7772 = vst [vmem:[#allocation37_spill] sm:$0xff] %v6999_v15  ;;  %v2975_v15 = vadd.f32 %v2930_v57, %v6817_v20  ;;  %v2865_v12 = vmul.f32 0.044715, %v6997_v11  ;;  %v3015_v26 = vmul.f32 0.7978846, %v2970_v46  ;;  %v7036_v47 = vpop.eup %4931  ;;  %v2905_v23 = vmul.f32 %v2860_v17, %v6975_v41 }
 0x82f   :  { %v2753_v61 = vpop.f32.mrf.mxu0  ;;  %v3022_v22 = vmul.f32 0.7978846, %v2977_v31  ;;  %v7047_v4 = vmul.f32 %v2901_v24, %v6916_v56  ;;  %v2909_v17 = vmul.f32 %v2864_v43, %v6990_v14  ;;  %v2956_v39 = vmul.f32 %v2911_v25, %v6965_v49 }
 0x830   :  { %v3020_v57 = vmul.f32 0.7978846, %v2975_v15  ;;  %v2907_v15 = vmul.f32 %v2862_v9, %v6979_v52  ;;  %4933 = vtanh.f32 %v3015_v26  ;;  %v2910_v40 = vmul.f32 %v2865_v12, %v6997_v11 }
 0x831   :  { %v7028_v61 = vpop.f32.mrf.mxu0  ;;  %v2869_v18 = vmul.f32 0.044715, %v7033_v13  ;;  %v7059_v31 = vmul.f32 %v2902_v53, %v6943_v34  ;;  %v7062_v24 = vmul.f32 %v2904_v2, %v6955_v55  ;;  %v7065_v45 = vmul.f32 %v2906_v36, %v6961_v50 }
 0x832   :  { %7775 = vst [vmem:[#allocation40_spill] sm:$0xff] %v7028_v61  ;;  %v2867_v61 = vmul.f32 0.044715, %v7020_v30  ;;  %4935 = vtanh.f32 %v3020_v57  ;;  %v7069_v43 = vadd.f32 %v6906_v10, %v6797_v32  ;;  %v7072_v25 = vmul.f32 %v2905_v23, %v6975_v41 }
 0x833   :  { %v2756_v46 = vpop.f32.mrf.mxu0  ;;  %4937 = vtanh.f32 %v3017_v51  ;;  %v7075_v12 = vmul.f32 %v2907_v15, %v6979_v52  ;;  %v2871_v57 = vmul.f32 0.044715, %v7044_v6  ;;  %v7080_v2 = vmul.f32 %v2909_v17, %v6990_v14 }
 0x834   :  { %4939 = vtanh.f32 %v3022_v22  ;;  %v2912_v53 = vmul.f32 %v2867_v61, %v7020_v30  ;;  %v7084_v51 = vadd.f32 %v6908_v44, %v6801_v58  ;;  %v2980_v10 = vadd.f32 %v6949_v16, %v6856_v0 }
 0x835   :  { %v7053_v9 = vpop.f32.mrf.mxu0  ;;  %7778 = vst [vmem:[#allocation43_spill] sm:$0xff] %v7080_v2  ;;  %v2985_v23 = vadd.f32 %v6985_v1, %v6885_v37  ;;  %v3001_v15 = vadd.f32 %v2956_v39, %v6965_v49  ;;  %v7094_v61 = vmul.f32 %v2910_v40, %v6997_v11  ;;  %v2914_v46 = vmul.f32 %v2869_v18, %v7033_v13 }
 0x836   :  { %7777 = vst [vmem:[#allocation42_spill] sm:$0xff] %v7053_v9  ;;  %v2982_v22 = vadd.f32 %v6968_v3, %v6871_v63  ;;  %v2870_v44 = vmul.f32 0.044715, %v7069_v43  ;;  %v3025_v17 = vmul.f32 0.7978846, %v2980_v10  ;;  %v2987_v16 = vadd.f32 %v7004_v7, %v6897_v35 }
 0x837   :  { %v2761_v26 = vpop.f32.mrf.mxu0  ;;  %v2916_v39 = vmul.f32 %v2871_v57, %v7044_v6  ;;  %v7108_v40 = vadd.f32 %v6922_v27, %v6791_v19  ;;  %v2872_v3 = vmul.f32 0.044715, %v7084_v51  ;;  %v7112_v49 = vmul.f32 0.044715, %v6946_v59 }
 0x838   :  { %v3030_v26 = vmul.f32 0.7978846, %v2985_v23  ;;  %v3027_v18 = vmul.f32 0.7978846, %v2982_v22  ;;  %4941 = vtanh.f32 %v3025_v17  ;;  %v3032_v10 = vmul.f32 0.7978846, %v2987_v16 }
 0x839   :  { %v7090_v36 = vpop.f32.mrf.mxu0  ;;  %7781 = vst [vmem:[#allocation46_spill] sm:$0xff] %v7112_v49  ;;  %v7116_v7 = vmul.f32 0.7978846, %v3001_v15  ;;  %v2979_v57 = vadd.f32 %v6928_v42, %v6836_v33  ;;  %v2984_v27 = vadd.f32 %v6971_v48, %v6874_v62  ;;  %v7123_v19 = vmul.f32 %v2914_v46, %v7033_v13 }
 0x83a   :  { %7779 = vst [vmem:[#allocation44_spill] sm:$0xff] %v7090_v36  ;;  %v7103_v36 = vmul.f32 %v2912_v53, %v7020_v30  ;;  %v3109_v53 = vadd.f32 1.0, %v4930_v5  ;;  %v2915_v22 = vmul.f32 %v2870_v44, %v7069_v43  ;;  %4943 = vtanh.f32 %v3030_v26 }
 0x83b   :  { %v2764_v1 = vpop.f32.mrf.mxu0  ;;  %7783 = vst [vmem:[#allocation48_spill] sm:$0xff] %v7116_v7  ;;  %7784 = vst [vmem:[#allocation49_spill] sm:$0xff] %v7123_v19  ;;  %v3104_v15 = vadd.f32 1.0, %v7001_v38  ;;  %4945 = vtanh.f32 %v3027_v18  ;;  %v3024_v5 = vmul.f32 0.7978846, %v2979_v57  ;;  %v3111_v59 = vadd.f32 1.0, %v7036_v47 }
 0x83c   :  { %7780 = vst [vmem:[#allocation45_spill] sm:$0xff] %v7103_v36  ;;  %v2795_v1 = vmul.f32 0.5, %v6817_v20  ;;  %4947 = vtanh.f32 %v3032_v10  ;;  %v2981_v48 = vadd.f32 %v6931_v60, %v6839_v29  ;;  %v2797_v26 = vmul.f32 0.5, %v6831_v54  ;;  %v7786_v38 = vld [vmem:[#allocation29_spill] sm:$0xff]  ;;  %v7787_v18 = vld [vmem:[#allocation35_spill] sm:$0xff]  ;;  %v7788_v19 = vld [vmem:[#allocation26_spill] sm:$0xff] }
 0x83d   :  { %v7114_v23 = vpop.f32.mrf.mxu0  ;;  %v4934_v16 = vpop.eup %4933  ;;  %v2986_v57 = vadd.f32 %v7787_v18, %v7786_v38  ;;  %v7789_v47 = vld [vmem:[#allocation39_spill] sm:$0xff]  ;;  %4949 = vtanh.f32 %v3024_v5  ;;  %v7790_v54 = vld [vmem:[#allocation24_spill] sm:$0xff]  ;;  %v7793_v5 = vld [vmem:[#allocation25_spill] sm:$0xff] }
 0x83e   :  { %7782 = vst [vmem:[#allocation47_spill] sm:$0xff] %v7114_v23  ;;  %v3029_v23 = vmul.f32 0.7978846, %v2984_v27  ;;  %v3105_v42 = vadd.f32 1.0, %v4934_v16  ;;  %v3106_v10 = vadd.f32 1.0, %v7789_v47  ;;  %v3149_v14 = vmul.f32 %v3104_v15, %v7790_v54 }
 0x83f   :  { %v2769_v17 = vpop.f32.mrf.mxu0  ;;  %v4936_v49 = vpop.eup %4935  ;;  %v3031_v9 = vmul.f32 0.7978846, %v2986_v57  ;;  %v4791_v15 = vld [vmem:[%s7690_s6 + $0x254] ss:$8 sps:$4 sm:$0xff]  }
 0x840   :  { %v4938_v44 = vpop.eup %4937  ;;  %v3110_v20 = vadd.f32 1.0, %v4936_v49  ;;  %v3154_v17 = vmul.f32 %v3109_v53, %v6848_v28  ;;  %v3150_v16 = vmul.f32 %v3105_v42, %v7788_v19  ;;  %4951 = vtanh.f32 %v3029_v23  ;;  %v7791_v28 = vld [vmem:[#allocation28_spill] sm:$0xff]  ;;  %v7792_v19 = vld [vmem:[#allocation27_spill] sm:$0xff] }
 0x841   :  { %v7131_v46 = vpop.f32.mrf.mxu0  ;;  %v4940_v27 = vpop.eup %4939  ;;  %v3107_v13 = vadd.f32 1.0, %v4938_v44  ;;  %v2876_v49 = vmul.f32 0.044715, %v7108_v40  ;;  %v3156_v53 = vmul.f32 %v3111_v59, %v7791_v28  ;;  %v2961_v23 = vmul.f32 %v2916_v39, %v7044_v6 }
 0x842   :  { %7785 = vst [vmem:[#allocation50_spill] sm:$0xff] %v7131_v46  ;;  %v3155_v60 = vmul.f32 %v3110_v20, %v2795_v1  ;;  %v3112_v2 = vadd.f32 1.0, %v4940_v27  ;;  %v3026_v46 = vmul.f32 0.7978846, %v2981_v48  ;;  %v3194_v1 = vpack.c.bf16 %v3154_v17, %v3149_v14  ;;  %v7794_v14 = vld [vmem:[#allocation31_spill] sm:$0xff] }
 0x843   :  { %v2772_v7 = vpop.f32.mrf.mxu0  ;;  %v3152_v42 = vmul.f32 %v3107_v13, %v7792_v19  ;;  %v3151_v48 = vmul.f32 %v3106_v10, %v7793_v5  ;;  %v2990_v59 = vadd.f32 %v7050_v21, %v6920_v8  ;;  %v2917_v13 = vmul.f32 %v2872_v3, %v7084_v51  ;;  %v4789_v3 = vld [vmem:[%s7690_s6 + $0x250] ss:$8 sps:$4 sm:$0xff]   ;;  %v4794_v10 = vld [vmem:[%s7690_s6 + $0x244] ss:$8 sps:$4 sm:$0xff]  }
 0x844   :  { %v3195_v36 = vpack.c.bf16 %v3155_v60, %v3150_v16  ;;  %v3157_v44 = vmul.f32 %v3112_v2, %v2797_v26  ;;  %4953 = vtanh.f32 %v3026_v46  ;;  %v4786_v7 = vld [vmem:[%s7690_s6 + $0x260] ss:$8 sps:$4 sm:$0xff]   ;;  %v2995_v46 = vadd.f32 %v7072_v25, %v6975_v41  ;;  %v7797_v5 = vld [vmem:[#allocation40_spill] sm:$0xff] }
 0x845   :  { %v7142_v18 = vpop.f32.mrf.mxu0  ;;  %4955 = vtanh.f32 %v3031_v9  ;;  %v7160_v39 = vadd.f32 %v7794_v14, %v6797_v32  ;;  %v3196_v26 = vpack.c.bf16 %v3156_v53, %v3151_v48  ;;  %v3035_v21 = vmul.f32 0.7978846, %v2990_v59  ;;  %v4942_v27 = vpop.eup %4941 }
 0x846   :  { %3743 = vmatprep.mubr.bf16.mxu1 %v3195_v36  ;;  %v3197_v2 = vpack.c.bf16 %v3157_v44, %v3152_v42  ;;  %v2992_v17 = vadd.f32 %v7059_v31, %v6943_v34  ;;  %v7167_v36 = vmul.f32 %v2915_v22, %v7069_v43  ;;  %v2921_v9 = vmul.f32 %v2876_v49, %v7108_v40  ;;  %v7795_v31 = vld [vmem:[#allocation32_spill] sm:$0xff] }
 0x847   :  { %v2777_v20 = vpop.f32.mrf.mxu0  ;;  %3744 = vmatmul.mubr.bf16.vlgmr.msra.gmra.mxu1 %v3194_v1  ;;  %v3040_v25 = vmul.f32 0.7978846, %v2995_v46  ;;  %v2997_v32 = vadd.f32 %v7075_v12, %v6979_v52  ;;  %v7177_v16 = vadd.f32 %v7795_v31, %v6801_v58  ;;  %v3115_v47 = vadd.f32 1.0, %v4942_v27  ;;  %v4944_v49 = vpop.eup %4943  ;;  %v7796_v1 = vld [vmem:[#allocation23_spill] sm:$0xff]  ;;  %v7799_v27 = vld [vmem:[#allocation30_spill] sm:$0xff] }
 0x848   :  { %3824 = vmatprep.mubr.bf16.mxu0 %v3197_v2  ;;  %3876 = vmatpush1.bf16.msra.mxu1 %v4786_v7  ;;  %4957 = vtanh.f32 %v3035_v21  ;;  %v3037_v22 = vmul.f32 0.7978846, %v2992_v17  ;;  %v3006_v12 = vadd.f32 %v2961_v23, %v7044_v6  ;;  %v7184_v54 = vmul.f32 %v2917_v13, %v7084_v51  ;;  %v4946_v58 = vpop.eup %4945  ;;  %v4797_v2 = vld [vmem:[%s7690_s6 + $0x234] ss:$8 sps:$4 sm:$0xff]  }
 0x849   :  { %v7164_v57 = vpop.f32.mrf.mxu0  ;;  %3825 = vmatmul.mubr.bf16.vlgmr.msra.gmra.mxu0 %v3196_v26  ;;  %3877 = vmatprep.subr.bf16.mxu1 %v4791_v15  ;;  %4959 = vtanh.f32 %v3040_v25  ;;  %v3042_v28 = vmul.f32 0.7978846, %v2997_v32  ;;  %v2800_v53 = vmul.f32 0.5, %v6856_v0  ;;  %v2805_v19 = vmul.f32 0.5, %v6885_v37  ;;  %v4948_v7 = vpop.eup %4947  ;;  %v4792_v0 = vld [vmem:[%s7690_s6 + $0x240] ss:$8 sps:$4 sm:$0xff]  }
 0x84a   :  { %v3120_v42 = vadd.f32 1.0, %v4944_v49  ;;  %4961 = vtanh.f32 %v3037_v22  ;;  %v7192_v48 = vadd.f32 %v7797_v5, %v7796_v1  ;;  %v2802_v23 = vmul.f32 0.5, %v6871_v63  ;;  %v4950_v14 = vpop.eup %4949  ;;  %v7798_v26 = vld [vmem:[#allocation37_spill] sm:$0xff]  ;;  %v7800_v25 = vld [vmem:[#allocation38_spill] sm:$0xff] }
 0x84b   :  { %v2780_v60 = vpop.f32.mrf.mxu0  ;;  %v3117_v59 = vadd.f32 1.0, %v4946_v58  ;;  %4963 = vtanh.f32 %v3042_v28  ;;  %v3160_v15 = vmul.f32 %v3115_v47, %v2800_v53  ;;  %v2807_v20 = vmul.f32 0.5, %v6897_v35 }
 0x84c   :  { %3878 = vmatpush1.bf16.msra.mxu1 %v4789_v3  ;;  %v3165_v37 = vmul.f32 %v3120_v42, %v2805_v19  ;;  %v3122_v13 = vadd.f32 1.0, %v4948_v7  ;;  %v7203_v63 = vmul.f32 0.044715, %v7160_v39  ;;  %v7207_v21 = vadd.f32 %v7798_v26, %v7796_v1  ;;  %v4798_v26 = vld [vmem:[%s7690_s6 + $0x220] ss:$8 sps:$4 sm:$0xff]  }
 0x84d   :  { %v7188_v44 = vpop.f32.mrf.mxu0  ;;  %3879 = vmatprep.subr.bf16.mxu1 %v4794_v10  ;;  %v3162_v17 = vmul.f32 %v3117_v59, %v2802_v23  ;;  %v2989_v32 = vadd.f32 %v7800_v25, %v7799_v27  ;;  %v4952_v35 = vpop.eup %4951  ;;  %v3114_v47 = vadd.f32 1.0, %v4950_v14  ;;  %v2994_v22 = vadd.f32 %v7062_v24, %v6955_v55  ;;  %v4795_v10 = vld [vmem:[%s7690_s6 + $0x230] ss:$8 sps:$4 sm:$0xff]   ;;  %v4800_v23 = vld [vmem:[%s7690_s6 + $0x224] ss:$8 sps:$4 sm:$0xff]  }
 0x84e   :  { %v3200_v3 = vpack.c.bf16 %v3165_v37, %v3160_v15  ;;  %v3167_v31 = vmul.f32 %v3122_v13, %v2807_v20  ;;  %v2799_v49 = vmul.f32 0.5, %v6836_v33  ;;  %v2804_v28 = vmul.f32 0.5, %v6874_v62 }
 0x84f   :  { %v2785_v46 = vpop.f32.mrf.mxu0  ;;  %v3119_v58 = vadd.f32 1.0, %v4952_v35  ;;  %v3034_v53 = vmul.f32 0.7978846, %v2989_v32  ;;  %v7219_v42 = vmul.f32 %v2921_v9, %v7108_v40  ;;  %v2843_v7 = vmul.f32 0.044715, %v7192_v48 }
 0x850   :  { %3880 = vmatpush1.bf16.msra.mxu1 %v4792_v0  ;;  %3753 = vmatprep.mubr.bf16.mxu1 %v3200_v3  ;;  %v3202_v24 = vpack.c.bf16 %v3167_v31, %v3162_v17  ;;  %v3039_v5 = vmul.f32 0.7978846, %v2994_v22  ;;  %v3051_v59 = vmul.f32 0.7978846, %v3006_v12  ;;  %v3159_v62 = vmul.f32 %v3114_v47, %v2799_v49 }
 0x851   :  { %v2786_v60 = vpop.f32.mrf.mxu0  ;;  %v4954_v19 = vpop.eup %4953  ;;  %3881 = vmatprep.subr.bf16.mxu1 %v4797_v2  ;;  %v3164_v15 = vmul.f32 %v3119_v58, %v2804_v28  ;;  %v2838_v20 = vmul.f32 0.044715, %v7207_v21  ;;  %4965 = vtanh.f32 %v3034_v53  ;;  %v2991_v9 = vadd.f32 %v7047_v4, %v6916_v56  ;;  %v4803_v4 = vld [vmem:[%s7690_s6 + $0x214] ss:$8 sps:$4 sm:$0xff]  }
 0x852   :  { %v3116_v37 = vadd.f32 1.0, %v4954_v19  ;;  %v4956_v0 = vpop.eup %4955  ;;  %3834 = vmatprep.mubr.bf16.mxu0 %v3202_v24  ;;  %v2996_v13 = vadd.f32 %v7065_v45, %v6961_v50  ;;  %v2801_v46 = vmul.f32 0.5, %v6839_v29  ;;  %v2806_v14 = vmul.f32 0.5, %v7786_v38  ;;  %v4801_v60 = vld [vmem:[%s7690_s6 + $0x210] ss:$8 sps:$4 sm:$0xff]  }
 0x853   :  { %v2787_v33 = vpop.f32.mrf.mxu0  ;;  %v3199_v2 = vpack.c.bf16 %v3164_v15, %v3159_v62  ;;  %v3121_v12 = vadd.f32 1.0, %v4956_v0  ;;  %v2888_v17 = vmul.f32 %v2843_v7, %v7192_v48  ;;  %4967 = vtanh.f32 %v3039_v5 }
 0x854   :  { %3882 = vmatpush1.bf16.msra.mxu1 %v4795_v10  ;;  %v3036_v25 = vmul.f32 0.7978846, %v2991_v9  ;;  %v3041_v32 = vmul.f32 0.7978846, %v2996_v13  ;;  %v3161_v29 = vmul.f32 %v3116_v37, %v2801_v46  ;;  %v2810_v35 = vmul.f32 0.5, %v6920_v8  ;;  %v7802_v46 = vld [vmem:[#allocation42_spill] sm:$0xff] }
 0x855   :  { %3883 = vmatprep.subr.bf16.mxu1 %v4800_v23  ;;  %v4958_v45 = vpop.eup %4957  ;;  %3754 = vmatmul.mubr.bf16.gmra.mxu1 %v3199_v2  ;;  %v3166_v38 = vmul.f32 %v3121_v12, %v2806_v14  ;;  %v3000_v3 = vadd.f32 %v7094_v61, %v6997_v11  ;;  %v2815_v47 = vmul.f32 0.5, %v6975_v41  ;;  %v3005_v10 = vadd.f32 %v7167_v36, %v7069_v43  ;;  %v4806_v61 = vld [vmem:[%s7690_s6 + $0x204] ss:$8 sps:$4 sm:$0xff]   ;;  %v4804_v13 = vld [vmem:[%s7690_s6 + $0x200] ss:$8 sps:$4 sm:$0xff]  }
 0x856   :  { %v4960_v31 = vpop.eup %4959  ;;  %v3125_v22 = vadd.f32 1.0, %v4958_v45  ;;  %4969 = vtanh.f32 %v3036_v25  ;;  %v2812_v53 = vmul.f32 0.5, %v6943_v34  ;;  %v2817_v19 = vmul.f32 0.5, %v6979_v52  ;;  %v7801_v34 = vld [vmem:[#allocation45_spill] sm:$0xff]  ;;  %v7803_v25 = vld [vmem:[#allocation36_spill] sm:$0xff] }
 0x857   :  { %v4962_v49 = vpop.eup %4961  ;;  %v3201_v28 = vpack.c.bf16 %v3166_v38, %v3161_v29  ;;  %v3130_v58 = vadd.f32 1.0, %v4960_v31  ;;  %4971 = vtanh.f32 %v3041_v32  ;;  %v3045_v8 = vmul.f32 0.7978846, %v3000_v3  ;;  %v7804_v32 = vld [vmem:[#allocation43_spill] sm:$0xff]  ;;  %v7805_v45 = vld [vmem:[#allocation48_spill] sm:$0xff]  ;;  %v7807_v29 = vld [vmem:[#allocation49_spill] sm:$0xff] }
 0x858   :  { %3884 = vmatpush1.bf16.msra.mxu1 %v4798_v26  ;;  %v4964_v41 = vpop.eup %4963  ;;  %v3127_v36 = vadd.f32 1.0, %v4962_v49  ;;  %v3050_v7 = vmul.f32 0.7978846, %v3005_v10  ;;  %v3170_v24 = vmul.f32 %v3125_v22, %v2810_v35  ;;  %v2877_v33 = vmul.f32 0.044715, %v7177_v16  ;;  %v7808_v3 = vld [vmem:[#allocation44_spill] sm:$0xff] }
 0x859   :  { %3885 = vmatprep.subr.bf16.mxu1 %v4803_v4  ;;  %3835 = vmatmul.mubr.bf16.gmra.mxu0 %v3201_v28  ;;  %v3175_v5 = vmul.f32 %v3130_v58, %v2815_v47  ;;  %v3132_v23 = vadd.f32 1.0, %v4964_v41  ;;  %4973 = vtanh.f32 %v3045_v8  ;;  %v2883_v62 = vmul.f32 %v2838_v20, %v7207_v21  ;;  %v7809_v22 = vld [vmem:[#allocation33_spill] sm:$0xff]  ;;  %v7810_v10 = vld [vmem:[#allocation46_spill] sm:$0xff] }
 0x85a   :  { %v3172_v15 = vmul.f32 %v3127_v36, %v2812_v53  ;;  %4975 = vtanh.f32 %v3050_v7  ;;  %v3002_v9 = vadd.f32 %v7801_v34, %v7020_v30  ;;  %v3007_v52 = vadd.f32 %v7184_v54, %v7084_v51 }
 0x85b   :  { %v3205_v37 = vpack.c.bf16 %v3175_v5, %v3170_v24  ;;  %v3177_v0 = vmul.f32 %v3132_v23, %v2817_v19  ;;  %4977 = vtanh.f32 %v3051_v59  ;;  %v3011_v2 = vadd.f32 %v7219_v42, %v7108_v40  ;;  %v7806_v42 = vld [vmem:[#allocation41_spill] sm:$0xff] }
 0x85c   :  { %3886 = vmatpush1.bf16.msra.mxu1 %v4801_v60  ;;  %v2933_v20 = vmul.f32 %v2888_v17, %v7192_v48  ;;  %v7267_v14 = vadd.f32 %v7802_v46, %v7796_v1  ;;  %v3047_v26 = vmul.f32 0.7978846, %v3002_v9  ;;  %v3052_v54 = vmul.f32 0.7978846, %v3007_v52 }
 0x85d   :  { %3887 = vmatprep.subr.bf16.mxu1 %v4806_v61  ;;  %3763 = vmatprep.mubr.bf16.mxu1 %v3205_v37  ;;  %v3207_v12 = vpack.c.bf16 %v3177_v0, %v3172_v15  ;;  %v2999_v4 = vadd.f32 %v7804_v32, %v7803_v25  ;;  %4979 = vtanh.f32 %v7805_v45  ;;  %v2920_v59 = vmul.f32 %v7203_v63, %v7160_v39 }
 0x85e   :  { %v3004_v17 = vadd.f32 %v7807_v29, %v7806_v42  ;;  %v4966_v38 = vpop.eup %4965  ;;  %v2928_v35 = vmul.f32 %v2883_v62, %v7207_v21  ;;  %v7279_v31 = vadd.f32 %v7808_v3, %v7796_v1  ;;  %4981 = vtanh.f32 %v3047_v26 }
 0x85f   :  { %3844 = vmatprep.mubr.bf16.mxu0 %v3207_v12  ;;  %v3044_v47 = vmul.f32 0.7978846, %v2999_v4  ;;  %v2919_v60 = vmul.f32 %v7810_v10, %v7809_v22  ;;  %v2922_v49 = vmul.f32 %v2877_v33, %v7177_v16  ;;  %v3124_v63 = vadd.f32 1.0, %v4966_v38  ;;  %v7812_v38 = vld [vmem:[#allocation47_spill] sm:$0xff]  ;;  %v7813_v10 = vld [vmem:[#allocation50_spill] sm:$0xff] }
 0x860   :  { %3888 = vmatpush1.bf16.msra.mxu1 %v4804_v13  ;;  %v3049_v28 = vmul.f32 0.7978846, %v3004_v17  ;;  %v7811_v58 = vmov 0   ;;  %v4968_v8 = vpop.eup %4967  ;;  %v3056_v61 = vmul.f32 0.7978846, %v3011_v2  ;;  %v2978_v41 = vadd.f32 %v2933_v20, %v7192_v48 }
 0x861   :  { %4148 = vmatprep.subr.bf16.mxu1 %v7811_v58  ;;  %v2848_v53 = vmul.f32 0.044715, %v7267_v14  ;;  %4983 = vtanh.f32 %v3052_v54  ;;  %v2809_v19 = vmul.f32 0.5, %v7799_v27  ;;  %v2814_v36 = vmul.f32 0.5, %v6955_v55 }
 0x862   :  { %v3129_v7 = vadd.f32 1.0, %v4968_v8  ;;  %4985 = vtanh.f32 %v3044_v47  ;;  %v2973_v5 = vadd.f32 %v2928_v35, %v7207_v21  ;;  %v2853_v23 = vmul.f32 0.044715, %v7279_v31 }
 0x863   :  { %v4970_v24 = vpop.eup %4969  ;;  %4987 = vtanh.f32 %v3049_v28  ;;  %v2965_v33 = vmul.f32 %v2920_v59, %v7160_v39  ;;  %v3169_v15 = vmul.f32 %v3124_v63, %v2809_v19  ;;  %v2811_v0 = vmul.f32 0.5, %v6916_v56 }
 0x864   :  { %v4972_v62 = vpop.eup %4971  ;;  %v3174_v37 = vmul.f32 %v3129_v7, %v2814_v36  ;;  %v3126_v34 = vadd.f32 1.0, %v4970_v24  ;;  %v2816_v27 = vmul.f32 0.5, %v6961_v50  ;;  %v2967_v52 = vmul.f32 %v2922_v49, %v7177_v16 }
 0x865   :  { %v3131_v9 = vadd.f32 1.0, %v4972_v62  ;;  %v3010_v55 = vadd.f32 %v2965_v33, %v7160_v39  ;;  %v3023_v2 = vmul.f32 0.7978846, %v2978_v41  ;;  %v2893_v20 = vmul.f32 %v2848_v53, %v7267_v14 }
 0x866   :  { %v4974_v13 = vpop.eup %4973  ;;  %v3204_v46 = vpack.c.bf16 %v3174_v37, %v3169_v15  ;;  %v3171_v12 = vmul.f32 %v3126_v34, %v2811_v0  ;;  %v3012_v56 = vadd.f32 %v2967_v52, %v7177_v16  ;;  %v2898_v45 = vmul.f32 %v2853_v23, %v7279_v31 }
 0x867   :  { %v4976_v26 = vpop.eup %4975  ;;  %v3176_v54 = vmul.f32 %v3131_v9, %v2816_v27  ;;  %v3135_v32 = vadd.f32 1.0, %v4974_v13  ;;  %v3055_v4 = vmul.f32 0.7978846, %v3010_v55  ;;  %v2820_v50 = vmul.f32 0.5, %v6997_v11 }
 0x868   :  { %3764 = vmatmul.mubr.bf16.gmra.mxu1 %v3204_v46  ;;  %v2825_v59 = vmul.f32 0.5, %v7069_v43  ;;  %v3140_v29 = vadd.f32 1.0, %v4976_v26  ;;  %v4978_v17 = vpop.eup %4977  ;;  %v7303_v35 = vadd.f32 %v7812_v38, %v7796_v1  ;;  %v3057_v47 = vmul.f32 0.7978846, %v3012_v56 }
 0x869   :  { %v3206_v3 = vpack.c.bf16 %v3176_v54, %v3171_v12  ;;  %4989 = vtanh.f32 %v3055_v4  ;;  %v7307_v49 = vadd.f32 %v7813_v10, %v7796_v1  ;;  %v3180_v63 = vmul.f32 %v3135_v32, %v2820_v50 }
 0x86a   :  { %v3185_v28 = vmul.f32 %v3140_v29, %v2825_v59  ;;  %v4980_v8 = vpop.eup %4979  ;;  %v3018_v41 = vmul.f32 0.7978846, %v2973_v5  ;;  %v2938_v11 = vmul.f32 %v2893_v20, %v7267_v14  ;;  %4991 = vtanh.f32 %v3057_v47 }
 0x86b   :  { %3845 = vmatmul.mubr.bf16.gmra.mxu0 %v3206_v3  ;;  %v2964_v43 = vmul.f32 %v2919_v60, %v7809_v22  ;;  %v4982_v53 = vpop.eup %4981  ;;  %4993 = vtanh.f32 %v3023_v2  ;;  %v2943_v19 = vmul.f32 %v2898_v45, %v7279_v31  ;;  %v3141_v7 = vadd.f32 1.0, %v4978_v17  ;;  %v7814_v2 = vld [vmem:[#allocation34_spill] sm:$0xff] }
 0x86c   :  { %v3210_v36 = vpack.c.bf16 %v3185_v28, %v3180_v63  ;;  %v2858_v24 = vmul.f32 0.044715, %v7303_v35  ;;  %v3137_v23 = vadd.f32 1.0, %v4982_v53  ;;  %4995 = vtanh.f32 %v3056_v61 }
 0x86d   :  { %v3009_v33 = vadd.f32 %v2964_v43, %v7809_v22  ;;  %v2863_v5 = vmul.f32 0.044715, %v7307_v49  ;;  %v2822_v15 = vmul.f32 0.5, %v7020_v30  ;;  %v2826_v60 = vmul.f32 0.5, %v7044_v6 }
 0x86e   :  { %v4984_v62 = vpop.eup %4983  ;;  %3773 = vmatprep.mubr.bf16.mxu1 %v3210_v36  ;;  %v3136_v37 = vadd.f32 1.0, %v4980_v8  ;;  %v2827_v34 = vmul.f32 0.5, %v7084_v51  ;;  %v2819_v9 = vmul.f32 0.5, %v7803_v25  ;;  %v2824_v13 = vmul.f32 0.5, %v7806_v42 }
 0x86f   :  { %v4986_v0 = vpop.eup %4985  ;;  %v3142_v27 = vadd.f32 1.0, %v4984_v62  ;;  %v3054_v55 = vmul.f32 0.7978846, %v3009_v33  ;;  %v2821_v20 = vmul.f32 0.5, %v7814_v2  ;;  %v3186_v46 = vmul.f32 %v3141_v7, %v2826_v60 }
 0x870   :  { %v4988_v52 = vpop.eup %4987  ;;  %v3134_v61 = vadd.f32 1.0, %v4986_v0  ;;  %v3182_v12 = vmul.f32 %v3137_v23, %v2822_v15  ;;  %v2988_v6 = vadd.f32 %v2943_v19, %v7279_v31  ;;  %v2908_v54 = vmul.f32 %v2863_v5, %v7307_v49 }
 0x871   :  { %v3187_v26 = vmul.f32 %v3142_v27, %v2827_v34  ;;  %v3139_v30 = vadd.f32 1.0, %v4988_v52  ;;  %4997 = vtanh.f32 %v3054_v55  ;;  %v3181_v51 = vmul.f32 %v3136_v37, %v2821_v20 }
 0x872   :  { %v7325_v25 = vadd.f32 %v7164_v57, %v7796_v1  ;;  %v3179_v4 = vmul.f32 %v3134_v61, %v2819_v9  ;;  %v2983_v56 = vadd.f32 %v2938_v11, %v7267_v14  ;;  %v2903_v45 = vmul.f32 %v2858_v24, %v7303_v35 }
 0x873   :  { %v3212_v32 = vpack.c.bf16 %v3187_v26, %v3182_v12  ;;  %v3184_v42 = vmul.f32 %v3139_v30, %v2824_v13  ;;  %v3211_v50 = vpack.c.bf16 %v3186_v46, %v3181_v51  ;;  %4999 = vtanh.f32 %v3018_v41 }
 0x874   :  { %v7331_v59 = vadd.f32 %v7142_v18, %v7796_v1  ;;  %v3033_v38 = vmul.f32 0.7978846, %v2988_v6  ;;  %v2953_v57 = vmul.f32 %v2908_v54, %v7307_v49  ;;  %v2873_v3 = vmul.f32 0.044715, %v7325_v25 }
 0x875   :  { %3854 = vmatprep.mubr.bf16.mxu0 %v3212_v32  ;;  %v3209_v29 = vpack.c.bf16 %v3184_v42, %v3179_v4  ;;  %v2830_v47 = vmul.f32 0.5, %v7160_v39  ;;  %v3028_v28 = vmul.f32 0.7978846, %v2983_v56  ;;  %v2948_v8 = vmul.f32 %v2903_v45, %v7303_v35 }
 0x876   :  { %v4990_v17 = vpop.eup %4989  ;;  %3855 = vmatmul.mubr.bf16.gmra.mxu0 %v3211_v50  ;;  %v2868_v18 = vmul.f32 0.044715, %v7331_v59  ;;  %v2832_v43 = vmul.f32 0.5, %v7177_v16  ;;  %5001 = vtanh.f32 %v3033_v38  ;;  %v2998_v36 = vadd.f32 %v2953_v57, %v7307_v49 }
 0x877   :  { %3774 = vmatmul.mubr.bf16.gmra.mxu1 %v3209_v29  ;;  %v3145_v10 = vadd.f32 1.0, %v4990_v17  ;;  %v4992_v63 = vpop.eup %4991  ;;  %v2918_v7 = vmul.f32 %v2873_v3, %v7325_v25  ;;  %v7343_v39 = vadd.f32 %v7188_v44, %v7796_v1  ;;  %v2831_v33 = vmul.f32 0.5, %v7108_v40 }
 0x878   :  { %v4994_v41 = vpop.eup %4993  ;;  %v3147_v53 = vadd.f32 1.0, %v4992_v63  ;;  %5003 = vtanh.f32 %v3028_v28  ;;  %v2993_v5 = vadd.f32 %v2948_v8, %v7303_v35  ;;  %v2913_v16 = vmul.f32 %v2868_v18, %v7331_v59 }
 0x879   :  { %v3190_v11 = vmul.f32 %v3145_v10, %v2830_v47  ;;  %v4996_v19 = vpop.eup %4995  ;;  %v3043_v0 = vmul.f32 0.7978846, %v2998_v36  ;;  %v2829_v34 = vmul.f32 0.5, %v7809_v22  ;;  %v2963_v44 = vmul.f32 %v2918_v7, %v7325_v25 }
 0x87a   :  { %v3192_v23 = vmul.f32 %v3147_v53, %v2832_v43  ;;  %v3146_v62 = vadd.f32 1.0, %v4996_v19  ;;  %v2878_v1 = vmul.f32 0.044715, %v7343_v39  ;;  %v3038_v9 = vmul.f32 0.7978846, %v2993_v5 }
 0x87b   :  { %v3215_v24 = vpack.c.bf16 %v3190_v11, %v3190_v11  ;;  %v2958_v55 = vmul.f32 %v2913_v16, %v7331_v59  ;;  %v3113_v61 = vadd.f32 1.0, %v4994_v41  ;;  %5005 = vtanh.f32 %v3043_v0 }
 0x87c   :  { %v3217_v15 = vpack.c.bf16 %v3192_v23, %v3192_v23  ;;  %v3191_v60 = vmul.f32 %v3146_v62, %v2831_v33  ;;  %v3008_v2 = vadd.f32 %v2963_v44, %v7325_v25  ;;  %v2923_v22 = vmul.f32 %v2878_v1, %v7343_v39  ;;  %v4809_v44 = vld [vmem:[%s7692_s7 + $0x28] sm:$0xff]  }
 0x87d   :  { %3783 = vmatprep.mubr.bf16.mxu1 %v3215_v24  ;;  %v2798_v12 = vmul.f32 0.5, %v7192_v48  ;;  %5007 = vtanh.f32 %v3038_v9  ;;  %v3003_v26 = vadd.f32 %v2958_v55, %v7331_v59  ;;  %v2793_v6 = vmul.f32 0.5, %v7207_v21 }
 0x87e   :  { %v4998_v37 = vpop.eup %4997  ;;  %3864 = vmatprep.mubr.bf16.mxu0 %v3217_v15  ;;  %v3216_v40 = vpack.c.bf16 %v3191_v60, %v3191_v60  ;;  %v3053_v51 = vmul.f32 0.7978846, %v3008_v2  ;;  %v2968_v32 = vmul.f32 %v2923_v22, %v7343_v39  ;;  %v2808_v29 = vmul.f32 0.5, %v7279_v31  ;;  %v4812_v2 = vld [vmem:[%s7692_s7 + $0x10] sm:$0xff]  }
 0x87f   :  { %v3144_v27 = vadd.f32 1.0, %v4998_v37  ;;  %v3158_v54 = vmul.f32 %v3113_v61, %v2798_v12  ;;  %v3048_v56 = vmul.f32 0.7978846, %v3003_v26  ;;  %v2803_v38 = vmul.f32 0.5, %v7267_v14 }
 0x880   :  { %3865 = vmatmul.mubr.bf16.gmra.mxu0 %v3216_v40  ;;  %v5000_v13 = vpop.eup %4999  ;;  %5009 = vtanh.f32 %v3053_v51  ;;  %v3013_v48 = vadd.f32 %v2968_v32, %v7343_v39  ;;  %v2818_v8 = vmul.f32 0.5, %v7307_v49  ;;  %v2813_v31 = vmul.f32 0.5, %v7303_v35  ;;  %v4810_v40 = vld [vmem:[%s7692_s7 + $0x20] sm:$0xff]  }
 0x881   :  { %v3189_v52 = vmul.f32 %v3144_v27, %v2829_v34  ;;  %4045 = vmatprep.mubr.bf16.mxu0 %v7811_v58  ;;  %v3108_v46 = vadd.f32 1.0, %v5000_v13  ;;  %5011 = vtanh.f32 %v3048_v56  ;;  %v2828_v36 = vmul.f32 0.5, %v7325_v25 }
 0x882   :  { %v3058_v21 = vmul.f32 0.7978846, %v3013_v48  ;;  %v2823_v49 = vmul.f32 0.5, %v7331_v59  ;;  %v2833_v5 = vmul.f32 0.5, %v7343_v39  ;;  %v4807_v59 = vld [vmem:[%s7692_s7 + $0x38] sm:$0xff]   ;;  %v4808_v39 = vld [vmem:[%s7692_s7 + $0x30] sm:$0xff]  }
 0x883   :  { %v3214_v20 = vpack.c.bf16 %v3189_v52, %v3189_v52  ;;  %v5002_v30 = vpop.eup %5001  ;;  %v3153_v42 = vmul.f32 %v3108_v46, %v2793_v6  ;;  %v4811_v52 = vld [vmem:[%s7692_s7 + $0x18] sm:$0xff]   ;;  %v4813_v46 = vld [vmem:[%s7692_s7 + $0x8] sm:$0xff]  }
 0x884   :  { %v3123_v50 = vadd.f32 1.0, %v5002_v30  ;;  %5013 = vtanh.f32 %v3058_v21  ;;  %v4814_v30 = vld [vmem:[%s7692_s7] sm:$0xff]   ;;  %v4815_v6 = vld [vmem:[%s7692_s7 + $0x48] sm:$0x3f]  }
 0x885   :  { %3784 = vmatmul.mubr.bf16.gmra.mxu1 %v3214_v20  ;;  %v5004_v4 = vpop.eup %5003  ;;  %v3198_v45 = vpack.c.bf16 %v3158_v54, %v3153_v42  ;;  %v4146_v32 = vsel %vm758_vm1, %v4815_v6, 0 }
 0x886   :  { %3905 = vmatprep.mubr.bf16.mxu1 %v7811_v58  ;;  %v3118_v17 = vadd.f32 1.0, %v5004_v4  ;;  %v3168_v57 = vmul.f32 %v3123_v50, %v2808_v29 }
 0x888   :  { %v5006_v3 = vpop.eup %5005  ;;  %v3163_v47 = vmul.f32 %v3118_v17, %v2803_v38 }
 0x889   :  { %v3133_v28 = vadd.f32 1.0, %v5006_v3 }
 0x88a   :  { %v5008_v10 = vpop.eup %5007  ;;  %v3203_v63 = vpack.c.bf16 %v3168_v57, %v3163_v47 }
 0x88b   :  { %v3128_v41 = vadd.f32 1.0, %v5008_v10  ;;  %v3178_v18 = vmul.f32 %v3133_v28, %v2818_v8  ;;  %v5035_v8 = vld [vmem:[%s7686_s9] sm:$0x3f] }
 0x88d   :  { %4460 = vmatmul.mubr.msk.bf16.vlgmr.msra.gmra.mxu1 %vm3695_vm12, %v3198_v45  ;;  %v5010_v11 = vpop.eup %5009  ;;  %v3173_v43 = vmul.f32 %v3128_v41, %v2813_v31  ;;  %v7815_v41 = vld [vmem:[#allocation3_spill] sm:$0xff] }
 0x88e   :  { %3915 = vmatprep.mubr.bf16.mxu1 %v7811_v58  ;;  %v5012_v14 = vpop.eup %5011  ;;  %v3143_v19 = vadd.f32 1.0, %v5010_v11  ;;  %4149 = vmatpush1.bf16.msra.mxu1 %v4807_v59  ;;  %v7486_v31 = vrot.slane %v5035_v8, %v7815_v41 }
 0x88f   :  { %v3208_v53 = vpack.c.bf16 %v3178_v18, %v3173_v43  ;;  %v3138_v7 = vadd.f32 1.0, %v5012_v14  ;;  %4150 = vmatprep.subr.bf16.mxu1 %v7811_v58  ;;  %v5036_v43 = vld [vmem:[%s7686_s9 + $0x8] sm:$0x3f] }
 0x890   :  { %v3188_v24 = vmul.f32 %v3143_v19, %v2828_v36  ;;  %v7494_v14 = vrot.slane %v5036_v43, %v7815_v41 }
 0x891   :  { %v5014_v23 = vpop.eup %5013  ;;  %v3183_v33 = vmul.f32 %v3138_v7, %v2823_v49 }
 0x892   :  { %v3148_v35 = vadd.f32 1.0, %v5014_v23  ;;  %4151 = vmatpush1.bf16.msra.mxu1 %v4808_v39 }
 0x893   :  { %v3213_v62 = vpack.c.bf16 %v3188_v24, %v3183_v33  ;;  %4152 = vmatprep.subr.bf16.mxu1 %v7811_v58 }
 0x894   :  { %v3193_v16 = vmul.f32 %v3148_v35, %v2833_v5 }
 0x895   :  { %4461 = vmatmul.mubr.msk.bf16.gmra.mxu1 %vm3695_vm12, %v3203_v63 }
 0x896   :  { %3925 = vmatprep.mubr.bf16.mxu1 %v7811_v58  ;;  %v3218_v25 = vpack.c.bf16 %v3193_v16, %v3193_v16  ;;  %4153 = vmatpush1.bf16.msra.mxu1 %v4809_v44 }
 0x897   :  { %4154 = vmatprep.subr.bf16.mxu1 %v7811_v58 }
 0x89a   :  { %4155 = vmatpush1.bf16.msra.mxu1 %v4810_v40 }
 0x89b   :  { %4156 = vmatprep.subr.bf16.mxu1 %v7811_v58 }
 0x89d   :  { %4462 = vmatmul.mubr.msk.bf16.gmra.mxu1 %vm3695_vm12, %v3208_v53 }
 0x89e   :  { %3935 = vmatprep.mubr.bf16.mxu1 %v7811_v58  ;;  %4157 = vmatpush1.bf16.msra.mxu1 %v4811_v52 }
 0x89f   :  { %4158 = vmatprep.subr.bf16.mxu1 %v7811_v58 }
 0x8a2   :  { %4159 = vmatpush1.bf16.msra.mxu1 %v4812_v2 }
 0x8a3   :  { %4160 = vmatprep.subr.bf16.mxu1 %v7811_v58 }
 0x8a5   :  { %4463 = vmatmul.mubr.msk.bf16.gmra.mxu1 %vm3695_vm12, %v3213_v62 }
 0x8a6   :  { %3945 = vmatprep.mubr.bf16.mxu1 %v7811_v58  ;;  %4161 = vmatpush1.bf16.msra.mxu1 %v4813_v46 }
 0x8a7   :  { %4162 = vmatprep.subr.bf16.mxu1 %v7811_v58 }
 0x8aa   :  { %4163 = vmatpush1.bf16.msra.mxu1 %v4814_v30 }
 0x8ab   :  { %4176 = vmatprep.subr.bf16.mxu1 %v7811_v58 }
 0x8ad   :  { %4464 = vmatmul.mubr.msk.bf16.gmra.mxu1 %vm3695_vm12, %v3218_v25 }
 0x8ae   :  { %4177 = vmatpush2.bf16.msra.mxu1 %v4146_v32 }
 0x8af   :  { %4178 = vmatprep.subr.bf16.mxu1 %v7811_v58 }
 0x907   :  { %v7377_v15 = vpop.f32.mrf.mxu1 }
 0x908   :  { %v3746_v36 = vadd.f32 %v7377_v15, %v7486_v31 }
 0x909   :  { %v7379_v60 = vpop.f32.mrf.mxu0  ;;  %v7384_v37 = vpop.f32.mrf.mxu1 }
 0x90a   :  { %v3748_v49 = vadd.f32 %v7384_v37, %v7494_v14  ;;  %v3827_v23 = vadd.f32 %v7379_v60, %v3746_v36  ;;  %v7816_v37 = vld [vmem:[#allocation6_spill] sm:$0xff] }
 0x90b   :  { %v7390_v0 = vpop.f32.mrf.mxu0  ;;  %v7392_v34 = vpop.f32.mrf.mxu1 }
 0x90c   :  { %v3750_v33 = vadd.f32 %v7392_v34, %v7486_v31  ;;  %v3829_v35 = vadd.f32 %v7390_v0, %v3748_v49 }
 0x90d   :  { %v7398_v1 = vpop.f32.mrf.mxu0  ;;  %v7400_v27 = vpop.f32.mrf.mxu1 }
 0x90e   :  { %v3752_v5 = vadd.f32 %v7400_v27, %v7494_v14  ;;  %v3831_v15 = vadd.f32 %v7398_v1, %v3750_v33  ;;  %v7817_v27 = vld [vmem:[#allocation5_spill] sm:$0xff] }
 0x90f   :  { %v7406_v9 = vpop.f32.mrf.mxu0 }
 0x910   :  { %v3833_v34 = vadd.f32 %v7406_v9, %v3752_v5  ;;  %v7818_v9 = vld [vmem:[#allocation8_spill] sm:$0xff] }
 0x915   :  { %v7408_v55 = vpop.f32.mrf.mxu1 }
 0x916   :  { %v3756_v59 = vadd.f32 %v7408_v55, %v7486_v31 }
 0x917   :  { %v7416_v61 = vpop.f32.mrf.mxu1 }
 0x918   :  { %v3758_v0 = vadd.f32 %v7416_v61, %v7494_v14 }
 0x919   :  { %v7414_v13 = vpop.f32.mrf.mxu0  ;;  %v7424_v20 = vpop.f32.mrf.mxu1 }
 0x91a   :  { %v3837_v52 = vadd.f32 %v7414_v13, %v3756_v59  ;;  %v3760_v2 = vadd.f32 %v7424_v20, %v7486_v31  ;;  %v7819_v13 = vld [vmem:[#allocation7_spill] sm:$0xff] }
 0x91b   :  { %v7422_v22 = vpop.f32.mrf.mxu0  ;;  %v7432_v26 = vpop.f32.mrf.mxu1 }
 0x91c   :  { %v3839_v6 = vadd.f32 %v7422_v22, %v3758_v0  ;;  %v3762_v32 = vadd.f32 %v7432_v26, %v7494_v14  ;;  %v7820_v22 = vld [vmem:[#allocation10_spill] sm:$0xff] }
 0x91d   :  { %v7430_v12 = vpop.f32.mrf.mxu0 }
 0x91f   :  { %v7441_v54 = vpop.f32.mrf.mxu0 }
 0x928   :  { %v7443_v51 = vpop.f32.mrf.mxu1 }
 0x929   :  { %v3766_v43 = vadd.f32 %v7443_v51, %v7486_v31 }
 0x92a   :  { %v7449_v42 = vpop.f32.mrf.mxu1 }
 0x92b   :  { %v7447_v4 = vpop.f32.mrf.mxu0  ;;  %v3768_v49 = vadd.f32 %v7449_v42, %v7494_v14 }
 0x92c   :  { %v7454_v45 = vpop.f32.mrf.mxu1  ;;  %v3847_v33 = vadd.f32 %v7447_v4, %v3766_v43  ;;  %v7823_v4 = vld [vmem:[#allocation11_spill] sm:$0xff] }
 0x92d   :  { %v7451_v56 = vpop.f32.mrf.mxu0 }
 0x92e   :  { %v7460_v29 = vpop.f32.mrf.mxu1 }
 0x92f   :  { %v7456_v48 = vpop.f32.mrf.mxu0 }
 0x931   :  { %v7458_v50 = vpop.f32.mrf.mxu0 }
 0x936   :  { %v7462_v17 = vpop.f32.mrf.mxu0 }
 0x937   :  { %v7464_v21 = vpop.f32.mrf.mxu1 }
 0x938   :  { %v7466_v38 = vpop.f32.mrf.mxu0 }
 0x939   :  { %v7468_v57 = vpop.f32.mrf.mxu1 }
 0x93a   :  { %v7470_v3 = vpop.f32.mrf.mxu0 }
 0x93b   :  { %v7472_v47 = vpop.f32.mrf.mxu1 }
 0x93c   :  { %v7474_v58 = vpop.f32.mrf.mxu0 }
 0x93d   :  { %v7476_v10 = vpop.f32.mrf.mxu1 }
 0x940   :  { %v7478_v63 = vpop.f32.mrf.mxu0 }
 0x942   :  { %v7480_v28 = vpop.f32.mrf.mxu0 }
 0x944   :  { %v3870_v11 = vpop.f32.mrf.mxu0 }
 0x945   :  { %v7488_v18 = vpop.f32.mrf.mxu1  ;;  %v3841_v11 = vadd.f32 %v7430_v12, %v3760_v2  ;;  %v7821_v12 = vld [vmem:[#allocation9_spill] sm:$0xff]  ;;  %v3780_v2 = vadd.f32 %v7472_v47, %v7486_v31 }
 0x946   :  { %v3871_v19 = vpop.f32.mrf.mxu0 }
 0x947   :  { %v7496_v53 = vpop.f32.mrf.mxu1 }
 0x949   :  { %v3789_v7 = vpop.f32.mrf.mxu1 }
 0x94a   :  { %v3843_v7 = vadd.f32 %v7441_v54, %v3762_v32  ;;  %v7822_v54 = vld [vmem:[#allocation12_spill] sm:$0xff] }
 0x94b   :  { %v3790_v24 = vpop.f32.mrf.mxu1 }
 0x94d   :  { %v3907_v62 = vpop.f32.mrf.mxu1 }
 0x94e   :  { %v3908_v16 = vadd.f32 %v3907_v62, %v3827_v23  ;;  %v3770_v62 = vadd.f32 %v7454_v45, %v7486_v31 }
 0x94f   :  { %v3909_v25 = vpop.f32.mrf.mxu1 }
 0x950   :  { %v7512_v39 = vadd.f32 %v3908_v16, %v7816_v37  ;;  %v3910_v60 = vadd.f32 %v3909_v25, %v3829_v35  ;;  %v3849_v16 = vadd.f32 %v7451_v56, %v3768_v49  ;;  %v3772_v25 = vadd.f32 %v7460_v29, %v7494_v14  ;;  %v7824_v56 = vld [vmem:[#allocation14_spill] sm:$0xff]  ;;  %v7830_v49 = vld [vmem:[#allocation20_spill] sm:$0xff] }
 0x951   :  { %v3911_v44 = vpop.f32.mrf.mxu1  ;;  %v3851_v37 = vadd.f32 %v7456_v48, %v3770_v62  ;;  %v7825_v48 = vld [vmem:[#allocation13_spill] sm:$0xff] }
 0x952   :  { %3972 = vst [vmem:[%s7693_s10] sm:$0xff] %v7512_v39  ;;  %v7522_v1 = vadd.f32 %v3910_v60, %v7817_v27  ;;  %v3912_v40 = vadd.f32 %v3911_v44, %v3831_v15  ;;  %v3776_v60 = vadd.f32 %v7464_v21, %v7486_v31  ;;  %v3853_v0 = vadd.f32 %v7458_v50, %v3772_v25  ;;  %v7826_v50 = vld [vmem:[#allocation16_spill] sm:$0xff] }
 0x953   :  { %v3913_v55 = vpop.f32.mrf.mxu1  ;;  %v3778_v27 = vadd.f32 %v7468_v57, %v7494_v14 }
 0x954   :  { %3973 = vst.msk [vmem:[%s7693_s10 + $0x8] sm:$0xff] %vm58_vm0, %v7522_v1  ;;  %v7533_v61 = vadd.f32 %v3912_v40, %v7818_v9  ;;  %v3914_v46 = vadd.f32 %v3913_v55, %v3833_v34 }
 0x955   :  { %v3917_v30 = vpop.f32.mrf.mxu1 }
 0x956   :  { %3974 = vst [vmem:[%s7693_s10 + $0x10] sm:$0xff] %v7533_v61  ;;  %v7543_v20 = vadd.f32 %v3914_v46, %v7819_v13  ;;  %v3918_v8 = vadd.f32 %v3917_v30, %v3837_v52  ;;  %v3857_v52 = vadd.f32 %v7462_v17, %v3776_v60  ;;  %v3859_v30 = vadd.f32 %v7466_v38, %v3778_v27  ;;  %v7827_v17 = vld [vmem:[#allocation15_spill] sm:$0xff]  ;;  %v7828_v38 = vld [vmem:[#allocation18_spill] sm:$0xff] }
 0x957   :  { %v3919_v41 = vpop.f32.mrf.mxu1 }
 0x958   :  { %3975 = vst.msk [vmem:[%s7693_s10 + $0x18] sm:$0xff] %vm58_vm0, %v7543_v20  ;;  %v7554_v26 = vadd.f32 %v3918_v8, %v7820_v22  ;;  %v3920_v19 = vadd.f32 %v3919_v41, %v3839_v6  ;;  %v3782_v6 = vadd.f32 %v7476_v10, %v7494_v14  ;;  %v3861_v8 = vadd.f32 %v7470_v3, %v3780_v2  ;;  %v7829_v3 = vld [vmem:[#allocation17_spill] sm:$0xff] }
 0x959   :  { %v3921_v36 = vpop.f32.mrf.mxu1  ;;  %v3786_v41 = vadd.f32 %v7488_v18, %v7486_v31 }
 0x95a   :  { %3976 = vst [vmem:[%s7693_s10 + $0x20] sm:$0xff] %v7554_v26  ;;  %v7564_v51 = vadd.f32 %v3920_v19, %v7821_v12  ;;  %v3922_v24 = vadd.f32 %v3921_v36, %v3841_v11  ;;  %v3863_v22 = vadd.f32 %v7474_v58, %v3782_v6  ;;  %v3788_v19 = vadd.f32 %v7496_v53, %v7494_v14  ;;  %v7831_v53 = vld [vmem:[#allocation19_spill] sm:$0xff] }
 0x95b   :  { %v3923_v23 = vpop.f32.mrf.mxu1 }
 0x95c   :  { %3977 = vst.msk [vmem:[%s7693_s10 + $0x28] sm:$0xff] %vm58_vm0, %v7564_v51  ;;  %v7575_v42 = vadd.f32 %v3922_v24, %v7822_v54  ;;  %v3924_v35 = vadd.f32 %v3923_v23, %v3843_v7  ;;  %v3867_v7 = vadd.f32 %v7478_v63, %v3786_v41  ;;  %v3869_v14 = vadd.f32 %v7480_v28, %v3788_v19  ;;  %v7832_v63 = vld [vmem:[#allocation22_spill] sm:$0xff] }
 0x95d   :  { %v3927_v5 = vpop.f32.mrf.mxu1 }
 0x95e   :  { %3978 = vst [vmem:[%s7693_s10 + $0x30] sm:$0xff] %v7575_v42  ;;  %v7585_v45 = vadd.f32 %v3924_v35, %v7823_v4  ;;  %v3928_v15 = vadd.f32 %v3927_v5, %v3847_v33 }
 0x95f   :  { %v3929_v59 = vpop.f32.mrf.mxu1 }
 0x960   :  { %3979 = vst.msk [vmem:[%s7693_s10 + $0x38] sm:$0xff] %vm58_vm0, %v7585_v45  ;;  %v7596_v29 = vadd.f32 %v3928_v15, %v7824_v56  ;;  %v3930_v44 = vadd.f32 %v3929_v59, %v3849_v16  ;;  %v7833_v16 = vld [vmem:[#allocation21_spill] sm:$0xff]  ;;  %v3997_v27 = vpack.c.bf16 %v7585_v45, %v7564_v51  ;;  %v4816_v51 = vld [vmem:[%s7692_s7 + $0x40] sm:$0xff]  }
 0x961   :  { %v3931_v34 = vpop.f32.mrf.mxu1  ;;  %4179 = vmatpush2.bf16.msra.mxu1 %v4816_v51 }
 0x962   :  { %3980 = vst [vmem:[%s7693_s10 + $0x40] sm:$0xff] %v7596_v29  ;;  %v3963_v21 = vadd.f32 %v3930_v44, %v7825_v48  ;;  %v3932_v40 = vadd.f32 %v3931_v34, %v3851_v37  ;;  %v7834_v44 = vld [vmem:[#allocation2_spill] sm:$0xff]  ;;  %v7835_v48 = vld [vmem:[#allocation4_spill] sm:$0xff] }
 0x963   :  { %v3933_v55 = vpop.f32.mrf.mxu1  ;;  %v3990_v34 = vmul.u32 9, %v7834_v44 }
 0x964   :  { %3981 = vst.msk [vmem:[%s7693_s10 + $0x48] sm:$0xff] %vm58_vm0, %v3963_v21  ;;  %v3964_v57 = vadd.f32 %v3932_v40, %v7826_v50  ;;  %v3934_v9 = vadd.f32 %v3933_v55, %v3853_v0  ;;  %v3996_v40 = vpack.c.bf16 %v7575_v42, %v7554_v26  ;;  %v3995_v55 = vpack.c.bf16 %v7543_v20, %v7522_v1 }
 0x965   :  { %v3937_v46 = vpop.f32.mrf.mxu1  ;;  %vm3991_vm1 = vcmp.eq.s32.totalorder %v7835_v48, %v3990_v34 }
 0x966   :  { %3982 = vst [vmem:[%s7693_s10 + $0x50] sm:$0xff] %v3964_v57  ;;  %v3965_v47 = vadd.f32 %v3934_v9, %v7827_v17  ;;  %v3938_v32 = vadd.f32 %v3937_v46, %v3857_v52  ;;  %v3998_v0 = vpack.c.bf16 %v3964_v57, %v7596_v29  ;;  %v3994_v29 = vpack.c.bf16 %v7533_v61, %v7512_v39  ;;  %v4467_v39 = vld [vmem:[%s7694_s8] ss:$0 sm:$0xff] }
 0x967   :  { %v3939_v13 = vpop.f32.mrf.mxu1 }
 0x968   :  { %3983 = vst.msk [vmem:[%s7693_s10 + $0x58] sm:$0xff] %vm58_vm0, %v3965_v47  ;;  %v3966_v10 = vadd.f32 %v3938_v32, %v7828_v38  ;;  %v3940_v11 = vadd.f32 %v3939_v13, %v3859_v30  ;;  %v3999_v56 = vpack.c.bf16 %v3965_v47, %v3963_v21  ;;  %v5039_v21 = vmov 0.0  }
 0x969   :  { %v3941_v43 = vpop.f32.mrf.mxu1  ;;  %v3992_v52 = vsel %vm3991_vm1, 1.0, %v5039_v21 }
 0x96a   :  { %3984 = vst [vmem:[%s7693_s10 + $0x60] sm:$0xff] %v3966_v10  ;;  %v3967_v31 = vadd.f32 %v3940_v11, %v7829_v3  ;;  %v3942_v18 = vadd.f32 %v3941_v43, %v3861_v8  ;;  %v3993_v2 = vpack.c.bf16 %v3992_v52, %v3992_v52 }
 0x96b   :  { %v3943_v36 = vpop.f32.mrf.mxu1 }
 0x96c   :  { %3985 = vst.msk [vmem:[%s7693_s10 + $0x68] sm:$0xff] %vm58_vm0, %v3967_v31  ;;  %v3968_v58 = vadd.f32 %v3942_v18, %v7830_v49  ;;  %v3944_v12 = vadd.f32 %v3943_v36, %v3863_v22 }
 0x96d   :  { %v3947_v24 = vpop.f32.mrf.mxu1 }
 0x96e   :  { %3986 = vst [vmem:[%s7693_s10 + $0x70] sm:$0xff] %v3968_v58  ;;  %v3969_v23 = vadd.f32 %v3944_v12, %v7831_v53  ;;  %v3948_v33 = vadd.f32 %v3947_v24, %v3867_v7  ;;  %v4000_v60 = vpack.c.bf16 %v3968_v58, %v3966_v10 }
 0x96f   :  { %v3949_v62 = vpop.f32.mrf.mxu1 }
 0x970   :  { %3987 = vst.msk [vmem:[%s7693_s10 + $0x78] sm:$0xff] %vm58_vm0, %v3969_v23  ;;  %v3970_v54 = vadd.f32 %v3948_v33, %v7832_v63  ;;  %v3950_v35 = vadd.f32 %v3949_v62, %v3869_v14  ;;  %v4001_v37 = vpack.c.bf16 %v3969_v23, %v3967_v31 }
 0x971   :  { %v3951_v5 = vpop.f32.mrf.mxu1 }
 0x972   :  { %3988 = vst [vmem:[%s7693_s10 + $0x80] sm:$0xff] %v3970_v54  ;;  %v4002_v28 = vpack.c.bf16 %v3970_v54, %v3970_v54  ;;  %v3971_v25 = vadd.f32 %v3950_v35, %v7833_v16 }
 0x973   :  { %v3952_v4 = vpop.f32.mrf.mxu1 }
 0x974   :  { %3989 = vst.msk [vmem:[%s7693_s10 + $0x88] sm:$0xff] %vm58_vm0, %v3971_v25  ;;  %v4003_v15 = vpack.c.bf16 %v3971_v25, %v3971_v25  ;;  %v4008_v59 = vsel %vm1490_vm6, %v4002_v28, 0 }
 0x976   :  { %4465 = vmatprep.subr.msk.bf16.mxu0 %vm1490_vm6, %v4003_v15 }
 0x977   :  { %4020 = vmatpush1.bf16.msra.mxu0 %v4008_v59 }
 0x978   :  { %4021 = vmatprep.subr.bf16.mxu0 %v4001_v37 }
 0x97b   :  { %4022 = vmatpush1.bf16.msra.mxu0 %v4000_v60 }
 0x97c   :  { %4023 = vmatprep.subr.bf16.mxu0 %v3999_v56 }
 0x97f   :  { %4024 = vmatpush1.bf16.msra.mxu0 %v3998_v0 }
 0x980   :  { %4025 = vmatprep.subr.bf16.mxu0 %v3997_v27 }
 0x983   :  { %4026 = vmatpush1.bf16.msra.mxu0 %v3996_v40 }
 0x984   :  { %4027 = vmatprep.subr.bf16.mxu0 %v3995_v55 }
 0x987   :  { %4028 = vmatpush1.bf16.msra.mxu0 %v3994_v29 }
 0x98a   :  { %4466 = vmatmul.mubr.msk.bf16.vlgmr.msra.gmra.mxu0 %vm1370_vm5, %v3993_v2 }
 0xa4a   :  { %v4047_v26 = vpop.f32.mrf.mxu0 }
 0xa4b   :  { %v4054_v1 = vpack.c.bf16 %v4047_v26, %v4047_v26 }
 0xa4c   :  { %v4049_v42 = vpop.f32.mrf.mxu0 }
 0xa4d   :  { %v4055_v45 = vpack.c.bf16 %v4049_v42, %v4049_v42 }
 0xa4e   :  { %v4051_v20 = vpop.f32.mrf.mxu0 }
 0xa4f   :  { %4478 = vmatprep.mubr.msk.bf16.mxu1 %vm58_vm0, %v4055_v45 }
 0xa50   :  { %4181 = vmatmul.mubr.bf16.vlgmr.msra.gmra.mxu1 %v4054_v1  ;;  %v4052_v50 = vpop.f32.mrf.mxu0 }
 0xb10   :  { %v4182_v61 = vpop.f32.mrf.mxu1 }
 0xb11   :  { %v4183_v57 = vadd.f32 %v4467_v39, %v4182_v61 }
 0xb12   :  { %v4184_v9 = vpop.f32.mrf.mxu1 }
 0xb13   :  { %4188 = vst [vmem:[%s7695_s11] sm:$0xff] %v4183_v57 }
 0xb14   :  { %v4185_v46 = vpop.f32.mrf.mxu1 }
 0xb16   :  { %v4186_v30 = vpop.f32.mrf.mxu1 }

</bundles_post_ra>
